<compile_context>
chip_gen: v7x
topology: tpu7x:2x2x1
jax: 0.10.0
libtpu: 0.0.40
codegen_flags: <defaults>
</compile_context>

<pallas_src>
import math
from functools import partial

import jax
import jax.numpy as jnp
from jax import lax
from jax.experimental import pallas as pl
from jax.experimental.pallas import tpu as pltpu


# ----------------------------------------------------------------------------
# Helpers
# ----------------------------------------------------------------------------
def _round_up(n, m):
    return ((n + m - 1) // m) * m


def _pad_axis(a, axis, new_size):
    pad = new_size - a.shape[axis]
    if pad == 0:
        return a
    assert pad > 0
    widths = [(0, 0)] * a.ndim
    widths[axis] = (0, pad)
    return jnp.pad(a, widths)


# ----------------------------------------------------------------------------
# Pallas kernel: fused Conv1d(k=3, pad=1) + bias + ReLU + time-mask,
# time-tiled with 1-row halos, optional fused channel-concat (n_inputs > 1).
# ----------------------------------------------------------------------------
def _make_conv3_kernel(n_inputs):
    def kernel(*refs):
        xs = refs[:n_inputs]                       # each (1, TT, Ci)     bf16
        edges = refs[n_inputs:2 * n_inputs]        # each (1, 1, 8, Ci)   bf16
        ws = refs[2 * n_inputs:3 * n_inputs]       # each (3, Ci, Cout)   bf16
        b_ref, m_ref, o_ref = refs[3 * n_inputs:]  # (1,Cout) f32, (1,TT,1) f32, out
        TT = o_ref.shape[1]
        row = lax.broadcasted_iota(jnp.int32, (TT, 1), 0)

        # --- center tap into the accumulator (bias folded in) ---------------
        acc = b_ref[...].astype(jnp.float32)                       # (1, Cout)
        for x_ref, w_ref in zip(xs, ws):
            acc = acc + jnp.dot(x_ref[0], w_ref[1],
                                preferred_element_type=jnp.float32)

        # --- "prev" tap: y[r] += x[r-1] @ w0 (halo row at the tile start) ---
        t0 = None
        e0 = None
        for x_ref, e_ref, w_ref in zip(xs, edges, ws):
            d = jnp.dot(x_ref[0], w_ref[0], preferred_element_type=jnp.float32)
            ed = jnp.dot(e_ref[0, 0], w_ref[0],
                         preferred_element_type=jnp.float32)       # (8, Cout)
            t0 = d if t0 is None else t0 + d
            e0 = ed[0:1, :] if e0 is None else e0 + ed[0:1, :]
        acc = acc + jnp.where(row == 0, e0, pltpu.roll(t0, shift=1, axis=0))

        # --- "next" tap: y[r] += x[r+1] @ w2 (halo row at the tile end) -----
        t2 = None
        e2 = None
        for x_ref, e_ref, w_ref in zip(xs, edges, ws):
            d = jnp.dot(x_ref[0], w_ref[2], preferred_element_type=jnp.float32)
            ed = jnp.dot(e_ref[0, 0], w_ref[2],
                         preferred_element_type=jnp.float32)       # (8, Cout)
            t2 = d if t2 is None else t2 + d
            e2 = ed[1:2, :] if e2 is None else e2 + ed[1:2, :]
        # shift by -1 == circular shift by TT-1 (pltpu.roll requires shift >= 0)
        acc = acc + jnp.where(row == TT - 1, e2,
                              pltpu.roll(t2, shift=TT - 1, axis=0))

        y = jnp.maximum(acc, 0.0) * m_ref[0]                       # (TT,1) mask
        o_ref[0] = y.astype(o_ref.dtype)

    return kernel


def conv3_relu_mask(inputs, w_parts, bias, mask, *, out_dtype=jnp.bfloat16,
                    t_tile=512):
    """relu(conv1d(concat(inputs,-1), k=3, pad=1) + b) * mask.

    inputs : list of (B, T, C_i) arrays (channel concat fused in-kernel; the
             C_i must already match w_parts[i].shape[1], i.e. lane-padded).
    w_parts: list of (3, C_i, Cout) bf16 weight splits. bias: (1, Cout) f32.
    mask   : (B, T)  ->  output (B, T, Cout).
    """
    assert t_tile % 8 == 0
    if not isinstance(inputs, (list, tuple)):
        inputs = [inputs]
    inputs = [xi.astype(jnp.bfloat16) for xi in inputs]
    B, T = inputs[0].shape[:2]
    Cout = w_parts[0].shape[2]
    n = len(inputs)
    assert len(w_parts) == n

    TT = min(t_tile, _round_up(T, 8))       # time tile (multiple of 8)
    T_pad = _round_up(T, TT)
    NT = T_pad // TT

    xs, edge_arrs = [], []
    for xi, wi in zip(inputs, w_parts):
        assert xi.shape[2] == wi.shape[1], (xi.shape, wi.shape)
        xp = jnp.pad(xi, ((0, 0), (0, T_pad - T), (0, 0)))   # zero rows -> implicit pad
        ci = xp.shape[2]
        zeros = jnp.zeros((B, 1, ci), xp.dtype)
        last_rows = xp[:, TT - 1::TT, :]                     # (B, NT, ci)
        first_rows = xp[:, ::TT, :]                          # (B, NT, ci)
        prev_rows = jnp.concatenate([zeros, last_rows[:, :-1]], axis=1)
        next_rows = jnp.concatenate([first_rows[:, 1:], zeros], axis=1)
        # 8-row edge block (sublane-aligned): row 0 = prev halo, row 1 = next halo.
        edge = jnp.concatenate(
            [prev_rows[:, :, None, :], next_rows[:, :, None, :],
             jnp.zeros((B, NT, 6, ci), xp.dtype)], axis=2)   # (B, NT, 8, ci)
        xs.append(xp)
        edge_arrs.append(edge)

    mp = jnp.pad(mask.astype(jnp.float32), ((0, 0), (0, T_pad - T)))[:, :, None]

    in_specs = (
        [pl.BlockSpec((1, TT, xi.shape[2]), lambda b, t: (b, t, 0)) for xi in xs]
        + [pl.BlockSpec((1, 1, 8, e.shape[3]), lambda b, t: (b, t, 0, 0))
           for e in edge_arrs]
        + [pl.BlockSpec(wi.shape, lambda b, t: (0, 0, 0)) for wi in w_parts]
        + [pl.BlockSpec(bias.shape, lambda b, t: (0, 0)),
           pl.BlockSpec((1, TT, 1), lambda b, t: (b, t, 0))]
    )

    out = pl.pallas_call(
        _make_conv3_kernel(n),
        out_shape=jax.ShapeDtypeStruct((B, T_pad, Cout), out_dtype),
        grid=(B, NT),
        in_specs=in_specs,
        out_specs=pl.BlockSpec((1, TT, Cout), lambda b, t: (b, t, 0)),
        compiler_params=pltpu.CompilerParams(
            dimension_semantics=("parallel", "parallel")),
    )(*xs, *edge_arrs, *w_parts, bias, mp)
    return out[:, :T, :]


# ----------------------------------------------------------------------------
# Plain-JAX glue: maxpool (ceil_mode) and linear interpolation (matmul-based)
# ----------------------------------------------------------------------------
def maxpool2_ceil(x):
    """MaxPool1d(2, stride=2, ceil_mode=True) over the time axis of (B,T,C)."""
    B, T, C = x.shape
    Tout = -(-T // 2)
    if T % 2 == 1:
        x = jnp.pad(x, ((0, 0), (0, 1), (0, 0)), constant_values=-jnp.inf)
    return x.reshape(B, Tout, 2, C).max(axis=2)


def linear_interp(x, out_len):
    """F.interpolate(mode='linear', align_corners=True) over time of (B,T,C),
    implemented as a small (Tout, Tin) interpolation-matrix matmul."""
    B, Tin, C = x.shape
    if out_len == Tin:
        return x
    if Tin == 1:
        return jnp.broadcast_to(x, (B, out_len, C))
    pos = jnp.arange(out_len, dtype=jnp.float32) * ((Tin - 1) / (out_len - 1))
    lo = jnp.clip(jnp.floor(pos), 0.0, Tin - 2)
    frac = pos - lo
    src = jnp.arange(Tin, dtype=jnp.float32)[None, :]
    W = ((1.0 - frac)[:, None] * (src == lo[:, None])
         + frac[:, None] * (src == lo[:, None] + 1.0))
    y = jnp.einsum('oi,bic->boc', W.astype(x.dtype), x,
                   preferred_element_type=jnp.float32)
    return y.astype(x.dtype)


# ----------------------------------------------------------------------------
# Parameters: deterministic PyTorch-default-like uniform init, then a prep
# pass that pre-splits skip-concat weights and lane-pads 64-channel layers.
# ----------------------------------------------------------------------------
def layer_defs(dim, outdim):
    return [
        ("conv1_1", dim, 64), ("conv1_2", 64, 64),
        ("conv2_1", 64, 128), ("conv2_2", 128, 128),
        ("conv3_1", 128, 256), ("conv3_2", 256, 256), ("conv3_3", 256, 256),
        ("conv4_1", 256, 512), ("conv4_2", 512, 512), ("conv4_3", 512, 512),
        ("conv5_1", 512, 512), ("conv5_2", 512, 512), ("conv5_3", 512, 512),
        ("conv4_3d", 1024, 512), ("conv4_2d", 512, 512), ("conv4_1d", 512, 256),
        ("conv3_3d", 512, 256), ("conv3_2d", 256, 256), ("conv3_1d", 256, 128),
        ("conv2_2d", 256, 128), ("conv2_1d", 128, 64),
        ("conv1_2d", 128, 64), ("conv1_1d", 64, outdim),
    ]


# decoder layers whose input is a channel-concat (skip connection)
_SKIP_SPLITS = {
    "conv4_3d": (512, 512),
    "conv3_3d": (256, 256),
    "conv2_2d": (128, 128),
    "conv1_2d": (64, 64),
}


def init_params(key, dim, outdim):
    params = {}
    for idx, (name, cin, cout) in enumerate(layer_defs(dim, outdim)):
        k = 1.0 / math.sqrt(cin * 3)
        kw, kb = jax.random.split(jax.random.fold_in(key, idx))
        w = jax.random.uniform(kw, (3, cin, cout), jnp.float32, -k, k)
        b = jax.random.uniform(kb, (cout,), jnp.float32, -k, k)
        params[name] = (w, b)
    return params


def prepare_params(params, dim, outdim):
    """Pre-split skip-concat weights, zero-pad Cin/Cout to 128-lane multiples,
    cast weights to bf16 (bias stays f32). Done once, outside the hot path."""
    prepped = {}
    for name, cin, cout in layer_defs(dim, outdim):
        w, b = params[name]
        splits = _SKIP_SPLITS.get(name, (cin,))
        cout_p = _round_up(cout, 128)
        parts = []
        off = 0
        for c in splits:
            part = w[:, off:off + c, :]
            part = _pad_axis(part, 1, _round_up(c, 128))   # Cin pad (matches padded acts)
            part = _pad_axis(part, 2, cout_p)               # Cout pad (lane-dense stores)
            parts.append(part.astype(jnp.bfloat16))
            off += c
        assert off == cin, (name, off, cin)
        b_p = _pad_axis(b, 0, cout_p).reshape(1, cout_p).astype(jnp.float32)
        prepped[name] = (tuple(parts), b_p)
    return prepped


# ----------------------------------------------------------------------------
# Full forward pass (matches Semantic_auxiliary.forward, dropout = identity)
# ----------------------------------------------------------------------------
def _unet_forward(conv, x, mask, outdim):
    t = x.shape[1]
    m1 = mask.astype(jnp.float32)
    m2, m4, m8, m16 = m1[:, ::2], m1[:, ::4], m1[:, ::8], m1[:, ::16]

    def pooled(y, m):
        return maxpool2_ceil(y) * m[:, :, None].astype(y.dtype)

    def up(y, m, L):
        return linear_interp(y, L) * m[:, :, None].astype(y.dtype)

    conv1_1 = conv("conv1_1", [x], m1)
    conv1_2 = conv("conv1_2", [conv1_1], m1)
    pool1 = pooled(conv1_2, m2)

    conv2_1 = conv("conv2_1", [pool1], m2)
    conv2_2 = conv("conv2_2", [conv2_1], m2)
    pool2 = pooled(conv2_2, m4)

    conv3_1 = conv("conv3_1", [pool2], m4)
    conv3_2 = conv("conv3_2", [conv3_1], m4)
    conv3_3 = conv("conv3_3", [conv3_2], m4)
    pool3 = pooled(conv3_3, m8)

    conv4_1 = conv("conv4_1", [pool3], m8)
    conv4_2 = conv("conv4_2", [conv4_1], m8)
    conv4_3 = conv("conv4_3", [conv4_2], m8)
    pool4 = pooled(conv4_3, m16)

    conv5_1 = conv("conv5_1", [pool4], m16)
    conv5_2 = conv("conv5_2", [conv5_1], m16)
    conv5_3 = conv("conv5_3", [conv5_2], m16)

    up5 = up(conv5_3, m8, math.ceil(t / 8))
    conv4_3d = conv("conv4_3d", [up5, conv4_3], m8)     # fused skip-concat (1024)
    conv4_2d = conv("conv4_2d", [conv4_3d], m8)
    conv4_1d = conv("conv4_1d", [conv4_2d], m8)

    up4 = up(conv4_1d, m4, math.ceil(t / 4))
    conv3_3d = conv("conv3_3d", [up4, conv3_3], m4)     # fused skip-concat (512)
    conv3_2d = conv("conv3_2d", [conv3_3d], m4)
    conv3_1d = conv("conv3_1d", [conv3_2d], m4)

    up3 = up(conv3_1d, m2, math.ceil(t / 2))
    conv2_2d = conv("conv2_2d", [up3, conv2_2], m2)     # fused skip-concat (256)
    conv2_1d = conv("conv2_1d", [conv2_2d], m2)

    up2 = up(conv2_1d, m1, t)
    conv1_2d = conv("conv1_2d", [up2, conv1_2], m1)     # fused skip-concat (128)
    output = conv("conv1_1d", [conv1_2d], m1, final=True)
    return output[..., :outdim]


def semantic_auxiliary_forward(prepped, x, mask, outdim=64, t_tile=512):
    """x: (B, T, dim), mask: (B, T) -> (B, T, outdim) f32 (Pallas kernel path)."""
    dim = x.shape[2]
    x = _pad_axis(x, 2, _round_up(dim, 128)).astype(jnp.bfloat16)

    def conv(name, inputs, m, final=False):
        w_parts, b = prepped[name]
        out_dtype = jnp.float32 if final else jnp.bfloat16
        return conv3_relu_mask(inputs, w_parts, b, m,
                               out_dtype=out_dtype, t_tile=t_tile)

    return _unet_forward(conv, x, mask, outdim)


# ----------------------------------------------------------------------------
# Pure-JAX reference (same quantized bf16 weights) for correctness checks
# ----------------------------------------------------------------------------
def conv_reference(inputs, w, b, mask):
    if not isinstance(inputs, (list, tuple)):
        inputs = [inputs]
    x = jnp.concatenate([i.astype(jnp.float32) for i in inputs], axis=-1)
    x = x.astype(jnp.bfloat16).astype(jnp.float32)
    wf = w.astype(jnp.bfloat16).astype(jnp.float32)
    B, T, _ = x.shape
    xp = jnp.pad(x, ((0, 0), (1, 1), (0, 0)))
    y = sum(jnp.einsum('btc,cd->btd', xp[:, k:k + T, :], wf[k],
                       precision=lax.Precision.HIGHEST) for k in range(3))
    y = jnp.maximum(y + b.astype(jnp.float32)[None, None, :], 0.0)
    return y * mask[:, :, None].astype(jnp.float32)


def semantic_auxiliary_reference(params, x, mask, outdim=64):
    def conv(name, inputs, m, final=False):
        w, b = params[name]
        return conv_reference(inputs, w, b, m)
    return _unet_forward(conv, x.astype(jnp.float32), mask, outdim)


# ----------------------------------------------------------------------------
# Demo
# ----------------------------------------------------------------------------
if __name__ == "__main__":
    DIM, OUTDIM = 2048, 64
    B, T = 2, 32

    key = jax.random.PRNGKey(0)
    kx, kp = jax.random.split(key)

    params = init_params(kp, DIM, OUTDIM)
    prepped = prepare_params(params, DIM, OUTDIM)

    x = jax.random.normal(kx, (B, T, DIM), jnp.float32)        # (B, T, C) layout
    lens = jnp.array([T, 20])
    mask = (jnp.arange(T)[None, :] < lens[:, None]).astype(jnp.float32)

    # --- check 1: multi-tile halo path (t_tile=8 -> 4 time tiles) -----------
    w_parts, b_p = prepped["conv1_1"]
    got = conv3_relu_mask([x], w_parts, b_p, mask, t_tile=8)
    ref = conv_reference([x], *params["conv1_1"], mask)
    assert bool(jnp.allclose(got[..., :64].astype(jnp.float32), ref,
                             rtol=5e-2, atol=5e-2))

    # --- check 2: fused skip-concat, T not a multiple of 8 (pads to 16) -----
    T2 = 12
    ka, kc = jax.random.split(jax.random.fold_in(key, 7))
    a = jax.random.normal(ka, (B, T2, 128), jnp.float32)
    c = jax.random.normal(kc, (B, T2, 128), jnp.float32)
    mask2 = jnp.ones((B, T2), jnp.float32)
    wp2, bp2 = prepped["conv2_2d"]
    got2 = conv3_relu_mask([a, c], wp2, bp2, mask2)
    ref2 = conv_reference([a, c], *params["conv2_2d"], mask2)
    assert bool(jnp.allclose(got2[..., :128].astype(jnp.float32), ref2,
                             rtol=5e-2, atol=5e-2))

    # --- full forward pass (kernel path) vs. pure-JAX reference -------------
    fwd = jax.jit(lambda xx, mm: semantic_auxiliary_forward(
        prepped, xx, mm, outdim=OUTDIM))
    out = fwd(x, mask)
    jax.block_until_ready(out)

    assert out.shape == (B, T, OUTDIM), out.shape
    assert bool(jnp.all(jnp.isfinite(out)))

    ref_out = semantic_auxiliary_reference(params, x, mask, OUTDIM)
    num = jnp.linalg.norm((out.astype(jnp.float32) - ref_out).ravel())
    den = jnp.linalg.norm(ref_out.ravel()) + 1e-6
    assert float(num / den) < 1e-1, float(num / den)

    print("KERNEL_OK")
</pallas_src>

<mosaic_0001>
module attributes {stable_mosaic.version = 11 : i64} {
  func.func @kernel(%arg0: i32, %arg1: i32, %arg2: memref<1x8x2048xbf16, #tpu.memory_space<vmem>>, %arg3: memref<1x1x8x2048xbf16, #tpu.memory_space<vmem>>, %arg4: memref<3x2048x128xbf16, #tpu.memory_space<vmem>>, %arg5: memref<1x128xf32, #tpu.memory_space<vmem>>, %arg6: memref<1x8x1xf32, #tpu.memory_space<vmem>>, %arg7: memref<1x8x128xbf16, #tpu.memory_space<vmem>>) attributes {dimension_semantics = [#tpu.dimension_semantics<parallel>, #tpu.dimension_semantics<parallel>], iteration_bounds = array<i64: 2, 4>, scalar_prefetch = 0 : i64, scratch_operands = 0 : i64, tpu.core_type = #tpu.core_type<tc>, window_params = [{transform_indices = @transform_0, window_bounds = array<i64: 1, 8, 2048>}, {transform_indices = @transform_1, window_bounds = array<i64: 1, 1, 8, 2048>}, {pipeline_mode = #tpu.pipeline_mode<synchronous>, transform_indices = @transform_2, window_bounds = array<i64: 3, 2048, 128>}, {pipeline_mode = #tpu.pipeline_mode<synchronous>, transform_indices = @transform_3, window_bounds = array<i64: 1, 128>}, {transform_indices = @transform_4, window_bounds = array<i64: 1, 8, 1>}, {transform_indices = @transform_5, window_bounds = array<i64: 1, 8, 128>}]} {
    %0 = tpu.iota {dimensions = array<i32: 0>} : vector<8x1xi32>
    %c0 = arith.constant 0 : index
    %c0_0 = arith.constant 0 : index
    %1 = vector.load %arg5[%c0, %c0_0] : memref<1x128xf32, #tpu.memory_space<vmem>>, vector<1x128xf32>
    %c0_1 = arith.constant 0 : index
    %c0_2 = arith.constant 0 : index
    %c0_3 = arith.constant 0 : index
    %2 = vector.load %arg2[%c0_1, %c0_2, %c0_3] : memref<1x8x2048xbf16, #tpu.memory_space<vmem>>, vector<1x8x2048xbf16>
    %3 = vector.shape_cast %2 : vector<1x8x2048xbf16> to vector<8x2048xbf16>
    %c1 = arith.constant 1 : index
    %c0_4 = arith.constant 0 : index
    %c0_5 = arith.constant 0 : index
    %4 = vector.load %arg4[%c1, %c0_4, %c0_5] : memref<3x2048x128xbf16, #tpu.memory_space<vmem>>, vector<1x2048x128xbf16>
    %5 = vector.shape_cast %4 : vector<1x2048x128xbf16> to vector<2048x128xbf16>
    %cst = arith.constant dense<0.000000e+00> : vector<8x128xf32>
    %6 = tpu.matmul %3, %5, %cst {dimension_numbers = #tpu.dot_dimension_numbers<[1], [0], [0], [1], [0, 0, 1, 1], [], []>} : vector<8x2048xbf16>, vector<2048x128xbf16>, vector<8x128xf32> -> vector<8x128xf32>
    %7 = vector.broadcast %1 : vector<1x128xf32> to vector<8x128xf32>
    %8 = arith.addf %7, %6 : vector<8x128xf32>
    %c0_6 = arith.constant 0 : index
    %c0_7 = arith.constant 0 : index
    %c0_8 = arith.constant 0 : index
    %9 = vector.load %arg2[%c0_6, %c0_7, %c0_8] : memref<1x8x2048xbf16, #tpu.memory_space<vmem>>, vector<1x8x2048xbf16>
    %10 = vector.shape_cast %9 : vector<1x8x2048xbf16> to vector<8x2048xbf16>
    %c0_9 = arith.constant 0 : index
    %c0_10 = arith.constant 0 : index
    %c0_11 = arith.constant 0 : index
    %11 = vector.load %arg4[%c0_9, %c0_10, %c0_11] : memref<3x2048x128xbf16, #tpu.memory_space<vmem>>, vector<1x2048x128xbf16>
    %12 = vector.shape_cast %11 : vector<1x2048x128xbf16> to vector<2048x128xbf16>
    %cst_12 = arith.constant dense<0.000000e+00> : vector<8x128xf32>
    %13 = tpu.matmul %10, %12, %cst_12 {dimension_numbers = #tpu.dot_dimension_numbers<[1], [0], [0], [1], [0, 0, 1, 1], [], []>} : vector<8x2048xbf16>, vector<2048x128xbf16>, vector<8x128xf32> -> vector<8x128xf32>
    %c0_13 = arith.constant 0 : index
    %c0_14 = arith.constant 0 : index
    %c0_15 = arith.constant 0 : index
    %c0_16 = arith.constant 0 : index
    %14 = vector.load %arg3[%c0_13, %c0_14, %c0_15, %c0_16] : memref<1x1x8x2048xbf16, #tpu.memory_space<vmem>>, vector<1x1x8x2048xbf16>
    %15 = vector.shape_cast %14 : vector<1x1x8x2048xbf16> to vector<8x2048xbf16>
    %c0_17 = arith.constant 0 : index
    %c0_18 = arith.constant 0 : index
    %c0_19 = arith.constant 0 : index
    %16 = vector.load %arg4[%c0_17, %c0_18, %c0_19] : memref<3x2048x128xbf16, #tpu.memory_space<vmem>>, vector<1x2048x128xbf16>
    %17 = vector.shape_cast %16 : vector<1x2048x128xbf16> to vector<2048x128xbf16>
    %cst_20 = arith.constant dense<0.000000e+00> : vector<8x128xf32>
    %18 = tpu.matmul %15, %17, %cst_20 {dimension_numbers = #tpu.dot_dimension_numbers<[1], [0], [0], [1], [0, 0, 1, 1], [], []>} : vector<8x2048xbf16>, vector<2048x128xbf16>, vector<8x128xf32> -> vector<8x128xf32>
    %19 = vector.extract_strided_slice %18 {offsets = [0, 0], sizes = [1, 128], strides = [1, 1]} : vector<8x128xf32> to vector<1x128xf32>
    %c0_i32 = arith.constant 0 : i32
    %20 = vector.broadcast %c0_i32 : i32 to vector<8x1xi32>
    %21 = arith.cmpi eq, %0, %20 : vector<8x1xi32>
    %c1_i32 = arith.constant 1 : i32
    %22 = tpu.dynamic_rotate %13 by %c1_i32 dim 0 : vector<8x128xf32>, i32 -> vector<8x128xf32>
    %23 = vector.shape_cast %21 : vector<8x1xi1> to vector<8x1xi1>
    %24 = vector.broadcast %23 : vector<8x1xi1> to vector<8x128xi1>
    %25 = vector.shape_cast %19 : vector<1x128xf32> to vector<1x128xf32>
    %26 = vector.broadcast %25 : vector<1x128xf32> to vector<8x128xf32>
    %27 = arith.select %24, %26, %22 : vector<8x128xi1>, vector<8x128xf32>
    %28 = arith.addf %8, %27 : vector<8x128xf32>
    %c0_21 = arith.constant 0 : index
    %c0_22 = arith.constant 0 : index
    %c0_23 = arith.constant 0 : index
    %29 = vector.load %arg2[%c0_21, %c0_22, %c0_23] : memref<1x8x2048xbf16, #tpu.memory_space<vmem>>, vector<1x8x2048xbf16>
    %30 = vector.shape_cast %29 : vector<1x8x2048xbf16> to vector<8x2048xbf16>
    %c2 = arith.constant 2 : index
    %c0_24 = arith.constant 0 : index
    %c0_25 = arith.constant 0 : index
    %31 = vector.load %arg4[%c2, %c0_24, %c0_25] : memref<3x2048x128xbf16, #tpu.memory_space<vmem>>, vector<1x2048x128xbf16>
    %32 = vector.shape_cast %31 : vector<1x2048x128xbf16> to vector<2048x128xbf16>
    %cst_26 = arith.constant dense<0.000000e+00> : vector<8x128xf32>
    %33 = tpu.matmul %30, %32, %cst_26 {dimension_numbers = #tpu.dot_dimension_numbers<[1], [0], [0], [1], [0, 0, 1, 1], [], []>} : vector<8x2048xbf16>, vector<2048x128xbf16>, vector<8x128xf32> -> vector<8x128xf32>
    %c0_27 = arith.constant 0 : index
    %c0_28 = arith.constant 0 : index
    %c0_29 = arith.constant 0 : index
    %c0_30 = arith.constant 0 : index
    %34 = vector.load %arg3[%c0_27, %c0_28, %c0_29, %c0_30] : memref<1x1x8x2048xbf16, #tpu.memory_space<vmem>>, vector<1x1x8x2048xbf16>
    %35 = vector.shape_cast %34 : vector<1x1x8x2048xbf16> to vector<8x2048xbf16>
    %c2_31 = arith.constant 2 : index
    %c0_32 = arith.constant 0 : index
    %c0_33 = arith.constant 0 : index
    %36 = vector.load %arg4[%c2_31, %c0_32, %c0_33] : memref<3x2048x128xbf16, #tpu.memory_space<vmem>>, vector<1x2048x128xbf16>
    %37 = vector.shape_cast %36 : vector<1x2048x128xbf16> to vector<2048x128xbf16>
    %cst_34 = arith.constant dense<0.000000e+00> : vector<8x128xf32>
    %38 = tpu.matmul %35, %37, %cst_34 {dimension_numbers = #tpu.dot_dimension_numbers<[1], [0], [0], [1], [0, 0, 1, 1], [], []>} : vector<8x2048xbf16>, vector<2048x128xbf16>, vector<8x128xf32> -> vector<8x128xf32>
    %39 = vector.extract_strided_slice %38 {offsets = [1, 0], sizes = [1, 128], strides = [1, 1]} : vector<8x128xf32> to vector<1x128xf32>
    %c7_i32 = arith.constant 7 : i32
    %40 = vector.broadcast %c7_i32 : i32 to vector<8x1xi32>
    %41 = arith.cmpi eq, %0, %40 : vector<8x1xi32>
    %c7_i32_35 = arith.constant 7 : i32
    %42 = tpu.dynamic_rotate %33 by %c7_i32_35 dim 0 : vector<8x128xf32>, i32 -> vector<8x128xf32>
    %43 = vector.shape_cast %41 : vector<8x1xi1> to vector<8x1xi1>
    %44 = vector.broadcast %43 : vector<8x1xi1> to vector<8x128xi1>
    %45 = vector.shape_cast %39 : vector<1x128xf32> to vector<1x128xf32>
    %46 = vector.broadcast %45 : vector<1x128xf32> to vector<8x128xf32>
    %47 = arith.select %44, %46, %42 : vector<8x128xi1>, vector<8x128xf32>
    %48 = arith.addf %28, %47 : vector<8x128xf32>
    %cst_36 = arith.constant 0.000000e+00 : f32
    %49 = vector.broadcast %cst_36 : f32 to vector<8x128xf32>
    %50 = arith.maximumf %48, %49 : vector<8x128xf32>
    %c0_37 = arith.constant 0 : index
    %c0_38 = arith.constant 0 : index
    %c0_39 = arith.constant 0 : index
    %51 = vector.load %arg6[%c0_37, %c0_38, %c0_39] : memref<1x8x1xf32, #tpu.memory_space<vmem>>, vector<1x8x1xf32>
    %52 = vector.shape_cast %51 : vector<1x8x1xf32> to vector<8x1xf32>
    %53 = vector.broadcast %52 : vector<8x1xf32> to vector<8x128xf32>
    %54 = arith.mulf %50, %53 : vector<8x128xf32>
    %55 = arith.truncf %54 : vector<8x128xf32> to vector<8x128xbf16>
    %c0_40 = arith.constant 0 : index
    %c0_41 = arith.constant 0 : index
    %c0_42 = arith.constant 0 : index
    %56 = vector.load %arg7[%c0_40, %c0_41, %c0_42] : memref<1x8x128xbf16, #tpu.memory_space<vmem>>, vector<1x8x128xbf16>
    %57 = vector.shape_cast %56 : vector<1x8x128xbf16> to vector<8x128xbf16>
    %58 = vector.shape_cast %55 : vector<8x128xbf16> to vector<1x8x128xbf16>
    tpu.vector_store %arg7[%c0_40, %c0_41, %c0_42], %58 {strides = array<i32>} : memref<1x8x128xbf16, #tpu.memory_space<vmem>>, vector<1x8x128xbf16>,
    return
  }
  func.func @transform_0(%arg0: i32, %arg1: i32) -> (i32, i32, i32) {
    %c0_i32 = arith.constant 0 : i32
    %c0_i32_0 = arith.constant 0 : i32
    return %arg0, %arg1, %c0_i32 : i32, i32, i32
  }
  func.func @transform_1(%arg0: i32, %arg1: i32) -> (i32, i32, i32, i32) {
    %c0_i32 = arith.constant 0 : i32
    %c0_i32_0 = arith.constant 0 : i32
    %c0_i32_1 = arith.constant 0 : i32
    return %arg0, %arg1, %c0_i32, %c0_i32_0 : i32, i32, i32, i32
  }
  func.func @transform_2(%arg0: i32, %arg1: i32) -> (i32, i32, i32) {
    %c0_i32 = arith.constant 0 : i32
    %c0_i32_0 = arith.constant 0 : i32
    %c0_i32_1 = arith.constant 0 : i32
    %c0_i32_2 = arith.constant 0 : i32
    return %c0_i32, %c0_i32_0, %c0_i32_1 : i32, i32, i32
  }
  func.func @transform_3(%arg0: i32, %arg1: i32) -> (i32, i32) {
    %c0_i32 = arith.constant 0 : i32
    %c0_i32_0 = arith.constant 0 : i32
    %c0_i32_1 = arith.constant 0 : i32
    return %c0_i32, %c0_i32_0 : i32, i32
  }
  func.func @transform_4(%arg0: i32, %arg1: i32) -> (i32, i32, i32) {
    %c0_i32 = arith.constant 0 : i32
    %c0_i32_0 = arith.constant 0 : i32
    return %arg0, %arg1, %c0_i32 : i32, i32, i32
  }
  func.func @transform_5(%arg0: i32, %arg1: i32) -> (i32, i32, i32) {
    %c0_i32 = arith.constant 0 : i32
    %c0_i32_0 = arith.constant 0 : i32
    return %arg0, %arg1, %c0_i32 : i32, i32, i32
  }
}

</mosaic_0001>

<bundles_post_ra>
// kernel: tpu_custom_call.1
= control target key start
LH: loop header
LB: loop body
LE: loop exit
PB: predicated region body
PF: predicated region fallthrough
CT: control target
= control target key end

     0   :  { %s8895_s0 = inlined_call_operand.hbm [shape: bf16[2,32,2048], index: 0, kind: input, shape index: {}]   ;;  %s8896_s1 = inlined_call_operand.hbm [shape: bf16[2,4,8,2048], index: 1, kind: input, shape index: {}]   ;;  %s8897_s2 = inlined_call_operand.hbm [shape: bf16[3,2048,128], index: 2, kind: input, shape index: {}]   ;;  %s8898_s3 = inlined_call_operand.hbm [shape: f32[1,128], index: 3, kind: input, shape index: {}]   ;;  %s8899_s4 = inlined_call_operand.vmem [shape: f32[2,32,1], index: 4, kind: input, shape index: {}]   ;;  %s8900_s5 = inlined_call_operand.hbm [shape: bf16[2,32,128], index: 5, kind: output, shape index: {}]  }
   0x1   :  { %9050 = sst [smem:[#allocation111_spill]] %s8897_s2 }
   0x2   :  { %9051 = sst [smem:[#allocation112_spill]] %s8898_s3 }
   0x3   :  { %9052 = sst [smem:[#allocation113_spill]] %s8900_s5 }
   0x4   :  { %10 = vsyncpa [#allocation3], 0 }
   0x5   :  { %12 = vsyncpa [#allocation3 + $0x1], 0 }
   0x6   :  { %13 = vsyncpa [#allocation6], 0 }
   0x7   :  { %15 = vsyncpa [#allocation6 + $0x1], 0 }
   0x8   :  { %16 = vsyncpa [#allocation9], 0 }
   0x9   :  { %17 = vsyncpa [#allocation4], 0 }
   0xa   :  { %19 = vsyncpa [#allocation4 + $0x1], 0  ;;  %s7529_s18 = smov 0   ;;  %s7531_s19 = smov 0  }
   0xb   :  { %s7533_s20 = smov 0   ;;  %s7535_s21 = smov 0  }
   0xc   :  { %s7537_s22 = smov 0   ;;  %s7539_s23 = smov 0  }
   0xd   :  { %s7541_s24 = smov 0   ;;  %s7543_s25 = smov 0  }
   0xe LB: > { %9053 = sst [smem:[#allocation16_spill]] %s7461_s18  ;;  %s7570_s26 = sadd.s32 4294967295, %s7489_s25   ;;  %s7489_s25 = sphi %s7543_s25, %s25_s25   ;;  %s7485_s24 = sphi %s7541_s24, %s9368_s24   ;;  %s7481_s23 = sphi %s7539_s23, %s9367_s23   ;;  %s7477_s22 = sphi %s7537_s22, %s9366_s22   ;;  %s7473_s21 = sphi %s7535_s21, %s9365_s21   ;;  %s7469_s20 = sphi %s7533_s20, %s9364_s20   ;;  %s7465_s19 = sphi %s7531_s19, %s9363_s19   ;;  %s7461_s18 = sphi %s7529_s18, %s9362_s18  }
   0xf   : > { %s5368_s27 = sadd.s32 4294967294, %s7489_s25   ;;  %p59_p0 = scmp.ne.s32.totalorder %s7465_s19, %s7461_s18 }
  0x10   : > { %p8901_p1 = scmp.eq.s32.totalorder %s7570_s26, 0  ;;  %p189_p3 = scmp.eq.s32.totalorder %s5368_s27, 7 }
  0x11   : > { %p5369_p5 = scmp.ge.s32.totalorder %s7489_s25, 1  ;;  %p196_p7 = scmp.lt.s32.totalorder %s7489_s25, 9 }
  0x12   : > { %p7579_p4 = por %p8901_p1, %p59_p0  ;;  %p7584_p6 = por %p189_p3, %p59_p0 }
  0x13   : > { %p7589_p8 = pnand %p5369_p5, %p196_p7  ;;  %s7491_s6 = smov [#allocation7]  }
  0x14   : > { %s9054_s28 = scalar_select %p7579_p4, 1, 0 }
  0x15   : > { %s9055_s29 = scalar_select %p7584_p6, 1, 0 }
  0x16   : > { %s9057_s30 = scalar_select %p7589_p8, 1, 0 }
  0x17   : > { %9056 = sst [smem:[#allocation17_spill]] %s9055_s29  ;;  %s208_s7 = sshll.u32 %s7491_s6, 4  ;;  %s209_s7 = int_to_ptr.vmem [resolvable:$true] %s208_s7 }
  0x18   : > { %p6705_p9 = pneg %p7589_p8  ;;  %s7492_s9 = smov [#allocation8]  }
  0x19   : > { %s222_s10 = sshll.u32 %s7492_s9, 4  ;;  %s9059_s2 = sld [smem:[#allocation111_spill]]  ;;  %s7601_s10 = int_to_ptr.vmem [resolvable:$true] %s222_s10 }
  0x1a   : > { %p7597_p10 = pnand %p6705_p9, %p8901_p1 }
  0x1c   : > { %p7265_p12 = pneg %p7597_p10 }
  0x1f   : > { %s7263_s13 = scalar_lea.hbm %s9059_s2, 49152 }
  0x20   : > { %p7264_p11 = scmp.ne.s32.totalorder %s9059_s2, %s7263_s13  ;;  %p7270_p3 = scmp.lt.u32.totalorder %s7263_s13, %s9059_s2 }
  0x22   : > { %p7266_p13 = pnand %p7265_p12, %p7264_p11 }
  0x24   : > { %p7267_p0 = pneg %p7266_p13 }
  0x26   : > { %p7272_p5 = pnand %p7270_p3, %p7267_p0 }
  0x28   : > { %7275 = shalt.err (!%p7272_p5)
}
  0x29   : > { %s7276_s27 = scalar_lea.vmem %s209_s7, 49152  ;;  %p7284_p2 = scmp.lt.s32.totalorder %s209_s7, %s209_s7 }
  0x2a   : > { %p7277_p7 = scmp.ne.s32.totalorder %s209_s7, %s7276_s27  ;;  %p7285_p6 = scmp.lt.s32.totalorder %s7276_s27, %s7276_s27 }
  0x2c   : > { %p7279_p9 = pnand %p7277_p7, %p7265_p12  ;;  %p7286_p4 = por %p7285_p6, %p7284_p2 }
  0x2e   : > { %p7280_p1 = pneg %p7279_p9 }
  0x30   : > { %p7287_p8 = pnand %p7286_p4, %p7280_p1 }
  0x32   : > { %7290 = shalt.err (!%p7287_p8)
}
  0x33   : > { %s7493_s6 = smov 64   ;;  %s7494_s9 = smov 4  }
  0x34   : > { %6708 = dma.hbm_to_vmem [thread:$0]  (!%p7597_p10), %s9059_s2, 49152, %s209_s7, [#allocation6], %s7493_s6, %s7493_s6, %s7494_s9  }
  0x35   : > { %s9060_s3 = sld [smem:[#allocation112_spill]] }
  0x3b   : > { %s7291_s15 = scalar_lea.hbm %s9060_s3, 16 }
  0x3c   : > { %p7292_p11 = scmp.ne.s32.totalorder %s9060_s3, %s7291_s15  ;;  %p7298_p4 = scmp.lt.u32.totalorder %s7291_s15, %s9060_s3 }
  0x3e   : > { %p7294_p1 = pnand %p7292_p11, %p7265_p12 }
  0x40   : > { %p7295_p2 = pneg %p7294_p1 }
  0x42   : > { %p7300_p6 = pnand %p7298_p4, %p7295_p2 }
  0x44   : > { %7303 = shalt.err (!%p7300_p6)
}
  0x45   : > { %s7304_s7 = scalar_lea.vmem %s7601_s10, 16  ;;  %s7311_s6 = scalar_lea.vmem %s7601_s10, 32 }
  0x46   : > { %p7305_p8 = scmp.ne.s32.totalorder %s7601_s10, %s7304_s7  ;;  %p7312_p3 = scmp.lt.s32.totalorder %s7601_s10, %s7601_s10 }
  0x47   : > { %p7313_p5 = scmp.lt.s32.totalorder %s7311_s6, %s7304_s7 }
  0x48   : > { %p7307_p13 = pnand %p7305_p8, %p7265_p12 }
  0x49   : > { %p7314_p7 = por %p7313_p5, %p7312_p3 }
  0x4a   : > { %p7308_p0 = pneg %p7307_p13 }
  0x4c   : > { %p7315_p9 = pnand %p7314_p7, %p7308_p0 }
  0x4e   : > { %7318 = shalt.err (!%p7315_p9)
}
  0x4f   : > { %6711 = dma.hbm_to_vmem [thread:$0]  (!%p7597_p10), %s9060_s3, 16, %s7601_s10, [#allocation9]  }
  0x50   : > { %s34_s11 = sadd.s32 1, %s7481_s23  ;;  %s37_s12 = sadd.s32 1, %s7485_s24 }
  0x51   : > { %p35_p12 = scmp.ge.s32.totalorder %s34_s11, 4  ;;  %s46_s8 = sadd.s32 1, %s7469_s20 }
  0x52   : > { %p53_p11 = scmp.ne.s32.totalorder %s7469_s20, %s7465_s19  ;;  %p54_p1 = scmp.eq.s32.totalorder %s7489_s25, 0 }
  0x53   : > { %s9370_s11 = smov (%p35_p12, %s34_s11), 0  ;;  %s9372_s12 = smov (!%p35_p12, %s37_s12), %s7485_s24 }
  0x54   : > { %9061 = sst [smem:[#allocation18_spill]] %s9370_s11  ;;  %s42_s13 = ssub.s32 %s7481_s23, %s9370_s11 }
  0x55   : > { %p7662_p2 = por %p54_p1, %p53_p11  ;;  %p39_p10 = scmp.ge.s32.totalorder %s9372_s12, 2 }
  0x56   : > { %p9063_p4 = scmp.eq.s32.totalorder %s7570_s26, 7  ;;  %p6725_p8 = scmp.lt.s32.totalorder %s7489_s25, 8 }
  0x57   : > { %s233_s15 = sand.u32 1, %s7469_s20   ;;  %s9374_s12 = smov (%p39_p10, %s9372_s12), 0 }
  0x58   : > { %p7668_p6 = por %p9063_p4, %p53_p11  ;;  %s7676_s16 = sshll.u32 %s233_s15, 6 }
  0x59   : > { %s41_s17 = ssub.s32 %s7485_s24, %s9374_s12  ;;  %s5374_s7 = sshll.u32 %s7481_s23, 4 }
  0x5a   : > { %s9064_s10 = scalar_select %p7668_p6, 1, 0 }
  0x5b   : > { %s43_s27 = sor.u32 %s42_s13, %s41_s17  ;;  %s5375_s6 = sshll.u32 %s7485_s24, 6 }
  0x5c   : > { %9065 = sst [smem:[#allocation19_spill]] %s9064_s10  ;;  %p44_p13 = scmp.eq.s32.totalorder %s43_s27, 0 }
  0x5d   : > { %s243_s29 = sadd.s32 %s5375_s6, %s5374_s7  ;;  %s237_s9 = scalar_lea.vmem [#allocation2], %s7676_s16 }
  0x5e   : > { %s247_s2 = sshll.u32 %s237_s9, 4  ;;  %s5376_s11 = sshll.u32 %s243_s29, 6  ;;  %s7686_s2 = int_to_ptr.vmem [resolvable:$true] %s247_s2 }
  0x5f   : > { %s7684_s3 = scalar_select %p44_p13, %s7469_s20, %s46_s8  }
  0x60   : > { %s7691_s10 = scalar_lea.hbm %s8895_s0, %s5376_s11  ;;  %p7697_p0 = pnand %p6725_p8, %p7662_p2 }
  0x61   : > { %s7704_s27 = scalar_lea.hbm %s8896_s1, %s5376_s11  ;;  %s254_s5 = sand.u32 1, %s7489_s25  }
  0x62   : > { %s234_s18 = scalar_lea.sflag [#allocation3], %s233_s15  ;;  %s7319_s7 = scalar_lea.hbm %s7691_s10, 1024 }
  0x63   : > { %p7320_p3 = scmp.ne.s32.totalorder %s7691_s10, %s7319_s7  ;;  %p7321_p5 = pneg %p7697_p0 }
  0x64   : > { %s7324_s29 = scalar_lea.hbm %s8895_s0, 8192  ;;  %p7325_p12 = scmp.lt.u32.totalorder %s7691_s10, %s8895_s0 }
  0x65   : > { %p7322_p7 = pnand %p7321_p5, %p7320_p3  ;;  %p7326_p11 = scmp.lt.u32.totalorder %s7324_s29, %s7319_s7 }
  0x66   : > { %p7328_p2 = scmp.lt.u32.totalorder %s7319_s7, %s7691_s10 }
  0x67   : > { %p7323_p9 = pneg %p7322_p7  ;;  %p7327_p1 = por %p7326_p11, %p7325_p12 }
  0x69   : > { %p7329_p10 = por %p7328_p2, %p7327_p1 }
  0x6b   : > { %p7330_p4 = pnand %p7329_p10, %p7323_p9 }
  0x6d   : > { %7333 = shalt.err (!%p7330_p4)
}
  0x6e   : > { %s7334_s11 = scalar_lea.vmem %s7686_s2, 1024  ;;  %s7495_s15 = smov [#allocation2]  }
  0x6f   : > { %p7335_p8 = scmp.ne.s32.totalorder %s7686_s2, %s7334_s11  ;;  %s7339_s17 = sshll.u32 %s7495_s15, 4  ;;  %s7340_s17 = int_to_ptr.vmem [resolvable:$false] %s7339_s17 }
  0x70   : > { %s7341_s14 = scalar_lea.vmem %s7340_s17, 2048  ;;  %p7342_p7 = scmp.lt.s32.totalorder %s7686_s2, %s7340_s17 }
  0x71   : > { %p7337_p13 = pnand %p7335_p8, %p7321_p5  ;;  %p7343_p12 = scmp.lt.s32.totalorder %s7341_s14, %s7334_s11 }
  0x73   : > { %p7338_p3 = pneg %p7337_p13  ;;  %p7344_p11 = por %p7343_p12, %p7342_p7 }
  0x75   : > { %p7345_p1 = pnand %p7344_p11, %p7338_p3 }
  0x77   : > { %7348 = shalt.err (!%p7345_p1)
}
  0x78   : > { %6715 = dma.hbm_to_vmem [thread:$0]  (!%p7697_p0), %s7691_s10, 1024, %s7686_s2, %s234_s18  }
  0x79   : > { %s258_s7 = scalar_lea.vmem [#allocation5], %s7676_s16  ;;  %s255_s29 = scalar_lea.sflag [#allocation6], %s254_s5 }
  0x7a   : > { %s268_s6 = sshll.u32 %s258_s7, 4  ;;  %s7349_s9 = scalar_lea.hbm %s7704_s27, 1024  ;;  %s269_s6 = int_to_ptr.vmem [resolvable:$true] %s268_s6 }
  0x7b   : > { %p7350_p9 = scmp.ne.s32.totalorder %s7704_s27, %s7349_s9  ;;  %s7354_s15 = scalar_lea.hbm %s8896_s1, 8192 }
  0x7c   : > { %p7355_p4 = scmp.lt.u32.totalorder %s7704_s27, %s8896_s1  ;;  %p7356_p8 = scmp.lt.u32.totalorder %s7354_s15, %s7349_s9 }
  0x7d   : > { %p7352_p2 = pnand %p7350_p9, %p7321_p5  ;;  %p7358_p3 = scmp.lt.u32.totalorder %s7349_s9, %s7704_s27 }
  0x7e   : > { %p7357_p13 = por %p7356_p8, %p7355_p4 }
  0x7f   : > { %p7353_p10 = pneg %p7352_p2 }
  0x80   : > { %p7359_p7 = por %p7358_p3, %p7357_p13 }
  0x82   : > { %p7360_p12 = pnand %p7359_p7, %p7353_p10 }
  0x84   : > { %7363 = shalt.err (!%p7360_p12)
}
  0x85   : > { %s7364_s2 = scalar_lea.vmem %s269_s6, 1024  ;;  %s7496_s10 = smov [#allocation5]  }
  0x86   : > { %p7365_p11 = scmp.ne.s32.totalorder %s269_s6, %s7364_s2  ;;  %s7369_s16 = sshll.u32 %s7496_s10, 4  ;;  %s7370_s16 = int_to_ptr.vmem [resolvable:$false] %s7369_s16 }
  0x87   : > { %s7371_s5 = scalar_lea.vmem %s7370_s16, 2048  ;;  %p7372_p2 = scmp.lt.s32.totalorder %s269_s6, %s7370_s16 }
  0x88   : > { %p7367_p1 = pnand %p7365_p11, %p7321_p5  ;;  %p7373_p6 = scmp.lt.s32.totalorder %s7371_s5, %s7364_s2 }
  0x8a   : > { %p7368_p9 = pneg %p7367_p1  ;;  %p7374_p4 = por %p7373_p6, %p7372_p2 }
  0x8c   : > { %p7375_p8 = pnand %p7374_p4, %p7368_p9 }
  0x8e   : > { %7378 = shalt.err (!%p7375_p8)
}
  0x8f   : > { %6718 = dma.hbm_to_vmem [thread:$0]  (!%p7697_p0), %s7704_s27, 1024, %s269_s6, %s255_s29  }
  0x90   : > { %p9067_p10 = scmp.ne.s32.totalorder %s9057_s30, 0 }
  0x92   : > { %288 = sbr.rel (%p9067_p10) target bundleno = 1052 (0x41c), region = 40 }
  0x99   : > { %s7757_s18 = sand.u32 1, %s7465_s19   ;;  %p9068_p6 = scmp.ne.s32.totalorder %s9054_s28, 0 }
  0x9a   : > { %s5382_s7 = sshll.u32 %s7757_s18, 6  ;;  %s291_s9 = scalar_lea.sflag [#allocation3], %s7757_s18 }
  0x9b   : > { %s7761_s8 = scalar_lea.vmem [#allocation2], %s5382_s7 }
  0x9c   : > { %7440 = dma.done.wait (%p9068_p6), %s291_s9, 1024  }
  0x9d   : > { %7442 = vsyncadd (%p9068_p6), %s291_s9, 4294966272  ;;  %s299_s13 = sand.u32 1, %s7570_s26   ;;  %s7768_s27 = scalar_lea.vmem [#allocation5], %s5382_s7 }
  0x9e   : > { %s300_s30 = scalar_lea.sflag [#allocation6], %s299_s13 }
  0x9f   : > { %7444 = dma.done.wait (%p9068_p6), %s300_s30, 1024  }
  0xa0   : > { %7446 = vsyncadd (%p9068_p6), %s300_s30, 4294966272  ;;  %p9069_p0 = scmp.eq.s32.totalorder %s7570_s26, 0 }
  0xa2   : > { %7448 = dma.done.wait (%p9069_p0), [#allocation6], 49152   ;;  %p9070_p5 = pmov %p9069_p0 }
  0xa3   : > { %p9071_p13 = pmov %p9069_p0 }
  0xa4   : > { %7450 = vsyncadd (%p9070_p5), [#allocation6], 4294918144 }
  0xa5   : > { %7452 = dma.done.wait (%p9071_p13), [#allocation9], 16   ;;  %p9072_p3 = pmov %p9069_p0 }
  0xa6   : > { %v6799_v0 = vld [vmem:[#allocation7 + $0x440] sm:$0xff]   ;;  %v6803_v4 = vld [vmem:[#allocation7 + $0x448] sm:$0xff]   ;;  %v6807_v8 = vld [vmem:[#allocation7 + $0x450] sm:$0xff]   ;;  %p351_p7 = scmp.lt.s32.totalorder %s7477_s22, 1  ;;  %p353_p12 = scmp.lt.s32.totalorder %s7473_s21, 3 }
  0xa7   : > { %7454 = vsyncadd (%p9072_p3), [#allocation9], 4294967280  ;;  %v6800_v1 = vld [vmem:[#allocation7 + $0x4c0] sm:$0xff]   ;;  %5811 = vmatprep.subr.bf16.mxu0 %v6799_v0  ;;  %v6804_v5 = vld [vmem:[#allocation7 + $0x4c8] sm:$0xff]   ;;  %s5386_s2 = sshll.u32 %s7757_s18, 2  ;;  %s5807_s10 = sshll.u32 %s7477_s22, 2 }
  0xa8   : > { %v6801_v2 = vld [vmem:[#allocation7 + $0x400] sm:$0xff]   ;;  %5833 = vmatprep.subr.bf16.mxu1 %v6800_v1  ;;  %v6805_v6 = vld [vmem:[#allocation7 + $0x408] sm:$0xff]   ;;  %v6808_v9 = vld [vmem:[#allocation7 + $0x4d0] sm:$0xff]   ;;  %s352_s26 = scalar_select %p351_p7, %s7477_s22, 1 }
  0xa9   : > { %v6802_v3 = vld [vmem:[#allocation7 + $0x480] sm:$0xff]   ;;  %5812 = vmatpush3.bf16.msra.mxu0 %v6801_v2  ;;  %v6806_v7 = vld [vmem:[#allocation7 + $0x488] sm:$0xff]   ;;  %v6809_v10 = vld [vmem:[#allocation7 + $0x410] sm:$0xff]   ;;  %s354_s28 = scalar_select %p353_p12, %s7473_s21, 3 }
  0xaa   : > { %5834 = vmatpush3.bf16.msra.mxu1 %v6802_v3  ;;  %5813 = vmatprep.subr.bf16.mxu0 %v6803_v4  ;;  %v6810_v11 = vld [vmem:[#allocation7 + $0x490] sm:$0xff]   ;;  %v6811_v12 = vld [vmem:[#allocation7 + $0x458] sm:$0xff]   ;;  %v6815_v16 = vld [vmem:[#allocation7 + $0x460] sm:$0xff]   ;;  %s5387_s6 = sshll.u32 %s352_s26, 2  ;;  %s9355_s16 = sld [smem:[#allocation19_spill]] }
  0xab   : > { %5835 = vmatprep.subr.bf16.mxu1 %v6804_v5  ;;  %v6812_v13 = vld [vmem:[#allocation7 + $0x4d8] sm:$0xff]   ;;  %v6816_v17 = vld [vmem:[#allocation7 + $0x4e0] sm:$0xff]   ;;  %v6819_v20 = vld [vmem:[#allocation7 + $0x468] sm:$0xff]   ;;  %s356_s29 = sadd.s32 %s5387_s6, %s354_s28  ;;  %s5214_s5 = sadd.s32 %s7473_s21, %s5807_s10 }
  0xac   : > { %v6813_v14 = vld [vmem:[#allocation7 + $0x418] sm:$0xff]   ;;  %v6817_v18 = vld [vmem:[#allocation7 + $0x420] sm:$0xff]   ;;  %v6820_v21 = vld [vmem:[#allocation7 + $0x4e8] sm:$0xff]   ;;  %s5388_s11 = sshll.u32 %s356_s29, 3  ;;  %s5808_s7 = sshll.u32 %s5214_s5, 6 }
  0xad   : > { %5814 = vmatpush3.bf16.msra.mxu0 %v6805_v6  ;;  %v6814_v15 = vld [vmem:[#allocation7 + $0x498] sm:$0xff]   ;;  %v6818_v19 = vld [vmem:[#allocation7 + $0x4a0] sm:$0xff]   ;;  %v6821_v22 = vld [vmem:[#allocation7 + $0x428] sm:$0xff]   ;;  %s358_s14 = scalar_lea.vmem %s8899_s4, %s5388_s11  ;;  %s350_s9 = scalar_lea.vmem [#allocation10], %s5386_s2 }
  0xae   : > { %5836 = vmatpush3.bf16.msra.mxu1 %v6806_v7  ;;  %5815 = vmatprep.subr.bf16.mxu0 %v6807_v8  ;;  %v6822_v23 = vld [vmem:[#allocation7 + $0x4a8] sm:$0xff]   ;;  %v6823_v24 = vld [vmem:[#allocation7 + $0x470] sm:$0xff]   ;;  %v6827_v28 = vld [vmem:[#allocation7 + $0x478] sm:$0xff]   ;;  %s5203_s22 = scalar_lea.sflag [#allocation4], %s7757_s18  ;;  %s7498_s28 = smov [#allocation10]  }
  0xaf   : > { %5837 = vmatprep.subr.bf16.mxu1 %v6808_v9  ;;  %v6824_v25 = vld [vmem:[#allocation7 + $0x4f0] sm:$0xff]   ;;  %v6828_v29 = vld [vmem:[#allocation7 + $0x4f8] sm:$0xff]   ;;  %v363_v32 = vld [vmem:[%s7761_s8] sm:$0xff]  ;;  %s7383_s6 = sshll.u32 %s7498_s28, 4  ;;  %s7384_s6 = int_to_ptr.vmem [resolvable:$false] %s7383_s6 }
  0xb0   : > { %v6825_v26 = vld [vmem:[#allocation7 + $0x430] sm:$0xff]   ;;  %v6829_v30 = vld [vmem:[#allocation7 + $0x438] sm:$0xff]   ;;  %v364_v33 = vld [vmem:[%s7761_s8 + $0x8] sm:$0xff]  ;;  %v7784_v34 = vcombine.high %v363_v32, %v363_v32  ;;  %v7788_v36 = vcombine.low %v363_v32, %v363_v32  ;;  %p9357_p1 = scmp.ne.s32.totalorder %s9355_s16, 0  ;;  %s7385_s29 = scalar_lea.vmem %s7384_s6, 128 }
  0xb1   : > { %5816 = vmatpush3.bf16.msra.mxu0 %v6809_v10  ;;  %v6826_v27 = vld [vmem:[#allocation7 + $0x4b0] sm:$0xff]   ;;  %v6830_v31 = vld [vmem:[#allocation7 + $0x4b8] sm:$0xff]   ;;  %v7786_v35 = vcombine.high %v364_v33, %v364_v33  ;;  %v7790_v37 = vcombine.low %v364_v33, %v364_v33  ;;  %v6835_v38 = vld [vmem:[#allocation7 + $0x540] sm:$0xff]  }
  0xb2   : > { %5838 = vmatpush3.bf16.msra.mxu1 %v6810_v11  ;;  %5817 = vmatprep.subr.bf16.mxu0 %v6811_v12  ;;  %9073 = vst [vmem:[#allocation20_spill] sm:$0xff] %v7784_v34  ;;  %9075 = vst [vmem:[#allocation22_spill] sm:$0xff] %v7788_v36  ;;  %v6836_v39 = vld [vmem:[#allocation7 + $0x5c0] sm:$0xff]   ;;  %v6839_v42 = vld [vmem:[#allocation7 + $0x548] sm:$0xff]  }
  0xb3   : > { %5839 = vmatprep.subr.bf16.mxu1 %v6812_v13  ;;  %9074 = vst [vmem:[#allocation21_spill] sm:$0xff] %v7786_v35  ;;  %9076 = vst [vmem:[#allocation23_spill] sm:$0xff] %v7790_v37  ;;  %1484 = vmatprep.mubr.bf16.mxu0 %v7784_v34  ;;  %v6837_v40 = vld [vmem:[#allocation7 + $0x500] sm:$0xff]   ;;  %v6840_v43 = vld [vmem:[#allocation7 + $0x5c8] sm:$0xff]  }
  0xb4   : > { %1524 = vmatprep.mubr.bf16.mxu1 %v7786_v35  ;;  %v6838_v41 = vld [vmem:[#allocation7 + $0x580] sm:$0xff]   ;;  %v6841_v44 = vld [vmem:[#allocation7 + $0x508] sm:$0xff]   ;;  %v6843_v46 = vld [vmem:[#allocation7 + $0x550] sm:$0xff]  }
  0xb5   : > { %5818 = vmatpush3.bf16.msra.mxu0 %v6813_v14  ;;  %v6842_v45 = vld [vmem:[#allocation7 + $0x588] sm:$0xff]   ;;  %v6844_v47 = vld [vmem:[#allocation7 + $0x5d0] sm:$0xff]   ;;  %v6847_v50 = vld [vmem:[#allocation7 + $0x558] sm:$0xff]  }
  0xb6   : > { %5840 = vmatpush3.bf16.msra.mxu1 %v6814_v15  ;;  %5819 = vmatprep.subr.bf16.mxu0 %v6815_v16  ;;  %v6845_v48 = vld [vmem:[#allocation7 + $0x510] sm:$0xff]   ;;  %v6848_v51 = vld [vmem:[#allocation7 + $0x5d8] sm:$0xff]   ;;  %v6851_v54 = vld [vmem:[#allocation7 + $0x560] sm:$0xff]  }
  0xb7   : > { %5841 = vmatprep.subr.bf16.mxu1 %v6816_v17  ;;  %v6846_v49 = vld [vmem:[#allocation7 + $0x590] sm:$0xff]   ;;  %v6849_v52 = vld [vmem:[#allocation7 + $0x518] sm:$0xff]   ;;  %v6852_v55 = vld [vmem:[#allocation7 + $0x5e0] sm:$0xff]  }
  0xb8   : > { %v6850_v53 = vld [vmem:[#allocation7 + $0x598] sm:$0xff]   ;;  %v6853_v56 = vld [vmem:[#allocation7 + $0x520] sm:$0xff]   ;;  %v6855_v58 = vld [vmem:[#allocation7 + $0x568] sm:$0xff]  }
  0xb9   : > { %5820 = vmatpush3.bf16.msra.mxu0 %v6817_v18  ;;  %v6854_v57 = vld [vmem:[#allocation7 + $0x5a0] sm:$0xff]   ;;  %v6856_v59 = vld [vmem:[#allocation7 + $0x5e8] sm:$0xff]   ;;  %v6859_v62 = vld [vmem:[#allocation7 + $0x570] sm:$0xff]  }
  0xba   : > { %5842 = vmatpush3.bf16.msra.mxu1 %v6818_v19  ;;  %5821 = vmatprep.subr.bf16.mxu0 %v6819_v20  ;;  %v6857_v60 = vld [vmem:[#allocation7 + $0x528] sm:$0xff]   ;;  %v6860_v63 = vld [vmem:[#allocation7 + $0x5f0] sm:$0xff]   ;;  %v6863_v2 = vld [vmem:[#allocation7 + $0x578] sm:$0xff]  }
  0xbb   : > { %5843 = vmatprep.subr.bf16.mxu1 %v6820_v21  ;;  %v6858_v61 = vld [vmem:[#allocation7 + $0x5a8] sm:$0xff]   ;;  %v6861_v0 = vld [vmem:[#allocation7 + $0x530] sm:$0xff]   ;;  %v6864_v3 = vld [vmem:[#allocation7 + $0x5f8] sm:$0xff]  }
  0xbc   : > { %v6862_v1 = vld [vmem:[#allocation7 + $0x5b0] sm:$0xff]   ;;  %v6865_v4 = vld [vmem:[#allocation7 + $0x538] sm:$0xff]   ;;  %v6871_v12 = vld [vmem:[#allocation7 + $0x640] sm:$0xff]  }
  0xbd   : > { %5822 = vmatpush3.bf16.msra.mxu0 %v6821_v22  ;;  %v6866_v5 = vld [vmem:[#allocation7 + $0x5b8] sm:$0xff]   ;;  %v365_v6 = vld [vmem:[%s7761_s8 + $0x10] sm:$0xff]  ;;  %v6872_v13 = vld [vmem:[#allocation7 + $0x6c0] sm:$0xff]  }
  0xbe   : > { %5844 = vmatpush3.bf16.msra.mxu1 %v6822_v23  ;;  %5823 = vmatprep.subr.bf16.mxu0 %v6823_v24  ;;  %v7797_v7 = vcombine.low %v365_v6, %v365_v6  ;;  %v7799_v8 = vcombine.high %v365_v6, %v365_v6  ;;  %v366_v9 = vld [vmem:[%s7761_s8 + $0x18] sm:$0xff]  ;;  %v6873_v14 = vld [vmem:[#allocation7 + $0x600] sm:$0xff]   ;;  %v6875_v16 = vld [vmem:[#allocation7 + $0x648] sm:$0xff]  }
  0xbf   : > { %5845 = vmatprep.subr.bf16.mxu1 %v6824_v25  ;;  %v7802_v10 = vcombine.low %v366_v9, %v366_v9  ;;  %v7804_v11 = vcombine.high %v366_v9, %v366_v9  ;;  %v6874_v15 = vld [vmem:[#allocation7 + $0x680] sm:$0xff]   ;;  %v6876_v17 = vld [vmem:[#allocation7 + $0x6c8] sm:$0xff]   ;;  %v6879_v20 = vld [vmem:[#allocation7 + $0x650] sm:$0xff]  }
  0xc0   : > { %9077 = vst [vmem:[#allocation24_spill] sm:$0xff] %v7797_v7  ;;  %9078 = vst [vmem:[#allocation25_spill] sm:$0xff] %v7799_v8  ;;  %v6877_v18 = vld [vmem:[#allocation7 + $0x608] sm:$0xff]   ;;  %v6880_v21 = vld [vmem:[#allocation7 + $0x6d0] sm:$0xff]  }
  0xc1   : > { %5824 = vmatpush3.bf16.msra.mxu0 %v6825_v26  ;;  %9079 = vst [vmem:[#allocation26_spill] sm:$0xff] %v7802_v10  ;;  %9080 = vst [vmem:[#allocation27_spill] sm:$0xff] %v7804_v11  ;;  %v6878_v19 = vld [vmem:[#allocation7 + $0x688] sm:$0xff]   ;;  %v6881_v22 = vld [vmem:[#allocation7 + $0x610] sm:$0xff]  }
  0xc2   : > { %5846 = vmatpush3.bf16.msra.mxu1 %v6826_v27  ;;  %5825 = vmatprep.subr.bf16.mxu0 %v6827_v28  ;;  %v6882_v23 = vld [vmem:[#allocation7 + $0x690] sm:$0xff]   ;;  %v6883_v24 = vld [vmem:[#allocation7 + $0x658] sm:$0xff]   ;;  %v6887_v28 = vld [vmem:[#allocation7 + $0x660] sm:$0xff]  }
  0xc3   : > { %5847 = vmatprep.subr.bf16.mxu1 %v6828_v29  ;;  %v6884_v25 = vld [vmem:[#allocation7 + $0x6d8] sm:$0xff]   ;;  %v6888_v29 = vld [vmem:[#allocation7 + $0x6e0] sm:$0xff]   ;;  %v6891_v32 = vld [vmem:[#allocation7 + $0x668] sm:$0xff]  }
  0xc4   : > { %v6885_v26 = vld [vmem:[#allocation7 + $0x618] sm:$0xff]   ;;  %v6892_v33 = vld [vmem:[#allocation7 + $0x6e8] sm:$0xff]   ;;  %v6923_v6 = vld [vmem:[#allocation7 + $0x760] sm:$0xff]  }
  0xc5   : > { %5826 = vmatpush3.bf16.msra.mxu0 %v6829_v30  ;;  %v6886_v27 = vld [vmem:[#allocation7 + $0x698] sm:$0xff]   ;;  %v6889_v30 = vld [vmem:[#allocation7 + $0x620] sm:$0xff]  }
  0xc6   : > { %5848 = vmatpush3.bf16.msra.mxu1 %v6830_v31  ;;  %5855 = vmatprep.subr.bf16.mxu0 %v6835_v38  ;;  %v6890_v31 = vld [vmem:[#allocation7 + $0x6a0] sm:$0xff]   ;;  %v6893_v38 = vld [vmem:[#allocation7 + $0x628] sm:$0xff]  }
  0xc7   : > { %5877 = vmatprep.subr.bf16.mxu1 %v6836_v39  ;;  %v6894_v39 = vld [vmem:[#allocation7 + $0x6a8] sm:$0xff]   ;;  %v6924_v9 = vld [vmem:[#allocation7 + $0x7e0] sm:$0xff]  }
  0xc8   : > { %1485 = vmatmul.mubr.bf16.vlgmr.msra.gmra.mrb[0].mxu0 %v7788_v36 }
  0xc9   : > { %1525 = vmatmul.mubr.bf16.vlgmr.msra.gmra.mrb[0].mxu1 %v7790_v37  ;;  %5856 = vmatpush3.bf16.msra.mxu0 %v6837_v40  ;;  %v6895_v40 = vld [vmem:[#allocation7 + $0x670] sm:$0xff]  }
  0xca   : > { %5878 = vmatpush3.bf16.msra.mxu1 %v6838_v41  ;;  %5857 = vmatprep.subr.bf16.mxu0 %v6839_v42  ;;  %v6896_v41 = vld [vmem:[#allocation7 + $0x6f0] sm:$0xff]  }
  0xcb   : > { %5879 = vmatprep.subr.bf16.mxu1 %v6840_v43  ;;  %1564 = vmatprep.mubr.bf16.mxu0 %v7799_v8  ;;  %v6897_v42 = vld [vmem:[#allocation7 + $0x630] sm:$0xff]  }
  0xcc   : > { %1604 = vmatprep.mubr.bf16.mxu1 %v7804_v11  ;;  %v6898_v43 = vld [vmem:[#allocation7 + $0x6b0] sm:$0xff]  }
  0xcd   : > { %5858 = vmatpush3.bf16.msra.mxu0 %v6841_v44  ;;  %v6899_v44 = vld [vmem:[#allocation7 + $0x678] sm:$0xff]  }
  0xce   : > { %5880 = vmatpush3.bf16.msra.mxu1 %v6842_v45  ;;  %5859 = vmatprep.subr.bf16.mxu0 %v6843_v46  ;;  %v6900_v45 = vld [vmem:[#allocation7 + $0x6f8] sm:$0xff]  }
  0xcf   : > { %5881 = vmatprep.subr.bf16.mxu1 %v6844_v47  ;;  %v6901_v46 = vld [vmem:[#allocation7 + $0x638] sm:$0xff]  }
  0xd0   : > { %v6902_v47 = vld [vmem:[#allocation7 + $0x6b8] sm:$0xff]  }
  0xd1   : > { %5860 = vmatpush3.bf16.msra.mxu0 %v6845_v48  ;;  %v367_v48 = vld [vmem:[%s7761_s8 + $0x20] sm:$0xff] }
  0xd2   : > { %5882 = vmatpush3.bf16.msra.mxu1 %v6846_v49  ;;  %5861 = vmatprep.subr.bf16.mxu0 %v6847_v50  ;;  %v368_v49 = vld [vmem:[%s7761_s8 + $0x28] sm:$0xff]  ;;  %v7812_v50 = vcombine.low %v367_v48, %v367_v48 }
  0xd3   : > { %5883 = vmatprep.subr.bf16.mxu1 %v6848_v51  ;;  %v7814_v51 = vcombine.high %v367_v48, %v367_v48  ;;  %v6955_v48 = vld [vmem:[#allocation7 + $0x58] sm:$0xff]  }
  0xd4   : > { %9081 = vst [vmem:[#allocation28_spill] sm:$0xff] %v7812_v50 }
  0xd5   : > { %5862 = vmatpush3.bf16.msra.mxu0 %v6849_v52  ;;  %9082 = vst [vmem:[#allocation29_spill] sm:$0xff] %v7814_v51  ;;  %v7816_v52 = vcombine.low %v368_v49, %v368_v49 }
  0xd6   : > { %5884 = vmatpush3.bf16.msra.mxu1 %v6850_v53  ;;  %5863 = vmatprep.subr.bf16.mxu0 %v6851_v54  ;;  %v7818_v53 = vcombine.high %v368_v49, %v368_v49  ;;  %v6907_v54 = vld [vmem:[#allocation7 + $0x740] sm:$0xff]   ;;  %v6956_v49 = vld [vmem:[#allocation7 + $0xd8] sm:$0xff]  }
  0xd7   : > { %5885 = vmatprep.subr.bf16.mxu1 %v6852_v55  ;;  %9083 = vst [vmem:[#allocation30_spill] sm:$0xff] %v7816_v52  ;;  %v6908_v55 = vld [vmem:[#allocation7 + $0x7c0] sm:$0xff]  }
  0xd8   : > { %9084 = vst [vmem:[#allocation31_spill] sm:$0xff] %v7818_v53 }
  0xd9   : > { %5864 = vmatpush3.bf16.msra.mxu0 %v6853_v56  ;;  %v6909_v56 = vld [vmem:[#allocation7 + $0x700] sm:$0xff]  }
  0xda   : > { %5886 = vmatpush3.bf16.msra.mxu1 %v6854_v57  ;;  %5865 = vmatprep.subr.bf16.mxu0 %v6855_v58  ;;  %v6910_v57 = vld [vmem:[#allocation7 + $0x780] sm:$0xff]   ;;  %v6911_v58 = vld [vmem:[#allocation7 + $0x748] sm:$0xff]  }
  0xdb   : > { %5887 = vmatprep.subr.bf16.mxu1 %v6856_v59  ;;  %v6912_v59 = vld [vmem:[#allocation7 + $0x7c8] sm:$0xff]  }
  0xdd   : > { %5866 = vmatpush3.bf16.msra.mxu0 %v6857_v60  ;;  %v6913_v60 = vld [vmem:[#allocation7 + $0x708] sm:$0xff]  }
  0xde   : > { %5888 = vmatpush3.bf16.msra.mxu1 %v6858_v61  ;;  %5867 = vmatprep.subr.bf16.mxu0 %v6859_v62  ;;  %v6914_v61 = vld [vmem:[#allocation7 + $0x788] sm:$0xff]   ;;  %v6915_v62 = vld [vmem:[#allocation7 + $0x750] sm:$0xff]  }
  0xdf   : > { %5889 = vmatprep.subr.bf16.mxu1 %v6860_v63  ;;  %v6916_v63 = vld [vmem:[#allocation7 + $0x7d0] sm:$0xff]  }
  0xe1   : > { %5868 = vmatpush3.bf16.msra.mxu0 %v6861_v0  ;;  %v6917_v0 = vld [vmem:[#allocation7 + $0x710] sm:$0xff]  }
  0xe2   : > { %5890 = vmatpush3.bf16.msra.mxu1 %v6862_v1  ;;  %5869 = vmatprep.subr.bf16.mxu0 %v6863_v2  ;;  %v6918_v1 = vld [vmem:[#allocation7 + $0x790] sm:$0xff]   ;;  %v6919_v2 = vld [vmem:[#allocation7 + $0x758] sm:$0xff]  }
  0xe3   : > { %5891 = vmatprep.subr.bf16.mxu1 %v6864_v3  ;;  %v6920_v3 = vld [vmem:[#allocation7 + $0x7d8] sm:$0xff]  }
  0xe5   : > { %5870 = vmatpush3.bf16.msra.mxu0 %v6865_v4  ;;  %v6921_v4 = vld [vmem:[#allocation7 + $0x718] sm:$0xff]  }
  0xe6   : > { %5892 = vmatpush3.bf16.msra.mxu1 %v6866_v5  ;;  %5899 = vmatprep.subr.bf16.mxu0 %v6871_v12  ;;  %v6922_v5 = vld [vmem:[#allocation7 + $0x798] sm:$0xff]   ;;  %v6925_v12 = vld [vmem:[#allocation7 + $0x720] sm:$0xff]  }
  0xe7   : > { %5921 = vmatprep.subr.bf16.mxu1 %v6872_v13  ;;  %v6926_v13 = vld [vmem:[#allocation7 + $0x7a0] sm:$0xff]  }
  0xe8   : > { %1565 = vmatmul.mubr.bf16.vlgmr.msra.gmra.mrb[4].mxu0 %v7797_v7 }
  0xe9   : > { %1605 = vmatmul.mubr.bf16.vlgmr.msra.gmra.mrb[4].mxu1 %v7802_v10  ;;  %5900 = vmatpush3.bf16.msra.mxu0 %v6873_v14  ;;  %v6927_v14 = vld [vmem:[#allocation7 + $0x768] sm:$0xff]  }
  0xea   : > { %5922 = vmatpush3.bf16.msra.mxu1 %v6874_v15  ;;  %5901 = vmatprep.subr.bf16.mxu0 %v6875_v16  ;;  %v6928_v15 = vld [vmem:[#allocation7 + $0x7e8] sm:$0xff]  }
  0xeb   : > { %5923 = vmatprep.subr.bf16.mxu1 %v6876_v17  ;;  %1644 = vmatprep.mubr.bf16.mxu0 %v7814_v51  ;;  %v6929_v16 = vld [vmem:[#allocation7 + $0x728] sm:$0xff]  }
  0xec   : > { %1684 = vmatprep.mubr.bf16.mxu1 %v7818_v53  ;;  %v6930_v17 = vld [vmem:[#allocation7 + $0x7a8] sm:$0xff]  }
  0xed   : > { %5902 = vmatpush3.bf16.msra.mxu0 %v6877_v18  ;;  %v6931_v18 = vld [vmem:[#allocation7 + $0x770] sm:$0xff]  }
  0xee   : > { %5924 = vmatpush3.bf16.msra.mxu1 %v6878_v19  ;;  %5903 = vmatprep.subr.bf16.mxu0 %v6879_v20  ;;  %v6932_v19 = vld [vmem:[#allocation7 + $0x7f0] sm:$0xff]  }
  0xef   : > { %5925 = vmatprep.subr.bf16.mxu1 %v6880_v21  ;;  %v6933_v20 = vld [vmem:[#allocation7 + $0x730] sm:$0xff]  }
  0xf0   : > { %v6934_v21 = vld [vmem:[#allocation7 + $0x7b0] sm:$0xff]  }
  0xf1   : > { %5904 = vmatpush3.bf16.msra.mxu0 %v6881_v22  ;;  %v6935_v22 = vld [vmem:[#allocation7 + $0x778] sm:$0xff]  }
  0xf2   : > { %5926 = vmatpush3.bf16.msra.mxu1 %v6882_v23  ;;  %5905 = vmatprep.subr.bf16.mxu0 %v6883_v24  ;;  %v6936_v23 = vld [vmem:[#allocation7 + $0x7f8] sm:$0xff]  }
  0xf3   : > { %5927 = vmatprep.subr.bf16.mxu1 %v6884_v25  ;;  %v6937_v24 = vld [vmem:[#allocation7 + $0x738] sm:$0xff]  }
  0xf4   : > { %v6938_v25 = vld [vmem:[#allocation7 + $0x7b8] sm:$0xff]  }
  0xf5   : > { %5906 = vmatpush3.bf16.msra.mxu0 %v6885_v26  ;;  %v369_v26 = vld [vmem:[%s7761_s8 + $0x30] sm:$0xff] }
  0xf6   : > { %5928 = vmatpush3.bf16.msra.mxu1 %v6886_v27  ;;  %5907 = vmatprep.subr.bf16.mxu0 %v6887_v28  ;;  %v370_v27 = vld [vmem:[%s7761_s8 + $0x38] sm:$0xff]  ;;  %v7826_v28 = vcombine.low %v369_v26, %v369_v26  ;;  %s5218_s8 = sshll.u32 %s350_s9, 4  ;;  %s8843_s8 = int_to_ptr.vmem [resolvable:$true] %s5218_s8 }
  0xf7   : > { %5929 = vmatprep.subr.bf16.mxu1 %v6888_v29  ;;  %v7828_v29 = vcombine.high %v369_v26, %v369_v26  ;;  %v6989_v26 = vld [vmem:[#allocation7 + $0x118] sm:$0xff]   ;;  %s7379_s21 = scalar_lea.vmem %s8843_s8, 64  ;;  %p7386_p4 = scmp.lt.s32.totalorder %s8843_s8, %s7384_s6 }
  0xf8   : > { %9085 = vst [vmem:[#allocation32_spill] sm:$0xff] %v7826_v28  ;;  %p7380_p11 = scmp.ne.s32.totalorder %s8843_s8, %s7379_s21  ;;  %p7387_p8 = scmp.lt.s32.totalorder %s7385_s29, %s7379_s21 }
  0xf9   : > { %5908 = vmatpush3.bf16.msra.mxu0 %v6889_v30  ;;  %9086 = vst [vmem:[#allocation33_spill] sm:$0xff] %v7828_v29  ;;  %v7830_v30 = vcombine.low %v370_v27, %v370_v27 }
  0xfa   : > { %5930 = vmatpush3.bf16.msra.mxu1 %v6890_v31  ;;  %5909 = vmatprep.subr.bf16.mxu0 %v6891_v32  ;;  %v6943_v31 = vld [vmem:[#allocation7 + $0x40] sm:$0xff]   ;;  %v7832_v32 = vcombine.high %v370_v27, %v370_v27  ;;  %v7847_v27 = vld [vmem:[#allocation7 + $0x198] sm:$0xff]   ;;  %p7381_p9 = pnand %p7380_p11, %p9357_p1  ;;  %p7388_p10 = por %p7387_p8, %p7386_p4 }
  0xfb   : > { %5931 = vmatprep.subr.bf16.mxu1 %v6892_v33  ;;  %9087 = vst [vmem:[#allocation34_spill] sm:$0xff] %v7830_v30  ;;  %v6944_v33 = vld [vmem:[#allocation7 + $0xc0] sm:$0xff]  }
  0xfc   : > { %9088 = vst [vmem:[#allocation35_spill] sm:$0xff] %v7832_v32  ;;  %p7382_p2 = pneg %p7381_p9 }
  0xfd   : > { %5910 = vmatpush3.bf16.msra.mxu0 %v6893_v38  ;;  %v6945_v38 = vld [vmem:[#allocation7] sm:$0xff]  }
  0xfe   : > { %5932 = vmatpush3.bf16.msra.mxu1 %v6894_v39  ;;  %5911 = vmatprep.subr.bf16.mxu0 %v6895_v40  ;;  %v6946_v39 = vld [vmem:[#allocation7 + $0x80] sm:$0xff]   ;;  %v6947_v40 = vld [vmem:[#allocation7 + $0x48] sm:$0xff]   ;;  %p7389_p6 = pnand %p7388_p10, %p7382_p2 }
  0xff   : > { %5933 = vmatprep.subr.bf16.mxu1 %v6896_v41  ;;  %v6948_v41 = vld [vmem:[#allocation7 + $0xc8] sm:$0xff]  }
 0x101   : > { %5912 = vmatpush3.bf16.msra.mxu0 %v6897_v42  ;;  %v6949_v42 = vld [vmem:[#allocation7 + $0x8] sm:$0xff]  }
 0x102   : > { %5934 = vmatpush3.bf16.msra.mxu1 %v6898_v43  ;;  %5913 = vmatprep.subr.bf16.mxu0 %v6899_v44  ;;  %v6950_v43 = vld [vmem:[#allocation7 + $0x88] sm:$0xff]   ;;  %v6951_v44 = vld [vmem:[#allocation7 + $0x50] sm:$0xff]  }
 0x103   : > { %5935 = vmatprep.subr.bf16.mxu1 %v6900_v45  ;;  %v6952_v45 = vld [vmem:[#allocation7 + $0xd0] sm:$0xff]  }
 0x105   : > { %5914 = vmatpush3.bf16.msra.mxu0 %v6901_v46  ;;  %v6953_v46 = vld [vmem:[#allocation7 + $0x10] sm:$0xff]  }
 0x106   : > { %5936 = vmatpush3.bf16.msra.mxu1 %v6902_v47  ;;  %5943 = vmatprep.subr.bf16.mxu0 %v6907_v54  ;;  %v6954_v47 = vld [vmem:[#allocation7 + $0x90] sm:$0xff]   ;;  %v6957_v54 = vld [vmem:[#allocation7 + $0x18] sm:$0xff]  }
 0x107   : > { %5965 = vmatprep.subr.bf16.mxu1 %v6908_v55  ;;  %v6958_v55 = vld [vmem:[#allocation7 + $0x98] sm:$0xff]  }
 0x108   : > { %1645 = vmatmul.mubr.bf16.vlgmr.msra.gmra.mrb[8].mxu0 %v7812_v50 }
 0x109   : > { %1685 = vmatmul.mubr.bf16.vlgmr.msra.gmra.mrb[8].mxu1 %v7816_v52  ;;  %5944 = vmatpush3.bf16.msra.mxu0 %v6909_v56  ;;  %v6959_v56 = vld [vmem:[#allocation7 + $0x60] sm:$0xff]  }
 0x10a   : > { %5966 = vmatpush3.bf16.msra.mxu1 %v6910_v57  ;;  %5945 = vmatprep.subr.bf16.mxu0 %v6911_v58  ;;  %v6960_v57 = vld [vmem:[#allocation7 + $0xe0] sm:$0xff]  }
 0x10b   : > { %5967 = vmatprep.subr.bf16.mxu1 %v6912_v59  ;;  %1724 = vmatprep.mubr.bf16.mxu0 %v7828_v29  ;;  %v6961_v58 = vld [vmem:[#allocation7 + $0x20] sm:$0xff]  }
 0x10c   : > { %1764 = vmatprep.mubr.bf16.mxu1 %v7832_v32  ;;  %v6962_v59 = vld [vmem:[#allocation7 + $0xa0] sm:$0xff]  }
 0x10d   : > { %5946 = vmatpush3.bf16.msra.mxu0 %v6913_v60  ;;  %v6963_v60 = vld [vmem:[#allocation7 + $0x68] sm:$0xff]  }
 0x10e   : > { %5968 = vmatpush3.bf16.msra.mxu1 %v6914_v61  ;;  %5947 = vmatprep.subr.bf16.mxu0 %v6915_v62  ;;  %v6964_v61 = vld [vmem:[#allocation7 + $0xe8] sm:$0xff]  }
 0x10f   : > { %5969 = vmatprep.subr.bf16.mxu1 %v6916_v63  ;;  %v6965_v62 = vld [vmem:[#allocation7 + $0x28] sm:$0xff]  }
 0x110   : > { %v6966_v63 = vld [vmem:[#allocation7 + $0xa8] sm:$0xff]  }
 0x111   : > { %5948 = vmatpush3.bf16.msra.mxu0 %v6917_v0  ;;  %v6967_v0 = vld [vmem:[#allocation7 + $0x70] sm:$0xff]  }
 0x112   : > { %5970 = vmatpush3.bf16.msra.mxu1 %v6918_v1  ;;  %5949 = vmatprep.subr.bf16.mxu0 %v6919_v2  ;;  %v6968_v1 = vld [vmem:[#allocation7 + $0xf0] sm:$0xff]  }
 0x113   : > { %5971 = vmatprep.subr.bf16.mxu1 %v6920_v3  ;;  %v6969_v2 = vld [vmem:[#allocation7 + $0x30] sm:$0xff]  }
 0x114   : > { %v6970_v3 = vld [vmem:[#allocation7 + $0xb0] sm:$0xff]  }
 0x115   : > { %5950 = vmatpush3.bf16.msra.mxu0 %v6921_v4  ;;  %v6971_v4 = vld [vmem:[#allocation7 + $0x78] sm:$0xff]  }
 0x116   : > { %5972 = vmatpush3.bf16.msra.mxu1 %v6922_v5  ;;  %5951 = vmatprep.subr.bf16.mxu0 %v6923_v6  ;;  %v6972_v5 = vld [vmem:[#allocation7 + $0xf8] sm:$0xff]  }
 0x117   : > { %5973 = vmatprep.subr.bf16.mxu1 %v6924_v9  ;;  %v6973_v6 = vld [vmem:[#allocation7 + $0x38] sm:$0xff]  }
 0x118   : > { %v6974_v9 = vld [vmem:[#allocation7 + $0xb8] sm:$0xff]  }
 0x119   : > { %5952 = vmatpush3.bf16.msra.mxu0 %v6925_v12  ;;  %v6975_v12 = vld [vmem:[#allocation7 + $0x140] sm:$0xff]  }
 0x11a   : > { %5974 = vmatpush3.bf16.msra.mxu1 %v6926_v13  ;;  %5953 = vmatprep.subr.bf16.mxu0 %v6927_v14  ;;  %v6976_v13 = vld [vmem:[#allocation7 + $0x1c0] sm:$0xff]  }
 0x11b   : > { %5975 = vmatprep.subr.bf16.mxu1 %v6928_v15  ;;  %v6977_v14 = vld [vmem:[#allocation7 + $0x100] sm:$0xff]  }
 0x11c   : > { %v6978_v15 = vld [vmem:[#allocation7 + $0x180] sm:$0xff]  }
 0x11d   : > { %5954 = vmatpush3.bf16.msra.mxu0 %v6929_v16  ;;  %v6979_v16 = vld [vmem:[#allocation7 + $0x148] sm:$0xff]  }
 0x11e   : > { %5976 = vmatpush3.bf16.msra.mxu1 %v6930_v17  ;;  %5955 = vmatprep.subr.bf16.mxu0 %v6931_v18  ;;  %v6980_v17 = vld [vmem:[#allocation7 + $0x1c8] sm:$0xff]  }
 0x11f   : > { %5977 = vmatprep.subr.bf16.mxu1 %v6932_v19  ;;  %v6981_v18 = vld [vmem:[#allocation7 + $0x108] sm:$0xff]  }
 0x120   : > { %v6982_v19 = vld [vmem:[#allocation7 + $0x188] sm:$0xff]  }
 0x121   : > { %5956 = vmatpush3.bf16.msra.mxu0 %v6933_v20  ;;  %v6983_v20 = vld [vmem:[#allocation7 + $0x150] sm:$0xff]  }
 0x122   : > { %5978 = vmatpush3.bf16.msra.mxu1 %v6934_v21  ;;  %5957 = vmatprep.subr.bf16.mxu0 %v6935_v22  ;;  %v6984_v21 = vld [vmem:[#allocation7 + $0x1d0] sm:$0xff]  }
 0x123   : > { %5979 = vmatprep.subr.bf16.mxu1 %v6936_v23  ;;  %v6985_v22 = vld [vmem:[#allocation7 + $0x110] sm:$0xff]  }
 0x124   : > { %v6986_v23 = vld [vmem:[#allocation7 + $0x190] sm:$0xff]  }
 0x125   : > { %5958 = vmatpush3.bf16.msra.mxu0 %v6937_v24  ;;  %v6987_v24 = vld [vmem:[#allocation7 + $0x158] sm:$0xff]  }
 0x126   : > { %5980 = vmatpush3.bf16.msra.mxu1 %v6938_v25  ;;  %5987 = vmatprep.subr.bf16.mxu0 %v6943_v31  ;;  %v7844_v25 = vld [vmem:[#allocation7 + $0x1d8] sm:$0xff]   ;;  %v7849_v31 = vld [vmem:[#allocation7 + $0x160] sm:$0xff]  }
 0x127   : > { %6009 = vmatprep.subr.bf16.mxu1 %v6944_v33  ;;  %v7852_v33 = vld [vmem:[#allocation7 + $0x1e0] sm:$0xff]  }
 0x128   : > { %1725 = vmatmul.mubr.bf16.vlgmr.msra.gmra.mrb[12].mxu0 %v7826_v28 }
 0x129   : > { %1765 = vmatmul.mubr.bf16.vlgmr.msra.gmra.mrb[12].mxu1 %v7830_v30  ;;  %5988 = vmatpush3.bf16.msra.mxu0 %v6945_v38  ;;  %v7855_v38 = vld [vmem:[#allocation7 + $0x120] sm:$0xff]  }
 0x12a   : > { %6010 = vmatpush3.bf16.msra.mxu1 %v6946_v39  ;;  %5989 = vmatprep.subr.bf16.mxu0 %v6947_v40  ;;  %v7858_v39 = vld [vmem:[#allocation7 + $0x1a0] sm:$0xff]   ;;  %v7860_v40 = vld [vmem:[#allocation7 + $0x168] sm:$0xff]  }
 0x12b   : > { %2835 = vmatprep.mubr.bf16.mxu0 %v7784_v34  ;;  %6011 = vmatprep.subr.bf16.mxu1 %v6948_v41  ;;  %v7864_v41 = vld [vmem:[#allocation7 + $0x1e8] sm:$0xff]   ;;  %v8030_v34 = vld [vmem:[#allocation7 + $0x358] sm:$0xff]  }
 0x12c   : > { %2875 = vmatprep.mubr.bf16.mxu1 %v7786_v35  ;;  %v8025_v35 = vld [vmem:[#allocation7 + $0x310] sm:$0xff]   ;;  %9105 = vst [vmem:[#allocation52_spill] sm:$0xff] %v8030_v34 }
 0x12d   : > { %5990 = vmatpush3.bf16.msra.mxu0 %v6949_v42  ;;  %v6997_v42 = vld [vmem:[#allocation7 + $0x128] sm:$0xff]   ;;  %9103 = vst [vmem:[#allocation50_spill] sm:$0xff] %v8025_v35 }
 0x12e   : > { %6012 = vmatpush3.bf16.msra.mxu1 %v6950_v43  ;;  %5991 = vmatprep.subr.bf16.mxu0 %v6951_v44  ;;  %v6998_v43 = vld [vmem:[#allocation7 + $0x1a8] sm:$0xff]   ;;  %v7868_v44 = vld [vmem:[#allocation7 + $0x170] sm:$0xff]  }
 0x12f   : > { %6013 = vmatprep.subr.bf16.mxu1 %v6952_v45  ;;  %v7870_v45 = vld [vmem:[#allocation7 + $0x1f0] sm:$0xff]  }
 0x131   : > { %5992 = vmatpush3.bf16.msra.mxu0 %v6953_v46  ;;  %v7873_v46 = vld [vmem:[#allocation7 + $0x130] sm:$0xff]  }
 0x132   : > { %6014 = vmatpush3.bf16.msra.mxu1 %v6954_v47  ;;  %5993 = vmatprep.subr.bf16.mxu0 %v6955_v48  ;;  %v7876_v47 = vld [vmem:[#allocation7 + $0x1b0] sm:$0xff]   ;;  %v7878_v48 = vld [vmem:[#allocation7 + $0x178] sm:$0xff]  }
 0x133   : > { %6015 = vmatprep.subr.bf16.mxu1 %v6956_v49  ;;  %v7882_v49 = vld [vmem:[#allocation7 + $0x1f8] sm:$0xff]  }
 0x135   : > { %5994 = vmatpush3.bf16.msra.mxu0 %v6957_v54  ;;  %v7885_v54 = vld [vmem:[#allocation7 + $0x138] sm:$0xff]  }
 0x136   : > { %6016 = vmatpush3.bf16.msra.mxu1 %v6958_v55  ;;  %5995 = vmatprep.subr.bf16.mxu0 %v6959_v56  ;;  %v7888_v55 = vld [vmem:[#allocation7 + $0x1b8] sm:$0xff]   ;;  %v7890_v56 = vld [vmem:[#allocation7 + $0x240] sm:$0xff]  }
 0x137   : > { %6017 = vmatprep.subr.bf16.mxu1 %v6960_v57  ;;  %v7894_v57 = vld [vmem:[#allocation7 + $0x2c0] sm:$0xff]  }
 0x139   : > { %5996 = vmatpush3.bf16.msra.mxu0 %v6961_v58  ;;  %v7897_v58 = vld [vmem:[#allocation7 + $0x200] sm:$0xff]  }
 0x13a   : > { %6018 = vmatpush3.bf16.msra.mxu1 %v6962_v59  ;;  %5997 = vmatprep.subr.bf16.mxu0 %v6963_v60  ;;  %v7900_v59 = vld [vmem:[#allocation7 + $0x280] sm:$0xff]   ;;  %v7904_v60 = vld [vmem:[#allocation7 + $0x248] sm:$0xff]  }
 0x13b   : > { %6019 = vmatprep.subr.bf16.mxu1 %v6964_v61  ;;  %v7908_v61 = vld [vmem:[#allocation7 + $0x2c8] sm:$0xff]  }
 0x13d   : > { %5998 = vmatpush3.bf16.msra.mxu0 %v6965_v62  ;;  %v7911_v62 = vld [vmem:[#allocation7 + $0x208] sm:$0xff]  }
 0x13e   : > { %6020 = vmatpush3.bf16.msra.mxu1 %v6966_v63  ;;  %5999 = vmatprep.subr.bf16.mxu0 %v6967_v0  ;;  %v7915_v63 = vld [vmem:[#allocation7 + $0x288] sm:$0xff]   ;;  %v7918_v0 = vld [vmem:[#allocation7 + $0x250] sm:$0xff]  }
 0x13f   : > { %6021 = vmatprep.subr.bf16.mxu1 %v6968_v1  ;;  %v7922_v1 = vld [vmem:[#allocation7 + $0x2d0] sm:$0xff]  }
 0x141   : > { %6000 = vmatpush3.bf16.msra.mxu0 %v6969_v2  ;;  %v7925_v2 = vld [vmem:[#allocation7 + $0x210] sm:$0xff]  }
 0x142   : > { %6022 = vmatpush3.bf16.msra.mxu1 %v6970_v3  ;;  %6001 = vmatprep.subr.bf16.mxu0 %v6971_v4  ;;  %v7928_v3 = vld [vmem:[#allocation7 + $0x290] sm:$0xff]   ;;  %v7930_v4 = vld [vmem:[#allocation7 + $0x258] sm:$0xff]  }
 0x143   : > { %6023 = vmatprep.subr.bf16.mxu1 %v6972_v5  ;;  %v7934_v5 = vld [vmem:[#allocation7 + $0x2d8] sm:$0xff]  }
 0x145   : > { %6002 = vmatpush3.bf16.msra.mxu0 %v6973_v6  ;;  %v7937_v6 = vld [vmem:[#allocation7 + $0x218] sm:$0xff]  }
 0x146   : > { %6024 = vmatpush3.bf16.msra.mxu1 %v6974_v9  ;;  %6031 = vmatprep.subr.bf16.mxu0 %v6975_v12  ;;  %v7940_v9 = vld [vmem:[#allocation7 + $0x298] sm:$0xff]   ;;  %v7942_v12 = vld [vmem:[#allocation7 + $0x260] sm:$0xff]  }
 0x147   : > { %6053 = vmatprep.subr.bf16.mxu1 %v6976_v13  ;;  %v7946_v13 = vld [vmem:[#allocation7 + $0x2e0] sm:$0xff]  }
 0x148   : > { %2836 = vmatmul.mubr.bf16.vlgmr.msra.gmra.mrb[16].mxu0 %v7788_v36  ;;  %v8015_v36 = vld [vmem:[#allocation7 + $0x388] sm:$0xff]  }
 0x149   : > { %2876 = vmatmul.mubr.bf16.vlgmr.msra.gmra.mrb[16].mxu1 %v7790_v37  ;;  %6032 = vmatpush3.bf16.msra.mxu0 %v6977_v14  ;;  %v7949_v14 = vld [vmem:[#allocation7 + $0x220] sm:$0xff]   ;;  %v8011_v37 = vld [vmem:[#allocation7 + $0x308] sm:$0xff]   ;;  %9100 = vst [vmem:[#allocation47_spill] sm:$0xff] %v8015_v36 }
 0x14a   : > { %6054 = vmatpush3.bf16.msra.mxu1 %v6978_v15  ;;  %6033 = vmatprep.subr.bf16.mxu0 %v6979_v16  ;;  %v7952_v15 = vld [vmem:[#allocation7 + $0x2a0] sm:$0xff]   ;;  %v7954_v16 = vld [vmem:[#allocation7 + $0x268] sm:$0xff]   ;;  %9099 = vst [vmem:[#allocation46_spill] sm:$0xff] %v8011_v37 }
 0x14b   : > { %2915 = vmatprep.mubr.bf16.mxu0 %v7799_v8  ;;  %6055 = vmatprep.subr.bf16.mxu1 %v6980_v17  ;;  %v7958_v17 = vld [vmem:[#allocation7 + $0x2e8] sm:$0xff]  }
 0x14c   : > { %2955 = vmatprep.mubr.bf16.mxu1 %v7804_v11  ;;  %v8004_v11 = vld [vmem:[#allocation7 + $0x348] sm:$0xff]  }
 0x14d   : > { %6034 = vmatpush3.bf16.msra.mxu0 %v6981_v18  ;;  %v7961_v18 = vld [vmem:[#allocation7 + $0x228] sm:$0xff]   ;;  %9097 = vst [vmem:[#allocation44_spill] sm:$0xff] %v8004_v11 }
 0x14e   : > { %6056 = vmatpush3.bf16.msra.mxu1 %v6982_v19  ;;  %6035 = vmatprep.subr.bf16.mxu0 %v6983_v20  ;;  %v7964_v19 = vld [vmem:[#allocation7 + $0x2a8] sm:$0xff]   ;;  %v7966_v20 = vld [vmem:[#allocation7 + $0x270] sm:$0xff]  }
 0x14f   : > { %6057 = vmatprep.subr.bf16.mxu1 %v6984_v21  ;;  %v7970_v21 = vld [vmem:[#allocation7 + $0x2f0] sm:$0xff]   ;;  %v8008_v8 = vld [vmem:[#allocation7 + $0x3c8] sm:$0xff]  }
 0x150   : > { %9098 = vst [vmem:[#allocation45_spill] sm:$0xff] %v8008_v8 }
 0x151   : > { %6036 = vmatpush3.bf16.msra.mxu0 %v6985_v22  ;;  %v7973_v22 = vld [vmem:[#allocation7 + $0x230] sm:$0xff]  }
 0x152   : > { %6058 = vmatpush3.bf16.msra.mxu1 %v6986_v23  ;;  %6037 = vmatprep.subr.bf16.mxu0 %v6987_v24  ;;  %v7976_v23 = vld [vmem:[#allocation7 + $0x2b0] sm:$0xff]   ;;  %v7978_v24 = vld [vmem:[#allocation7 + $0x278] sm:$0xff]  }
 0x153   : > { %6059 = vmatprep.subr.bf16.mxu1 %v7844_v25  ;;  %9089 = vst [vmem:[#allocation36_spill] sm:$0xff] %v7978_v24 }
 0x155   : > { %6038 = vmatpush3.bf16.msra.mxu0 %v6989_v26  ;;  %v7982_v26 = vld [vmem:[#allocation7 + $0x2f8] sm:$0xff]  }
 0x156   : > { %6060 = vmatpush3.bf16.msra.mxu1 %v7847_v27  ;;  %6039 = vmatprep.subr.bf16.mxu0 %v7849_v31  ;;  %9090 = vst [vmem:[#allocation37_spill] sm:$0xff] %v7982_v26 }
 0x157   : > { %6061 = vmatprep.subr.bf16.mxu1 %v7852_v33 }
 0x159   : > { %6040 = vmatpush3.bf16.msra.mxu0 %v7855_v38 }
 0x15a   : > { %6062 = vmatpush3.bf16.msra.mxu1 %v7858_v39  ;;  %6041 = vmatprep.subr.bf16.mxu0 %v7860_v40 }
 0x15b   : > { %6063 = vmatprep.subr.bf16.mxu1 %v7864_v41 }
 0x15d   : > { %6042 = vmatpush3.bf16.msra.mxu0 %v6997_v42  ;;  %v7985_v42 = vld [vmem:[#allocation7 + $0x238] sm:$0xff]  }
 0x15e   : > { %6064 = vmatpush3.bf16.msra.mxu1 %v6998_v43  ;;  %6043 = vmatprep.subr.bf16.mxu0 %v7868_v44  ;;  %9091 = vst [vmem:[#allocation38_spill] sm:$0xff] %v7985_v42  ;;  %v7988_v43 = vld [vmem:[#allocation7 + $0x2b8] sm:$0xff]  }
 0x15f   : > { %6065 = vmatprep.subr.bf16.mxu1 %v7870_v45  ;;  %9092 = vst [vmem:[#allocation39_spill] sm:$0xff] %v7988_v43 }
 0x161   : > { %6044 = vmatpush3.bf16.msra.mxu0 %v7873_v46 }
 0x162   : > { %6066 = vmatpush3.bf16.msra.mxu1 %v7876_v47  ;;  %6045 = vmatprep.subr.bf16.mxu0 %v7878_v48 }
 0x163   : > { %6067 = vmatprep.subr.bf16.mxu1 %v7882_v49 }
 0x165   : > { %6046 = vmatpush3.bf16.msra.mxu0 %v7885_v54 }
 0x166   : > { %6068 = vmatpush3.bf16.msra.mxu1 %v7888_v55  ;;  %6075 = vmatprep.subr.bf16.mxu0 %v7890_v56 }
 0x167   : > { %6097 = vmatprep.subr.bf16.mxu1 %v7894_v57 }
 0x168   : > { %2916 = vmatmul.mubr.bf16.vlgmr.msra.gmra.mrb[20].mxu0 %v7797_v7  ;;  %v8000_v7 = vld [vmem:[#allocation7 + $0x380] sm:$0xff]  }
 0x169   : > { %2956 = vmatmul.mubr.bf16.vlgmr.msra.gmra.mrb[20].mxu1 %v7802_v10  ;;  %6076 = vmatpush3.bf16.msra.mxu0 %v7897_v58  ;;  %v7997_v10 = vld [vmem:[#allocation7 + $0x300] sm:$0xff]   ;;  %9096 = vst [vmem:[#allocation43_spill] sm:$0xff] %v8000_v7 }
 0x16a   : > { %6098 = vmatpush3.bf16.msra.mxu1 %v7900_v59  ;;  %6077 = vmatprep.subr.bf16.mxu0 %v7904_v60  ;;  %9095 = vst [vmem:[#allocation42_spill] sm:$0xff] %v7997_v10 }
 0x16b   : > { %2995 = vmatprep.mubr.bf16.mxu0 %v7814_v51  ;;  %6099 = vmatprep.subr.bf16.mxu1 %v7908_v61  ;;  %v7994_v51 = vld [vmem:[#allocation7 + $0x3c0] sm:$0xff]  }
 0x16c   : > { %3035 = vmatprep.mubr.bf16.mxu1 %v7818_v53  ;;  %v7990_v53 = vld [vmem:[#allocation7 + $0x340] sm:$0xff]   ;;  %9094 = vst [vmem:[#allocation41_spill] sm:$0xff] %v7994_v51 }
 0x16d   : > { %6078 = vmatpush3.bf16.msra.mxu0 %v7911_v62  ;;  %9093 = vst [vmem:[#allocation40_spill] sm:$0xff] %v7990_v53 }
 0x16e   : > { %6100 = vmatpush3.bf16.msra.mxu1 %v7915_v63  ;;  %6079 = vmatprep.subr.bf16.mxu0 %v7918_v0 }
 0x16f   : > { %6101 = vmatprep.subr.bf16.mxu1 %v7922_v1 }
 0x171   : > { %6080 = vmatpush3.bf16.msra.mxu0 %v7925_v2 }
 0x172   : > { %6102 = vmatpush3.bf16.msra.mxu1 %v7928_v3  ;;  %6081 = vmatprep.subr.bf16.mxu0 %v7930_v4 }
 0x173   : > { %6103 = vmatprep.subr.bf16.mxu1 %v7934_v5 }
 0x175   : > { %6082 = vmatpush3.bf16.msra.mxu0 %v7937_v6 }
 0x176   : > { %6104 = vmatpush3.bf16.msra.mxu1 %v7940_v9  ;;  %6083 = vmatprep.subr.bf16.mxu0 %v7942_v12 }
 0x177   : > { %6105 = vmatprep.subr.bf16.mxu1 %v7946_v13 }
 0x179   : > { %6084 = vmatpush3.bf16.msra.mxu0 %v7949_v14 }
 0x17a   : > { %6106 = vmatpush3.bf16.msra.mxu1 %v7952_v15  ;;  %6085 = vmatprep.subr.bf16.mxu0 %v7954_v16 }
 0x17b   : > { %6107 = vmatprep.subr.bf16.mxu1 %v7958_v17 }
 0x17d   : > { %6086 = vmatpush3.bf16.msra.mxu0 %v7961_v18 }
 0x17e   : > { %6108 = vmatpush3.bf16.msra.mxu1 %v7964_v19  ;;  %6087 = vmatprep.subr.bf16.mxu0 %v7966_v20 }
 0x17f   : > { %6109 = vmatprep.subr.bf16.mxu1 %v7970_v21 }
 0x181   : > { %6088 = vmatpush3.bf16.msra.mxu0 %v7973_v22 }
 0x182   : > { %6110 = vmatpush3.bf16.msra.mxu1 %v7976_v23  ;;  %6089 = vmatprep.subr.bf16.mxu0 %v7978_v24 }
 0x183   : > { %6111 = vmatprep.subr.bf16.mxu1 %v7982_v26  ;;  %v7237_v26 = vld [vmem:[#allocation7 + $0x28] sm:$0xff]  }
 0x185   : > { %6090 = vmatpush3.bf16.msra.mxu0 %v7985_v42  ;;  %v8066_v42 = vld [vmem:[#allocation7 + $0x3a8] sm:$0xff]  }
 0x186   : > { %6112 = vmatpush3.bf16.msra.mxu1 %v7988_v43  ;;  %6119 = vmatprep.subr.bf16.mxu0 %v7990_v53  ;;  %9116 = vst [vmem:[#allocation63_spill] sm:$0xff] %v8066_v42 }
 0x187   : > { %6141 = vmatprep.subr.bf16.mxu1 %v7994_v51  ;;  %v8062_v51 = vld [vmem:[#allocation7 + $0x328] sm:$0xff]  }
 0x188   : > { %2996 = vmatmul.mubr.bf16.vlgmr.msra.gmra.mrb[24].mxu0 %v7812_v50  ;;  %v8022_v50 = vld [vmem:[#allocation7 + $0x3d0] sm:$0xff]   ;;  %9115 = vst [vmem:[#allocation62_spill] sm:$0xff] %v8062_v51 }
 0x189   : > { %3036 = vmatmul.mubr.bf16.vlgmr.msra.gmra.mrb[24].mxu1 %v7816_v52  ;;  %6120 = vmatpush3.bf16.msra.mxu0 %v7997_v10  ;;  %v8018_v52 = vld [vmem:[#allocation7 + $0x350] sm:$0xff]   ;;  %9102 = vst [vmem:[#allocation49_spill] sm:$0xff] %v8022_v50 }
 0x18a   : > { %6142 = vmatpush3.bf16.msra.mxu1 %v8000_v7  ;;  %6121 = vmatprep.subr.bf16.mxu0 %v8004_v11  ;;  %9101 = vst [vmem:[#allocation48_spill] sm:$0xff] %v8018_v52  ;;  %v8056_v11 = vld [vmem:[#allocation7 + $0x3e8] sm:$0xff]  }
 0x18b   : > { %3075 = vmatprep.mubr.bf16.mxu0 %v7828_v29  ;;  %6143 = vmatprep.subr.bf16.mxu1 %v8008_v8  ;;  %v8028_v29 = vld [vmem:[#allocation7 + $0x390] sm:$0xff]   ;;  %v8054_v8 = vld [vmem:[#allocation7 + $0x368] sm:$0xff]   ;;  %9114 = vst [vmem:[#allocation61_spill] sm:$0xff] %v8056_v11 }
 0x18c   : > { %3115 = vmatprep.mubr.bf16.mxu1 %v7832_v32  ;;  %9104 = vst [vmem:[#allocation51_spill] sm:$0xff] %v8028_v29  ;;  %v8034_v32 = vld [vmem:[#allocation7 + $0x3d8] sm:$0xff]   ;;  %9113 = vst [vmem:[#allocation60_spill] sm:$0xff] %v8054_v8 }
 0x18d   : > { %6122 = vmatpush3.bf16.msra.mxu0 %v8011_v37  ;;  %9106 = vst [vmem:[#allocation53_spill] sm:$0xff] %v8034_v32  ;;  %v8042_v37 = vld [vmem:[#allocation7 + $0x360] sm:$0xff]  }
 0x18e   : > { %6144 = vmatpush3.bf16.msra.mxu1 %v8015_v36  ;;  %6123 = vmatprep.subr.bf16.mxu0 %v8018_v52  ;;  %v8037_v36 = vld [vmem:[#allocation7 + $0x318] sm:$0xff]   ;;  %9109 = vst [vmem:[#allocation56_spill] sm:$0xff] %v8042_v37 }
 0x18f   : > { %6145 = vmatprep.subr.bf16.mxu1 %v8022_v50  ;;  %9107 = vst [vmem:[#allocation54_spill] sm:$0xff] %v8037_v36  ;;  %v8040_v52 = vld [vmem:[#allocation7 + $0x398] sm:$0xff]   ;;  %v8046_v50 = vld [vmem:[#allocation7 + $0x3e0] sm:$0xff]  }
 0x190   : > { %9108 = vst [vmem:[#allocation55_spill] sm:$0xff] %v8040_v52  ;;  %9110 = vst [vmem:[#allocation57_spill] sm:$0xff] %v8046_v50 }
 0x191   : > { %6124 = vmatpush3.bf16.msra.mxu0 %v8025_v35 }
 0x192   : > { %6146 = vmatpush3.bf16.msra.mxu1 %v8028_v29  ;;  %6125 = vmatprep.subr.bf16.mxu0 %v8030_v34  ;;  %v8049_v29 = vld [vmem:[#allocation7 + $0x320] sm:$0xff]  }
 0x193   : > { %6147 = vmatprep.subr.bf16.mxu1 %v8034_v32  ;;  %9111 = vst [vmem:[#allocation58_spill] sm:$0xff] %v8049_v29  ;;  %v8052_v34 = vld [vmem:[#allocation7 + $0x3a0] sm:$0xff]  }
 0x194   : > { %9112 = vst [vmem:[#allocation59_spill] sm:$0xff] %v8052_v34 }
 0x195   : > { %6126 = vmatpush3.bf16.msra.mxu0 %v8037_v36 }
 0x196   : > { %6148 = vmatpush3.bf16.msra.mxu1 %v8040_v52  ;;  %6127 = vmatprep.subr.bf16.mxu0 %v8042_v37 }
 0x197   : > { %6149 = vmatprep.subr.bf16.mxu1 %v8046_v50 }
 0x199   : > { %6128 = vmatpush3.bf16.msra.mxu0 %v8049_v29 }
 0x19a   : > { %6150 = vmatpush3.bf16.msra.mxu1 %v8052_v34  ;;  %6129 = vmatprep.subr.bf16.mxu0 %v8054_v8  ;;  %v8069_v34 = vld [vmem:[#allocation7 + $0x370] sm:$0xff]  }
 0x19b   : > { %v5827_v35 = vpop.f32.mrb[0].mxu0  ;;  %6151 = vmatprep.subr.bf16.mxu1 %v8056_v11  ;;  %9117 = vst [vmem:[#allocation64_spill] sm:$0xff] %v8069_v34  ;;  %v7236_v11 = vld [vmem:[#allocation7 + $0xe8] sm:$0xff]  }
 0x19c   : > { %v5849_v32 = vpop.f32.mrb[0].mxu1  ;;  %v5828_v52 = vpop.f32.mrb[1].mxu0 }
 0x19d   : > { %v5850_v36 = vpop.f32.mrb[1].mxu1  ;;  %v5829_v7 = vadd.f32 %v5828_v52, %v5827_v35  ;;  %v5830_v50 = vpop.f32.mrb[2].mxu0  ;;  %6130 = vmatpush3.bf16.msra.mxu0 %v8062_v51  ;;  %v8072_v35 = vld [vmem:[#allocation7 + $0x3f0] sm:$0xff]   ;;  %v8090_v52 = vld [vmem:[#allocation7 + $0x3b8] sm:$0xff]   ;;  %v7235_v51 = vld [vmem:[#allocation7 + $0x68] sm:$0xff]  }
 0x19e   : > { %v5851_v37 = vadd.f32 %v5850_v36, %v5849_v32  ;;  %v5852_v10 = vpop.f32.mrb[2].mxu1  ;;  %v5831_v53 = vpop.f32.mrb[3].mxu0  ;;  %6152 = vmatpush3.bf16.msra.mxu1 %v8066_v42  ;;  %9118 = vst [vmem:[#allocation65_spill] sm:$0xff] %v8072_v35  ;;  %6131 = vmatprep.subr.bf16.mxu0 %v8069_v34  ;;  %v8075_v36 = vld [vmem:[#allocation7 + $0x330] sm:$0xff]   ;;  %v8087_v50 = vld [vmem:[#allocation7 + $0x338] sm:$0xff]   ;;  %9124 = vst [vmem:[#allocation71_spill] sm:$0xff] %v8090_v52 }
 0x19f   : > { %v5853_v29 = vpop.f32.mrb[3].mxu1  ;;  %9119 = vst [vmem:[#allocation66_spill] sm:$0xff] %v8075_v36  ;;  %6153 = vmatprep.subr.bf16.mxu1 %v8072_v35  ;;  %v8084_v10 = vld [vmem:[#allocation7 + $0x3f8] sm:$0xff]   ;;  %9123 = vst [vmem:[#allocation70_spill] sm:$0xff] %v8087_v50  ;;  %v8093_v53 = vld [vmem:[%s7768_s27] sm:$0xff] }
 0x1a0   : > { %v8064_v43 = vadd.f32 %v5851_v37, %v5829_v7  ;;  %v8078_v37 = vld [vmem:[#allocation7 + $0x3b0] sm:$0xff]   ;;  %v8081_v7 = vld [vmem:[#allocation7 + $0x378] sm:$0xff]   ;;  %9122 = vst [vmem:[#allocation69_spill] sm:$0xff] %v8084_v10  ;;  %v8097_v29 = vld [vmem:[%s7768_s27 + $0x8] sm:$0xff] }
 0x1a1   : > { %9120 = vst [vmem:[#allocation67_spill] sm:$0xff] %v8078_v37  ;;  %6132 = vmatpush3.bf16.msra.mxu0 %v8075_v36  ;;  %9121 = vst [vmem:[#allocation68_spill] sm:$0xff] %v8081_v7  ;;  %v7215_v32 = vld [vmem:[#allocation7 + $0x40] sm:$0xff]   ;;  %v7223_v35 = vld [vmem:[#allocation7 + $0x50] sm:$0xff]  }
 0x1a2   : > { %6154 = vmatpush3.bf16.msra.mxu1 %v8078_v37  ;;  %6133 = vmatprep.subr.bf16.mxu0 %v8081_v7  ;;  %v7216_v37 = vld [vmem:[#allocation7 + $0xc0] sm:$0xff]   ;;  %v8102_v7 = vcombine.high %v8093_v53, %v8093_v53  ;;  %v7224_v34 = vld [vmem:[#allocation7 + $0xd0] sm:$0xff]  }
 0x1a3   : > { %6155 = vmatprep.subr.bf16.mxu1 %v8084_v10  ;;  %v8107_v10 = vcombine.high %v8097_v29, %v8097_v29  ;;  %v7218_v36 = vld [vmem:[#allocation7 + $0x80] sm:$0xff]  }
 0x1a4   : > { %9125 = vst [vmem:[#allocation72_spill] sm:$0xff] %v8102_v7  ;;  %v7234_v42 = vld [vmem:[#allocation7 + $0xa0] sm:$0xff]  }
 0x1a5   : > { %6134 = vmatpush3.bf16.msra.mxu0 %v8087_v50  ;;  %9126 = vst [vmem:[#allocation73_spill] sm:$0xff] %v8107_v10  ;;  %v7217_v50 = vld [vmem:[#allocation7] sm:$0xff]  }
 0x1a6   : > { %6156 = vmatpush3.bf16.msra.mxu1 %v8090_v52  ;;  %6163 = vmatprep.subr.bf16.mxu0 %v7215_v32  ;;  %v7219_v52 = vld [vmem:[#allocation7 + $0x48] sm:$0xff]  }
 0x1a7   : > { %6185 = vmatprep.subr.bf16.mxu1 %v7216_v37  ;;  %v7220_v32 = vld [vmem:[#allocation7 + $0xc8] sm:$0xff]  }
 0x1a8   : > { %3076 = vmatmul.mubr.bf16.vlgmr.msra.gmra.mrb[28].mxu0 %v7826_v28  ;;  %v7221_v37 = vld [vmem:[#allocation7 + $0x8] sm:$0xff]  }
 0x1a9   : > { %3116 = vmatmul.mubr.bf16.vlgmr.msra.gmra.mrb[28].mxu1 %v7830_v30  ;;  %6164 = vmatpush3.bf16.msra.mxu0 %v7217_v50  ;;  %v7222_v28 = vld [vmem:[#allocation7 + $0x88] sm:$0xff]   ;;  %v7225_v30 = vld [vmem:[#allocation7 + $0x10] sm:$0xff]  }
 0x1aa   : > { %6186 = vmatpush3.bf16.msra.mxu1 %v7218_v36  ;;  %6165 = vmatprep.subr.bf16.mxu0 %v7219_v52  ;;  %v7226_v50 = vld [vmem:[#allocation7 + $0x90] sm:$0xff]   ;;  %v7227_v36 = vld [vmem:[#allocation7 + $0x58] sm:$0xff]  }
 0x1ab   : > { %6187 = vmatprep.subr.bf16.mxu1 %v7220_v32  ;;  %3219 = vmatprep.mubr.bf16.mxu0 %v8102_v7  ;;  %v7228_v52 = vld [vmem:[#allocation7 + $0xd8] sm:$0xff]  }
 0x1ac   : > { %3259 = vmatprep.mubr.bf16.mxu1 %v8107_v10  ;;  %v7229_v32 = vld [vmem:[#allocation7 + $0x18] sm:$0xff]   ;;  %v7231_v10 = vld [vmem:[#allocation7 + $0x60] sm:$0xff]  }
 0x1ad   : > { %6166 = vmatpush3.bf16.msra.mxu0 %v7221_v37  ;;  %v7230_v7 = vld [vmem:[#allocation7 + $0x98] sm:$0xff]   ;;  %v7232_v37 = vld [vmem:[#allocation7 + $0xe0] sm:$0xff]  }
 0x1ae   : > { %6188 = vmatpush3.bf16.msra.mxu1 %v7222_v28  ;;  %6167 = vmatprep.subr.bf16.mxu0 %v7223_v35  ;;  %v7233_v28 = vld [vmem:[#allocation7 + $0x20] sm:$0xff]  }
 0x1af   : > { %6189 = vmatprep.subr.bf16.mxu1 %v7224_v34 }
 0x1b1   : > { %6168 = vmatpush3.bf16.msra.mxu0 %v7225_v30 }
 0x1b2   : > { %6190 = vmatpush3.bf16.msra.mxu1 %v7226_v50  ;;  %6169 = vmatprep.subr.bf16.mxu0 %v7227_v36 }
 0x1b3   : > { %6191 = vmatprep.subr.bf16.mxu1 %v7228_v52 }
 0x1b5   : > { %6170 = vmatpush3.bf16.msra.mxu0 %v7229_v32 }
 0x1b6   : > { %6192 = vmatpush3.bf16.msra.mxu1 %v7230_v7  ;;  %6171 = vmatprep.subr.bf16.mxu0 %v7231_v10 }
 0x1b7   : > { %6193 = vmatprep.subr.bf16.mxu1 %v7232_v37 }
 0x1b9   : > { %6172 = vmatpush3.bf16.msra.mxu0 %v7233_v28  ;;  %v7238_v28 = vld [vmem:[#allocation7 + $0xa8] sm:$0xff]  }
 0x1ba   : > { %6194 = vmatpush3.bf16.msra.mxu1 %v7234_v42  ;;  %6173 = vmatprep.subr.bf16.mxu0 %v7235_v51  ;;  %v7239_v42 = vld [vmem:[#allocation7 + $0x70] sm:$0xff]  }
 0x1bb   : > { %v5871_v35 = vpop.f32.mrb[4].mxu0  ;;  %6195 = vmatprep.subr.bf16.mxu1 %v7236_v11  ;;  %v7240_v51 = vld [vmem:[#allocation7 + $0xf0] sm:$0xff]  }
 0x1bc   : > { %v5893_v34 = vpop.f32.mrb[4].mxu1  ;;  %v5872_v30 = vpop.f32.mrb[5].mxu0  ;;  %v7242_v11 = vld [vmem:[#allocation7 + $0xb0] sm:$0xff]  }
 0x1bd   : > { %v5894_v50 = vpop.f32.mrb[5].mxu1  ;;  %v5873_v36 = vadd.f32 %v5872_v30, %v5871_v35  ;;  %v5874_v32 = vpop.f32.mrb[6].mxu0  ;;  %6174 = vmatpush3.bf16.msra.mxu0 %v7237_v26  ;;  %v7241_v35 = vld [vmem:[#allocation7 + $0x30] sm:$0xff]   ;;  %v8117_v26 = vcombine.low %v8093_v53, %v8093_v53  ;;  %v7245_v30 = vld [vmem:[#allocation7 + $0x38] sm:$0xff]  }
 0x1be   : > { %v5895_v52 = vadd.f32 %v5894_v50, %v5893_v34  ;;  %v5896_v7 = vpop.f32.mrb[6].mxu1  ;;  %v5875_v8 = vpop.f32.mrb[7].mxu0  ;;  %6196 = vmatpush3.bf16.msra.mxu1 %v7238_v28  ;;  %6175 = vmatprep.subr.bf16.mxu0 %v7239_v42  ;;  %v7244_v34 = vld [vmem:[#allocation7 + $0xf8] sm:$0xff]   ;;  %v8124_v50 = vcombine.low %v8097_v29, %v8097_v29  ;;  %v7247_v32 = vld [vmem:[#allocation7 + $0x140] sm:$0xff]   ;;  %v7251_v28 = vld [vmem:[#allocation7 + $0x148] sm:$0xff]  }
 0x1bf   : > { %v5897_v10 = vpop.f32.mrb[7].mxu1  ;;  %v1567_v37 = vadd.f32 %v5873_v36, %v8064_v43  ;;  %6197 = vmatprep.subr.bf16.mxu1 %v7240_v51  ;;  %v7243_v8 = vld [vmem:[#allocation7 + $0x78] sm:$0xff]   ;;  %v8120_v43 = vld [vmem:[%s7768_s27 + $0x10] sm:$0xff]  ;;  %v7248_v7 = vld [vmem:[#allocation7 + $0x1c0] sm:$0xff]  }
 0x1c0   : > { %v8127_v36 = vld [vmem:[%s7768_s27 + $0x18] sm:$0xff]  ;;  %v8131_v53 = vcombine.high %v8120_v43, %v8120_v43  ;;  %v7249_v29 = vld [vmem:[#allocation7 + $0x100] sm:$0xff]   ;;  %v7252_v42 = vld [vmem:[#allocation7 + $0x1c8] sm:$0xff]  }
 0x1c1   : > { %v8113_v24 = vadd.f32 %v5895_v52, %v1567_v37  ;;  %6176 = vmatpush3.bf16.msra.mxu0 %v7241_v35  ;;  %v7246_v52 = vld [vmem:[#allocation7 + $0xb8] sm:$0xff]   ;;  %v8136_v10 = vcombine.high %v8127_v36, %v8127_v36  ;;  %v7250_v37 = vld [vmem:[#allocation7 + $0x180] sm:$0xff]   ;;  %v7253_v51 = vld [vmem:[#allocation7 + $0x108] sm:$0xff]  }
 0x1c2   : > { %6198 = vmatpush3.bf16.msra.mxu1 %v7242_v11  ;;  %6177 = vmatprep.subr.bf16.mxu0 %v7243_v8  ;;  %v7254_v35 = vld [vmem:[#allocation7 + $0x188] sm:$0xff]   ;;  %v7255_v11 = vld [vmem:[#allocation7 + $0x150] sm:$0xff]  }
 0x1c3   : > { %6199 = vmatprep.subr.bf16.mxu1 %v7244_v34  ;;  %v7256_v8 = vld [vmem:[#allocation7 + $0x1d0] sm:$0xff]  }
 0x1c4   : > { %v7257_v34 = vld [vmem:[#allocation7 + $0x110] sm:$0xff]  }
 0x1c5   : > { %6178 = vmatpush3.bf16.msra.mxu0 %v7245_v30  ;;  %v7258_v30 = vld [vmem:[#allocation7 + $0x190] sm:$0xff]  }
 0x1c6   : > { %6200 = vmatpush3.bf16.msra.mxu1 %v7246_v52  ;;  %6207 = vmatprep.subr.bf16.mxu0 %v7247_v32  ;;  %v7259_v52 = vld [vmem:[#allocation7 + $0x158] sm:$0xff]  }
 0x1c7   : > { %6229 = vmatprep.subr.bf16.mxu1 %v7248_v7  ;;  %v7260_v32 = vld [vmem:[#allocation7 + $0x118] sm:$0xff]  }
 0x1c8   : > { %3220 = vmatmul.mubr.bf16.vlgmr.msra.gmra.mrb[32].mxu0 %v8117_v26 }
 0x1c9   : > { %3260 = vmatmul.mubr.bf16.vlgmr.msra.gmra.mrb[32].mxu1 %v8124_v50  ;;  %6208 = vmatpush3.bf16.msra.mxu0 %v7249_v29 }
 0x1ca   : > { %6230 = vmatpush3.bf16.msra.mxu1 %v7250_v37  ;;  %6209 = vmatprep.subr.bf16.mxu0 %v7251_v28 }
 0x1cb   : > { %6231 = vmatprep.subr.bf16.mxu1 %v7252_v42  ;;  %3299 = vmatprep.mubr.bf16.mxu0 %v8131_v53 }
 0x1cc   : > { %3339 = vmatprep.mubr.bf16.mxu1 %v8136_v10 }
 0x1cd   : > { %6210 = vmatpush3.bf16.msra.mxu0 %v7253_v51 }
 0x1ce   : > { %6232 = vmatpush3.bf16.msra.mxu1 %v7254_v35  ;;  %6211 = vmatprep.subr.bf16.mxu0 %v7255_v11  ;;  %v7261_v35 = vld [vmem:[#allocation7 + $0x128] sm:$0xff]  }
 0x1cf   : > { %6233 = vmatprep.subr.bf16.mxu1 %v7256_v8  ;;  %v9152_v11 = vld [vmem:[#allocation52_spill] sm:$0xff]  ;;  %v9153_v8 = vld [vmem:[#allocation53_spill] sm:$0xff] }
 0x1d1   : > { %6212 = vmatpush3.bf16.msra.mxu0 %v7257_v34  ;;  %v9154_v34 = vld [vmem:[#allocation54_spill] sm:$0xff] }
 0x1d2   : > { %6234 = vmatpush3.bf16.msra.mxu1 %v7258_v30  ;;  %6213 = vmatprep.subr.bf16.mxu0 %v7259_v52  ;;  %v9155_v30 = vld [vmem:[#allocation55_spill] sm:$0xff]  ;;  %v9156_v52 = vld [vmem:[#allocation56_spill] sm:$0xff] }
 0x1d3   : > { %6235 = vmatprep.subr.bf16.mxu1 %v7844_v25 }
 0x1d5   : > { %6214 = vmatpush3.bf16.msra.mxu0 %v7260_v32  ;;  %v9157_v32 = vld [vmem:[#allocation57_spill] sm:$0xff] }
 0x1d6   : > { %6236 = vmatpush3.bf16.msra.mxu1 %v7847_v27  ;;  %6215 = vmatprep.subr.bf16.mxu0 %v7849_v31 }
 0x1d7   : > { %6237 = vmatprep.subr.bf16.mxu1 %v7852_v33 }
 0x1d9   : > { %6216 = vmatpush3.bf16.msra.mxu0 %v7855_v38 }
 0x1da   : > { %6238 = vmatpush3.bf16.msra.mxu1 %v7858_v39  ;;  %6217 = vmatprep.subr.bf16.mxu0 %v7860_v40  ;;  %v7262_v39 = vld [vmem:[#allocation7 + $0x1a8] sm:$0xff]  }
 0x1db   : > { %v5915_v7 = vpop.f32.mrb[8].mxu0  ;;  %6239 = vmatprep.subr.bf16.mxu1 %v7864_v41  ;;  %v8158_v41 = vcombine.low %v8120_v43, %v8120_v43  ;;  %v9150_v43 = vld [vmem:[#allocation50_spill] sm:$0xff] }
 0x1dc   : > { %v5937_v29 = vpop.f32.mrb[8].mxu1  ;;  %v5916_v37 = vpop.f32.mrb[9].mxu0 }
 0x1dd   : > { %v5917_v28 = vadd.f32 %v5916_v37, %v5915_v7  ;;  %v5938_v42 = vpop.f32.mrb[9].mxu1  ;;  %v5918_v25 = vpop.f32.mrb[10].mxu0  ;;  %6218 = vmatpush3.bf16.msra.mxu0 %v7261_v35  ;;  %9127 = vst [vmem:[#allocation74_spill] sm:$0xff] %v8158_v41  ;;  %v9158_v7 = vld [vmem:[#allocation58_spill] sm:$0xff]  ;;  %v9160_v37 = vld [vmem:[#allocation60_spill] sm:$0xff] }
 0x1de   : > { %v5939_v51 = vadd.f32 %v5938_v42, %v5937_v29  ;;  %v5940_v27 = vpop.f32.mrb[10].mxu1  ;;  %v5919_v31 = vpop.f32.mrb[11].mxu0  ;;  %6240 = vmatpush3.bf16.msra.mxu1 %v7262_v39  ;;  %6219 = vmatprep.subr.bf16.mxu0 %v7868_v44  ;;  %v8164_v44 = vcombine.low %v8127_v36, %v8127_v36  ;;  %v9151_v36 = vld [vmem:[#allocation51_spill] sm:$0xff]  ;;  %v9161_v25 = vld [vmem:[#allocation61_spill] sm:$0xff]  ;;  %v9162_v39 = vld [vmem:[#allocation62_spill] sm:$0xff] }
 0x1df   : > { %v1647_v33 = vadd.f32 %v5917_v28, %v8113_v24  ;;  %v5941_v38 = vpop.f32.mrb[11].mxu1  ;;  %6241 = vmatprep.subr.bf16.mxu1 %v7870_v45  ;;  %v3127_v24 = vld [vmem:[%s7768_s27 + $0x20] sm:$0xff]  ;;  %v3128_v45 = vld [vmem:[%s7768_s27 + $0x28] sm:$0xff] }
 0x1e0   : > { %9128 = vst [vmem:[#allocation75_spill] sm:$0xff] %v8164_v44  ;;  %v9159_v29 = vld [vmem:[#allocation59_spill] sm:$0xff] }
 0x1e1   : > { %v1687_v40 = vadd.f32 %v5939_v51, %v1647_v33  ;;  %6220 = vmatpush3.bf16.msra.mxu0 %v7873_v46  ;;  %v8170_v46 = vcombine.high %v3127_v24, %v3127_v24 }
 0x1e2   : > { %6242 = vmatpush3.bf16.msra.mxu1 %v7876_v47  ;;  %6221 = vmatprep.subr.bf16.mxu0 %v7878_v48  ;;  %v8173_v47 = vcombine.high %v3128_v45, %v3128_v45 }
 0x1e3   : > { %6243 = vmatprep.subr.bf16.mxu1 %v7882_v49  ;;  %9129 = vst [vmem:[#allocation76_spill] sm:$0xff] %v8170_v46 }
 0x1e4   : > { %9130 = vst [vmem:[#allocation77_spill] sm:$0xff] %v8173_v47 }
 0x1e5   : > { %6222 = vmatpush3.bf16.msra.mxu0 %v7885_v54 }
 0x1e6   : > { %6244 = vmatpush3.bf16.msra.mxu1 %v7888_v55  ;;  %6251 = vmatprep.subr.bf16.mxu0 %v7890_v56 }
 0x1e7   : > { %6273 = vmatprep.subr.bf16.mxu1 %v7894_v57 }
 0x1e8   : > { %3300 = vmatmul.mubr.bf16.vlgmr.msra.gmra.mrb[36].mxu0 %v8158_v41 }
 0x1e9   : > { %3340 = vmatmul.mubr.bf16.vlgmr.msra.gmra.mrb[36].mxu1 %v8164_v44  ;;  %6252 = vmatpush3.bf16.msra.mxu0 %v7897_v58 }
 0x1ea   : > { %6274 = vmatpush3.bf16.msra.mxu1 %v7900_v59  ;;  %6253 = vmatprep.subr.bf16.mxu0 %v7904_v60 }
 0x1eb   : > { %6275 = vmatprep.subr.bf16.mxu1 %v7908_v61  ;;  %3379 = vmatprep.mubr.bf16.mxu0 %v8170_v46  ;;  %v8438_v46 = vld [vmem:[#allocation7 + $0x970] sm:$0xff]  }
 0x1ec   : > { %3419 = vmatprep.mubr.bf16.mxu1 %v8173_v47  ;;  %v8436_v47 = vld [vmem:[#allocation7 + $0x9a8] sm:$0xff]   ;;  %9194 = vst [vmem:[#allocation56_spill] sm:$0xff] %v8438_v46 }
 0x1ed   : > { %6254 = vmatpush3.bf16.msra.mxu0 %v7911_v62  ;;  %9193 = vst [vmem:[#allocation55_spill] sm:$0xff] %v8436_v47 }
 0x1ee   : > { %6276 = vmatpush3.bf16.msra.mxu1 %v7915_v63  ;;  %6255 = vmatprep.subr.bf16.mxu0 %v7918_v0  ;;  %v9132_v0 = vld [vmem:[#allocation36_spill] sm:$0xff] }
 0x1ef   : > { %6277 = vmatprep.subr.bf16.mxu1 %v7922_v1  ;;  %v9133_v1 = vld [vmem:[#allocation37_spill] sm:$0xff] }
 0x1f1   : > { %6256 = vmatpush3.bf16.msra.mxu0 %v7925_v2  ;;  %v8208_v2 = vcombine.low %v3127_v24, %v3127_v24 }
 0x1f2   : > { %6278 = vmatpush3.bf16.msra.mxu1 %v7928_v3  ;;  %6257 = vmatprep.subr.bf16.mxu0 %v7930_v4  ;;  %v3129_v3 = vld [vmem:[%s7768_s27 + $0x30] sm:$0xff]  ;;  %v9135_v4 = vld [vmem:[#allocation38_spill] sm:$0xff] }
 0x1f3   : > { %6279 = vmatprep.subr.bf16.mxu1 %v7934_v5  ;;  %9134 = vst [vmem:[#allocation36_spill] sm:$0xff] %v8208_v2  ;;  %v8212_v5 = vcombine.low %v3128_v45, %v3128_v45 }
 0x1f5   : > { %6258 = vmatpush3.bf16.msra.mxu0 %v7937_v6  ;;  %9136 = vst [vmem:[#allocation37_spill] sm:$0xff] %v8212_v5  ;;  %v3130_v6 = vld [vmem:[%s7768_s27 + $0x38] sm:$0xff]  ;;  %s9356_s27 = sld [smem:[#allocation113_spill]] }
 0x1f6   : > { %6280 = vmatpush3.bf16.msra.mxu1 %v7940_v9  ;;  %6259 = vmatprep.subr.bf16.mxu0 %v7942_v12  ;;  %v9137_v9 = vld [vmem:[#allocation39_spill] sm:$0xff]  ;;  %v9138_v12 = vld [vmem:[#allocation40_spill] sm:$0xff] }
 0x1f7   : > { %6281 = vmatprep.subr.bf16.mxu1 %v7946_v13  ;;  %v9139_v13 = vld [vmem:[#allocation41_spill] sm:$0xff] }
 0x1f9   : > { %6260 = vmatpush3.bf16.msra.mxu0 %v7949_v14  ;;  %v8218_v14 = vcombine.high %v3129_v3, %v3129_v3 }
 0x1fa   : > { %6282 = vmatpush3.bf16.msra.mxu1 %v7952_v15  ;;  %6261 = vmatprep.subr.bf16.mxu0 %v7954_v16  ;;  %v8221_v15 = vcombine.high %v3130_v6, %v3130_v6  ;;  %v9142_v16 = vld [vmem:[#allocation42_spill] sm:$0xff] }
 0x1fb   : > { %v5959_v48 = vpop.f32.mrb[12].mxu0  ;;  %6283 = vmatprep.subr.bf16.mxu1 %v7958_v17  ;;  %9140 = vst [vmem:[#allocation38_spill] sm:$0xff] %v8218_v14  ;;  %v9143_v17 = vld [vmem:[#allocation43_spill] sm:$0xff]  ;;  %s8841_s26 = scalar_lea.hbm %s9356_s27, %s5808_s7 }
 0x1fc   : > { %v5981_v49 = vpop.f32.mrb[12].mxu1  ;;  %v5960_v54 = vpop.f32.mrb[13].mxu0  ;;  %9141 = vst [vmem:[#allocation39_spill] sm:$0xff] %v8221_v15 }
 0x1fd   : > { %v5961_v55 = vadd.f32 %v5960_v54, %v5959_v48  ;;  %v5982_v56 = vpop.f32.mrb[13].mxu1  ;;  %v5962_v57 = vpop.f32.mrb[14].mxu0  ;;  %6262 = vmatpush3.bf16.msra.mxu0 %v7961_v18  ;;  %v9144_v18 = vld [vmem:[#allocation44_spill] sm:$0xff]  ;;  %v9165_v54 = vld [vmem:[#allocation65_spill] sm:$0xff] }
 0x1fe   : > { %v5983_v58 = vadd.f32 %v5982_v56, %v5981_v49  ;;  %v5984_v59 = vpop.f32.mrb[14].mxu1  ;;  %v5963_v60 = vpop.f32.mrb[15].mxu0  ;;  %6284 = vmatpush3.bf16.msra.mxu1 %v7964_v19  ;;  %6263 = vmatprep.subr.bf16.mxu0 %v7966_v20  ;;  %v9145_v19 = vld [vmem:[#allocation45_spill] sm:$0xff]  ;;  %v9146_v20 = vld [vmem:[#allocation46_spill] sm:$0xff]  ;;  %v9164_v48 = vld [vmem:[#allocation64_spill] sm:$0xff] }
 0x1ff   : > { %v1727_v61 = vadd.f32 %v5961_v55, %v1687_v40  ;;  %v5985_v62 = vpop.f32.mrb[15].mxu1  ;;  %6285 = vmatprep.subr.bf16.mxu1 %v7970_v21  ;;  %v9147_v21 = vld [vmem:[#allocation47_spill] sm:$0xff]  ;;  %v9166_v55 = vld [vmem:[#allocation66_spill] sm:$0xff]  ;;  %v9168_v57 = vld [vmem:[#allocation68_spill] sm:$0xff] }
 0x200   : > { %v9163_v40 = vld [vmem:[#allocation63_spill] sm:$0xff]  ;;  %v9169_v59 = vld [vmem:[#allocation69_spill] sm:$0xff] }
 0x201   : > { %v8202_v63 = vadd.f32 %v5983_v58, %v1727_v61  ;;  %6264 = vmatpush3.bf16.msra.mxu0 %v7973_v22  ;;  %v9148_v22 = vld [vmem:[#allocation48_spill] sm:$0xff]  ;;  %v9167_v56 = vld [vmem:[#allocation67_spill] sm:$0xff]  ;;  %v8260_v61 = vcombine.low %v3129_v3, %v3129_v3 }
 0x202   : > { %6286 = vmatpush3.bf16.msra.mxu1 %v7976_v23  ;;  %6265 = vmatprep.subr.bf16.mxu0 %v9132_v0  ;;  %v9149_v23 = vld [vmem:[#allocation49_spill] sm:$0xff]  ;;  %v8255_v58 = vld [vmem:[#allocation7 + $0x840] sm:$0xff]   ;;  %v8279_v3 = vld [vmem:[#allocation7 + $0x808] sm:$0xff]  }
 0x203   : > { %9131 = vst [vmem:[#allocation78_spill] sm:$0xff] %v8202_v63  ;;  %6287 = vmatprep.subr.bf16.mxu1 %v9133_v1  ;;  %v8258_v60 = vld [vmem:[#allocation7 + $0x8c0] sm:$0xff]   ;;  %9170 = vst [vmem:[#allocation40_spill] sm:$0xff] %v8260_v61  ;;  %v8265_v1 = vcombine.low %v3130_v6, %v3130_v6  ;;  %v8283_v6 = vld [vmem:[#allocation7 + $0x888] sm:$0xff]  }
 0x204   : > { %v8262_v62 = vld [vmem:[#allocation7 + $0x800] sm:$0xff]   ;;  %v8432_v63 = vld [vmem:[#allocation7 + $0x928] sm:$0xff]  }
 0x205   : > { %6266 = vmatpush3.bf16.msra.mxu0 %v9135_v4  ;;  %v9171_v0 = vld [vmem:[#allocation70_spill] sm:$0xff]  ;;  %9172 = vst [vmem:[#allocation41_spill] sm:$0xff] %v8265_v1 }
 0x206   : > { %6288 = vmatpush3.bf16.msra.mxu1 %v9137_v9  ;;  %6295 = vmatprep.subr.bf16.mxu0 %v9138_v12  ;;  %v8267_v4 = vld [vmem:[#allocation7 + $0x880] sm:$0xff]   ;;  %v8271_v12 = vld [vmem:[#allocation7 + $0x848] sm:$0xff]  }
 0x207   : > { %6317 = vmatprep.subr.bf16.mxu1 %v9139_v13  ;;  %v9173_v9 = vld [vmem:[#allocation71_spill] sm:$0xff] }
 0x208   : > { %3380 = vmatmul.mubr.bf16.vlgmr.msra.gmra.mrb[40].mxu0 %v8208_v2  ;;  %v8274_v13 = vld [vmem:[#allocation7 + $0x8c8] sm:$0xff]  }
 0x209   : > { %3420 = vmatmul.mubr.bf16.vlgmr.msra.gmra.mrb[40].mxu1 %v8212_v5  ;;  %6296 = vmatpush3.bf16.msra.mxu0 %v9142_v16  ;;  %v8285_v16 = vld [vmem:[#allocation7 + $0x850] sm:$0xff]   ;;  %v8426_v5 = vld [vmem:[#allocation7 + $0x968] sm:$0xff]  }
 0x20a   : > { %6318 = vmatpush3.bf16.msra.mxu1 %v9143_v17  ;;  %6297 = vmatprep.subr.bf16.mxu0 %v9144_v18  ;;  %v8288_v17 = vld [vmem:[#allocation7 + $0x8d0] sm:$0xff]   ;;  %9191 = vst [vmem:[#allocation53_spill] sm:$0xff] %v8426_v5  ;;  %v8429_v2 = vld [vmem:[#allocation7 + $0x9e8] sm:$0xff]  }
 0x20b   : > { %6319 = vmatprep.subr.bf16.mxu1 %v9145_v19  ;;  %3459 = vmatprep.mubr.bf16.mxu0 %v8218_v14  ;;  %v9174_v18 = vld [vmem:[#allocation20_spill] sm:$0xff]  ;;  %v9175_v19 = vld [vmem:[#allocation21_spill] sm:$0xff]  ;;  %v8424_v14 = vld [vmem:[#allocation7 + $0x9a0] sm:$0xff]   ;;  %9192 = vst [vmem:[#allocation54_spill] sm:$0xff] %v8429_v2 }
 0x20c   : > { %3499 = vmatprep.mubr.bf16.mxu1 %v8221_v15  ;;  %v8420_v15 = vld [vmem:[#allocation7 + $0x920] sm:$0xff]   ;;  %9190 = vst [vmem:[#allocation52_spill] sm:$0xff] %v8424_v14 }
 0x20d   : > { %6298 = vmatpush3.bf16.msra.mxu0 %v9146_v20  ;;  %v8293_v20 = vld [vmem:[#allocation7 + $0x810] sm:$0xff]   ;;  %9189 = vst [vmem:[#allocation51_spill] sm:$0xff] %v8420_v15 }
 0x20e   : > { %6320 = vmatpush3.bf16.msra.mxu1 %v9147_v21  ;;  %6299 = vmatprep.subr.bf16.mxu0 %v9148_v22  ;;  %v8297_v21 = vld [vmem:[#allocation7 + $0x890] sm:$0xff]   ;;  %v8299_v22 = vld [vmem:[#allocation7 + $0x858] sm:$0xff]  }
 0x20f   : > { %6321 = vmatprep.subr.bf16.mxu1 %v9149_v23  ;;  %v8302_v23 = vld [vmem:[#allocation7 + $0x8d8] sm:$0xff]  }
 0x211   : > { %6300 = vmatpush3.bf16.msra.mxu0 %v9150_v43  ;;  %v8305_v43 = vld [vmem:[#allocation7 + $0x818] sm:$0xff]  }
 0x212   : > { %6322 = vmatpush3.bf16.msra.mxu1 %v9151_v36  ;;  %6301 = vmatprep.subr.bf16.mxu0 %v9152_v11  ;;  %v8309_v36 = vld [vmem:[#allocation7 + $0x898] sm:$0xff]   ;;  %v8311_v11 = vld [vmem:[#allocation7 + $0x860] sm:$0xff]  }
 0x213   : > { %6323 = vmatprep.subr.bf16.mxu1 %v9153_v8  ;;  %v8314_v8 = vld [vmem:[#allocation7 + $0x8e0] sm:$0xff]  }
 0x215   : > { %6302 = vmatpush3.bf16.msra.mxu0 %v9154_v34  ;;  %v8317_v34 = vld [vmem:[#allocation7 + $0x820] sm:$0xff]  }
 0x216   : > { %6324 = vmatpush3.bf16.msra.mxu1 %v9155_v30  ;;  %6303 = vmatprep.subr.bf16.mxu0 %v9156_v52  ;;  %v8321_v30 = vld [vmem:[#allocation7 + $0x8a0] sm:$0xff]   ;;  %v8323_v52 = vld [vmem:[#allocation7 + $0x868] sm:$0xff]  }
 0x217   : > { %6325 = vmatprep.subr.bf16.mxu1 %v9157_v32  ;;  %v8326_v32 = vld [vmem:[#allocation7 + $0x8e8] sm:$0xff]  }
 0x219   : > { %6304 = vmatpush3.bf16.msra.mxu0 %v9158_v7  ;;  %v8329_v7 = vld [vmem:[#allocation7 + $0x828] sm:$0xff]  }
 0x21a   : > { %6326 = vmatpush3.bf16.msra.mxu1 %v9159_v29  ;;  %6305 = vmatprep.subr.bf16.mxu0 %v9160_v37  ;;  %v8333_v29 = vld [vmem:[#allocation7 + $0x8a8] sm:$0xff]   ;;  %v8335_v37 = vld [vmem:[#allocation7 + $0x870] sm:$0xff]  }
 0x21b   : > { %v6003_v28 = vpop.f32.mrb[16].mxu0  ;;  %6327 = vmatprep.subr.bf16.mxu1 %v9161_v25  ;;  %v8338_v25 = vld [vmem:[#allocation7 + $0x8f0] sm:$0xff]  }
 0x21c   : > { %v6025_v42 = vpop.f32.mrb[16].mxu1  ;;  %v6004_v51 = vpop.f32.mrb[17].mxu0 }
 0x21d   : > { %v6026_v27 = vpop.f32.mrb[17].mxu1  ;;  %v6005_v31 = vadd.f32 %v6004_v51, %v6003_v28  ;;  %v6006_v35 = vpop.f32.mrb[18].mxu0  ;;  %6306 = vmatpush3.bf16.msra.mxu0 %v9162_v39  ;;  %v8341_v39 = vld [vmem:[#allocation7 + $0x830] sm:$0xff]  }
 0x21e   : > { %v6027_v33 = vadd.f32 %v6026_v27, %v6025_v42  ;;  %v6028_v38 = vpop.f32.mrb[18].mxu1  ;;  %6328 = vmatpush3.bf16.msra.mxu1 %v9163_v40  ;;  %v6007_v24 = vpop.f32.mrb[19].mxu0  ;;  %6307 = vmatprep.subr.bf16.mxu0 %v9164_v48  ;;  %v8347_v48 = vld [vmem:[#allocation7 + $0x878] sm:$0xff]  }
 0x21f   : > { %v6029_v45 = vpop.f32.mrb[19].mxu1  ;;  %6329 = vmatprep.subr.bf16.mxu1 %v9165_v54 }
 0x220   : > { %v8249_v49 = vadd.f32 %v6027_v33, %v6005_v31  ;;  %v8345_v45 = vld [vmem:[#allocation7 + $0x8b0] sm:$0xff]  }
 0x221   : > { %6308 = vmatpush3.bf16.msra.mxu0 %v9166_v55  ;;  %v8351_v55 = vld [vmem:[#allocation7 + $0x8f8] sm:$0xff]  }
 0x222   : > { %6330 = vmatpush3.bf16.msra.mxu1 %v9167_v56  ;;  %6309 = vmatprep.subr.bf16.mxu0 %v9168_v57  ;;  %v8356_v57 = vld [vmem:[#allocation7 + $0x838] sm:$0xff]  }
 0x223   : > { %6331 = vmatprep.subr.bf16.mxu1 %v9169_v59  ;;  %v8360_v59 = vld [vmem:[#allocation7 + $0x8b8] sm:$0xff]  }
 0x225   : > { %6310 = vmatpush3.bf16.msra.mxu0 %v9171_v0  ;;  %v8362_v0 = vld [vmem:[#allocation7 + $0x940] sm:$0xff]  }
 0x226   : > { %6332 = vmatpush3.bf16.msra.mxu1 %v9173_v9  ;;  %6339 = vmatprep.subr.bf16.mxu0 %v8255_v58  ;;  %v8368_v9 = vld [vmem:[#allocation7 + $0x900] sm:$0xff]  }
 0x227   : > { %6361 = vmatprep.subr.bf16.mxu1 %v8258_v60 }
 0x228   : > { %3460 = vmatmul.mubr.bf16.vlgmr.msra.gmra.mrb[44].mxu0 %v8260_v61  ;;  %v8417_v61 = vld [vmem:[#allocation7 + $0x9e0] sm:$0xff]  }
 0x229   : > { %3500 = vmatmul.mubr.bf16.vlgmr.msra.gmra.mrb[44].mxu1 %v8265_v1  ;;  %6340 = vmatpush3.bf16.msra.mxu0 %v8262_v62  ;;  %v8414_v1 = vld [vmem:[#allocation7 + $0x960] sm:$0xff]   ;;  %9188 = vst [vmem:[#allocation50_spill] sm:$0xff] %v8417_v61 }
 0x22a   : > { %6362 = vmatpush3.bf16.msra.mxu1 %v8267_v4  ;;  %6341 = vmatprep.subr.bf16.mxu0 %v8271_v12  ;;  %9187 = vst [vmem:[#allocation49_spill] sm:$0xff] %v8414_v1 }
 0x22b   : > { %6363 = vmatprep.subr.bf16.mxu1 %v8274_v13  ;;  %4574 = vmatprep.mubr.bf16.mxu0 %v9174_v18  ;;  %v8372_v18 = vld [vmem:[#allocation7 + $0x980] sm:$0xff]  }
 0x22c   : > { %4614 = vmatprep.mubr.bf16.mxu1 %v9175_v19  ;;  %v8374_v19 = vld [vmem:[#allocation7 + $0x948] sm:$0xff]  }
 0x22d   : > { %6342 = vmatpush3.bf16.msra.mxu0 %v8279_v3 }
 0x22e   : > { %6364 = vmatpush3.bf16.msra.mxu1 %v8283_v6  ;;  %6343 = vmatprep.subr.bf16.mxu0 %v8285_v16 }
 0x22f   : > { %6365 = vmatprep.subr.bf16.mxu1 %v8288_v17 }
 0x231   : > { %6344 = vmatpush3.bf16.msra.mxu0 %v8293_v20 }
 0x232   : > { %6366 = vmatpush3.bf16.msra.mxu1 %v8297_v21  ;;  %6345 = vmatprep.subr.bf16.mxu0 %v8299_v22 }
 0x233   : > { %6367 = vmatprep.subr.bf16.mxu1 %v8302_v23 }
 0x235   : > { %6346 = vmatpush3.bf16.msra.mxu0 %v8305_v43 }
 0x236   : > { %6368 = vmatpush3.bf16.msra.mxu1 %v8309_v36  ;;  %6347 = vmatprep.subr.bf16.mxu0 %v8311_v11 }
 0x237   : > { %6369 = vmatprep.subr.bf16.mxu1 %v8314_v8 }
 0x239   : > { %6348 = vmatpush3.bf16.msra.mxu0 %v8317_v34 }
 0x23a   : > { %6370 = vmatpush3.bf16.msra.mxu1 %v8321_v30  ;;  %6349 = vmatprep.subr.bf16.mxu0 %v8323_v52 }
 0x23b   : > { %v6047_v28 = vpop.f32.mrb[20].mxu0  ;;  %6371 = vmatprep.subr.bf16.mxu1 %v8326_v32 }
 0x23c   : > { %v6069_v42 = vpop.f32.mrb[20].mxu1  ;;  %v6048_v51 = vpop.f32.mrb[21].mxu0 }
 0x23d   : > { %v6070_v27 = vpop.f32.mrb[21].mxu1  ;;  %v6049_v31 = vadd.f32 %v6048_v51, %v6047_v28  ;;  %v6050_v35 = vpop.f32.mrb[22].mxu0  ;;  %6350 = vmatpush3.bf16.msra.mxu0 %v8329_v7  ;;  %v8377_v28 = vld [vmem:[#allocation7 + $0x9c8] sm:$0xff]  }
 0x23e   : > { %v6071_v33 = vadd.f32 %v6070_v27, %v6069_v42  ;;  %v6072_v38 = vpop.f32.mrb[22].mxu1  ;;  %6372 = vmatpush3.bf16.msra.mxu1 %v8333_v29  ;;  %v6051_v40 = vpop.f32.mrb[23].mxu0  ;;  %6351 = vmatprep.subr.bf16.mxu0 %v8335_v37  ;;  %v9176_v42 = vld [vmem:[#allocation22_spill] sm:$0xff]  ;;  %v9177_v51 = vld [vmem:[#allocation23_spill] sm:$0xff]  ;;  %v8391_v35 = vld [vmem:[#allocation7 + $0x9d0] sm:$0xff]  }
 0x23f   : > { %v6073_v24 = vpop.f32.mrb[23].mxu1  ;;  %v2918_v54 = vadd.f32 %v6049_v31, %v8249_v49  ;;  %6373 = vmatprep.subr.bf16.mxu1 %v8338_v25  ;;  %v8365_v49 = vld [vmem:[#allocation7 + $0x9c0] sm:$0xff]   ;;  %v8382_v27 = vld [vmem:[#allocation7 + $0x908] sm:$0xff]   ;;  %9178 = vst [vmem:[#allocation42_spill] sm:$0xff] %v8391_v35  ;;  %v9179_v38 = vld [vmem:[#allocation25_spill] sm:$0xff] }
 0x240   : > { %v8386_v31 = vld [vmem:[#allocation7 + $0x988] sm:$0xff]   ;;  %v8396_v24 = vld [vmem:[#allocation7 + $0x910] sm:$0xff]  }
 0x241   : > { %v8353_v56 = vadd.f32 %v6071_v33, %v2918_v54  ;;  %6352 = vmatpush3.bf16.msra.mxu0 %v8341_v39  ;;  %v8388_v33 = vld [vmem:[#allocation7 + $0x950] sm:$0xff]   ;;  %v9180_v40 = vld [vmem:[#allocation27_spill] sm:$0xff]  ;;  %9181 = vst [vmem:[#allocation43_spill] sm:$0xff] %v8396_v24 }
 0x242   : > { %6374 = vmatpush3.bf16.msra.mxu1 %v8345_v45  ;;  %6353 = vmatprep.subr.bf16.mxu0 %v8347_v48  ;;  %v8400_v54 = vld [vmem:[#allocation7 + $0x990] sm:$0xff]  }
 0x243   : > { %6375 = vmatprep.subr.bf16.mxu1 %v8351_v55  ;;  %9182 = vst [vmem:[#allocation44_spill] sm:$0xff] %v8400_v54 }
 0x245   : > { %6354 = vmatpush3.bf16.msra.mxu0 %v8356_v57 }
 0x246   : > { %6376 = vmatpush3.bf16.msra.mxu1 %v8360_v59  ;;  %6383 = vmatprep.subr.bf16.mxu0 %v8362_v0 }
 0x247   : > { %6405 = vmatprep.subr.bf16.mxu1 %v8365_v49 }
 0x248   : > { %4575 = vmatmul.mubr.bf16.vlgmr.msra.gmra.mrb[48].mxu0 %v9176_v42  ;;  %v8402_v42 = vld [vmem:[#allocation7 + $0x958] sm:$0xff]  }
 0x249   : > { %4615 = vmatmul.mubr.bf16.vlgmr.msra.gmra.mrb[48].mxu1 %v9177_v51  ;;  %6384 = vmatpush3.bf16.msra.mxu0 %v8368_v9  ;;  %9183 = vst [vmem:[#allocation45_spill] sm:$0xff] %v8402_v42  ;;  %v8405_v51 = vld [vmem:[#allocation7 + $0x9d8] sm:$0xff]  }
 0x24a   : > { %6406 = vmatpush3.bf16.msra.mxu1 %v8372_v18  ;;  %6385 = vmatprep.subr.bf16.mxu0 %v8374_v19  ;;  %9184 = vst [vmem:[#allocation46_spill] sm:$0xff] %v8405_v51 }
 0x24b   : > { %6407 = vmatprep.subr.bf16.mxu1 %v8377_v28  ;;  %4654 = vmatprep.mubr.bf16.mxu0 %v9179_v38  ;;  %v8408_v38 = vld [vmem:[#allocation7 + $0x918] sm:$0xff]  }
 0x24c   : > { %4694 = vmatprep.mubr.bf16.mxu1 %v9180_v40  ;;  %9185 = vst [vmem:[#allocation47_spill] sm:$0xff] %v8408_v38  ;;  %v8412_v40 = vld [vmem:[#allocation7 + $0x998] sm:$0xff]  }
 0x24d   : > { %6386 = vmatpush3.bf16.msra.mxu0 %v8382_v27  ;;  %9186 = vst [vmem:[#allocation48_spill] sm:$0xff] %v8412_v40 }
 0x24e   : > { %6408 = vmatpush3.bf16.msra.mxu1 %v8386_v31  ;;  %6387 = vmatprep.subr.bf16.mxu0 %v8388_v33 }
 0x24f   : > { %6409 = vmatprep.subr.bf16.mxu1 %v8391_v35 }
 0x251   : > { %6388 = vmatpush3.bf16.msra.mxu0 %v8396_v24  ;;  %v8448_v24 = vld [vmem:[#allocation7 + $0x9b0] sm:$0xff]  }
 0x252   : > { %6410 = vmatpush3.bf16.msra.mxu1 %v8400_v54  ;;  %6389 = vmatprep.subr.bf16.mxu0 %v8402_v42  ;;  %9197 = vst [vmem:[#allocation59_spill] sm:$0xff] %v8448_v24 }
 0x253   : > { %6411 = vmatprep.subr.bf16.mxu1 %v8405_v51 }
 0x255   : > { %6390 = vmatpush3.bf16.msra.mxu0 %v8408_v38 }
 0x256   : > { %6412 = vmatpush3.bf16.msra.mxu1 %v8412_v40  ;;  %6391 = vmatprep.subr.bf16.mxu0 %v8414_v1  ;;  %v8441_v1 = vld [vmem:[#allocation7 + $0x9f0] sm:$0xff]  }
 0x257   : > { %6413 = vmatprep.subr.bf16.mxu1 %v8417_v61  ;;  %9195 = vst [vmem:[#allocation57_spill] sm:$0xff] %v8441_v1 }
 0x259   : > { %6392 = vmatpush3.bf16.msra.mxu0 %v8420_v15 }
 0x25a   : > { %6414 = vmatpush3.bf16.msra.mxu1 %v8424_v14  ;;  %6393 = vmatprep.subr.bf16.mxu0 %v8426_v5  ;;  %v8444_v14 = vld [vmem:[#allocation7 + $0x930] sm:$0xff]  }
 0x25b   : > { %v6091_v44 = vpop.f32.mrb[24].mxu0  ;;  %6415 = vmatprep.subr.bf16.mxu1 %v8429_v2  ;;  %9196 = vst [vmem:[#allocation58_spill] sm:$0xff] %v8444_v14  ;;  %v8450_v2 = vld [vmem:[#allocation7 + $0x978] sm:$0xff]  }
 0x25c   : > { %v6113_v41 = vpop.f32.mrb[24].mxu1  ;;  %v6092_v61 = vpop.f32.mrb[25].mxu0  ;;  %9198 = vst [vmem:[#allocation60_spill] sm:$0xff] %v8450_v2 }
 0x25d   : > { %v6114_v40 = vpop.f32.mrb[25].mxu1  ;;  %v6093_v38 = vadd.f32 %v6092_v61, %v6091_v44  ;;  %v6094_v51 = vpop.f32.mrb[26].mxu0  ;;  %6394 = vmatpush3.bf16.msra.mxu0 %v8432_v63  ;;  %v8459_v61 = vld [vmem:[#allocation7 + $0x938] sm:$0xff]  }
 0x25e   : > { %v6115_v15 = vadd.f32 %v6114_v40, %v6113_v41  ;;  %v6116_v42 = vpop.f32.mrb[26].mxu1  ;;  %6416 = vmatpush3.bf16.msra.mxu1 %v8436_v47  ;;  %v6095_v5 = vpop.f32.mrb[27].mxu0  ;;  %6395 = vmatprep.subr.bf16.mxu0 %v8438_v46  ;;  %v8454_v41 = vld [vmem:[#allocation7 + $0x9f8] sm:$0xff]   ;;  %9200 = vst [vmem:[#allocation62_spill] sm:$0xff] %v8459_v61  ;;  %v8480_v51 = vld [vmem:[#allocation7 + $0xac8] sm:$0xff]   ;;  %v8551_v46 = vld [vmem:[#allocation7 + $0xab0] sm:$0xff]  }
 0x25f   : > { %v6117_v54 = vpop.f32.mrb[27].mxu1  ;;  %v2998_v35 = vadd.f32 %v6093_v38, %v8353_v56  ;;  %6417 = vmatprep.subr.bf16.mxu1 %v8441_v1  ;;  %9199 = vst [vmem:[#allocation61_spill] sm:$0xff] %v8454_v41  ;;  %v8463_v5 = vld [vmem:[#allocation7 + $0x9b8] sm:$0xff]   ;;  %v8468_v56 = vld [vmem:[#allocation7 + $0xac0] sm:$0xff]   ;;  %v8477_v42 = vld [vmem:[#allocation7 + $0xa48] sm:$0xff]  }
 0x260   : > { %9201 = vst [vmem:[#allocation63_spill] sm:$0xff] %v8463_v5  ;;  %v8465_v54 = vld [vmem:[#allocation7 + $0xa40] sm:$0xff]   ;;  %9203 = vst [vmem:[#allocation65_spill] sm:$0xff] %v8468_v56  ;;  %v9208_v38 = vld [vmem:[#allocation24_spill] sm:$0xff] }
 0x261   : > { %v8456_v44 = vadd.f32 %v6115_v15, %v2998_v35  ;;  %6396 = vmatpush3.bf16.msra.mxu0 %v8444_v14  ;;  %9202 = vst [vmem:[#allocation64_spill] sm:$0xff] %v8465_v54  ;;  %v8471_v15 = vld [vmem:[#allocation7 + $0xa00] sm:$0xff]   ;;  %9206 = vst [vmem:[#allocation68_spill] sm:$0xff] %v8477_v42  ;;  %v8547_v14 = vld [vmem:[#allocation7 + $0xa30] sm:$0xff]  }
 0x262   : > { %6418 = vmatpush3.bf16.msra.mxu1 %v8448_v24  ;;  %6397 = vmatprep.subr.bf16.mxu0 %v8450_v2  ;;  %9204 = vst [vmem:[#allocation66_spill] sm:$0xff] %v8471_v15  ;;  %v8475_v35 = vld [vmem:[#allocation7 + $0xa80] sm:$0xff]   ;;  %9207 = vst [vmem:[#allocation69_spill] sm:$0xff] %v8480_v51 }
 0x263   : > { %6419 = vmatprep.subr.bf16.mxu1 %v8454_v41  ;;  %9205 = vst [vmem:[#allocation67_spill] sm:$0xff] %v8475_v35  ;;  %v9209_v40 = vld [vmem:[#allocation26_spill] sm:$0xff]  ;;  %v9214_v41 = vld [vmem:[#allocation29_spill] sm:$0xff]  ;;  %9231 = vst [vmem:[#allocation86_spill] sm:$0xff] %v8547_v14 }
 0x264   : > { %9232 = vst [vmem:[#allocation87_spill] sm:$0xff] %v8551_v46 }
 0x265   : > { %6398 = vmatpush3.bf16.msra.mxu0 %v8459_v61  ;;  %v8485_v61 = vld [vmem:[#allocation7 + $0xa08] sm:$0xff]  }
 0x266   : > { %6420 = vmatpush3.bf16.msra.mxu1 %v8463_v5  ;;  %6427 = vmatprep.subr.bf16.mxu0 %v8465_v54  ;;  %9210 = vst [vmem:[#allocation70_spill] sm:$0xff] %v8485_v61  ;;  %v8489_v54 = vld [vmem:[#allocation7 + $0xa88] sm:$0xff]   ;;  %v8491_v5 = vld [vmem:[#allocation7 + $0xa50] sm:$0xff]  }
 0x267   : > { %6449 = vmatprep.subr.bf16.mxu1 %v8468_v56  ;;  %9211 = vst [vmem:[#allocation71_spill] sm:$0xff] %v8489_v54  ;;  %9212 = vst [vmem:[#allocation20_spill] sm:$0xff] %v8491_v5  ;;  %v8494_v56 = vld [vmem:[#allocation7 + $0xad0] sm:$0xff]  }
 0x268   : > { %4655 = vmatmul.mubr.bf16.vlgmr.msra.gmra.mrb[52].mxu0 %v9208_v38  ;;  %9213 = vst [vmem:[#allocation21_spill] sm:$0xff] %v8494_v56  ;;  %v9215_v38 = vld [vmem:[#allocation31_spill] sm:$0xff] }
 0x269   : > { %4695 = vmatmul.mubr.bf16.vlgmr.msra.gmra.mrb[52].mxu1 %v9209_v40  ;;  %6428 = vmatpush3.bf16.msra.mxu0 %v8471_v15  ;;  %v8499_v40 = vld [vmem:[#allocation7 + $0xa10] sm:$0xff]  }
 0x26a   : > { %6450 = vmatpush3.bf16.msra.mxu1 %v8475_v35  ;;  %6429 = vmatprep.subr.bf16.mxu0 %v8477_v42  ;;  %9216 = vst [vmem:[#allocation22_spill] sm:$0xff] %v8499_v40  ;;  %v8503_v42 = vld [vmem:[#allocation7 + $0xa90] sm:$0xff]   ;;  %v8505_v35 = vld [vmem:[#allocation7 + $0xa58] sm:$0xff]  }
 0x26b   : > { %6451 = vmatprep.subr.bf16.mxu1 %v8480_v51  ;;  %4734 = vmatprep.mubr.bf16.mxu0 %v9214_v41  ;;  %9217 = vst [vmem:[#allocation23_spill] sm:$0xff] %v8503_v42  ;;  %9218 = vst [vmem:[#allocation25_spill] sm:$0xff] %v8505_v35  ;;  %v8508_v51 = vld [vmem:[#allocation7 + $0xad8] sm:$0xff]  }
 0x26c   : > { %4774 = vmatprep.mubr.bf16.mxu1 %v9215_v38  ;;  %9219 = vst [vmem:[#allocation27_spill] sm:$0xff] %v8508_v51  ;;  %v8511_v41 = vld [vmem:[#allocation7 + $0xa18] sm:$0xff]  }
 0x26d   : > { %6430 = vmatpush3.bf16.msra.mxu0 %v8485_v61  ;;  %9220 = vst [vmem:[#allocation24_spill] sm:$0xff] %v8511_v41  ;;  %v8515_v38 = vld [vmem:[#allocation7 + $0xa98] sm:$0xff]   ;;  %v8544_v61 = vld [vmem:[#allocation7 + $0xaf0] sm:$0xff]  }
 0x26e   : > { %6452 = vmatpush3.bf16.msra.mxu1 %v8489_v54  ;;  %6431 = vmatprep.subr.bf16.mxu0 %v8491_v5  ;;  %9221 = vst [vmem:[#allocation26_spill] sm:$0xff] %v8515_v38  ;;  %v8517_v54 = vld [vmem:[#allocation7 + $0xa60] sm:$0xff]   ;;  %9230 = vst [vmem:[#allocation85_spill] sm:$0xff] %v8544_v61 }
 0x26f   : > { %6453 = vmatprep.subr.bf16.mxu1 %v8494_v56  ;;  %9222 = vst [vmem:[#allocation29_spill] sm:$0xff] %v8517_v54  ;;  %v8520_v5 = vld [vmem:[#allocation7 + $0xae0] sm:$0xff]  }
 0x270   : > { %9223 = vst [vmem:[#allocation31_spill] sm:$0xff] %v8520_v5  ;;  %v8523_v56 = vld [vmem:[#allocation7 + $0xa20] sm:$0xff]  }
 0x271   : > { %6432 = vmatpush3.bf16.msra.mxu0 %v8499_v40  ;;  %9224 = vst [vmem:[#allocation79_spill] sm:$0xff] %v8523_v56  ;;  %v8527_v40 = vld [vmem:[#allocation7 + $0xaa0] sm:$0xff]  }
 0x272   : > { %6454 = vmatpush3.bf16.msra.mxu1 %v8503_v42  ;;  %6433 = vmatprep.subr.bf16.mxu0 %v8505_v35  ;;  %9225 = vst [vmem:[#allocation80_spill] sm:$0xff] %v8527_v40  ;;  %v8529_v42 = vld [vmem:[#allocation7 + $0xa68] sm:$0xff]  }
 0x273   : > { %6455 = vmatprep.subr.bf16.mxu1 %v8508_v51  ;;  %9226 = vst [vmem:[#allocation81_spill] sm:$0xff] %v8529_v42  ;;  %v8532_v35 = vld [vmem:[#allocation7 + $0xae8] sm:$0xff]  }
 0x274   : > { %9227 = vst [vmem:[#allocation82_spill] sm:$0xff] %v8532_v35  ;;  %v8535_v51 = vld [vmem:[#allocation7 + $0xa28] sm:$0xff]  }
 0x275   : > { %6434 = vmatpush3.bf16.msra.mxu0 %v8511_v41  ;;  %v8539_v41 = vld [vmem:[#allocation7 + $0xaa8] sm:$0xff]  }
 0x276   : > { %6456 = vmatpush3.bf16.msra.mxu1 %v8515_v38  ;;  %6435 = vmatprep.subr.bf16.mxu0 %v8517_v54  ;;  %9228 = vst [vmem:[#allocation83_spill] sm:$0xff] %v8539_v41  ;;  %v8541_v38 = vld [vmem:[#allocation7 + $0xa70] sm:$0xff]  }
 0x277   : > { %6457 = vmatprep.subr.bf16.mxu1 %v8520_v5  ;;  %9229 = vst [vmem:[#allocation84_spill] sm:$0xff] %v8541_v38 }
 0x279   : > { %6436 = vmatpush3.bf16.msra.mxu0 %v8523_v56 }
 0x27a   : > { %6458 = vmatpush3.bf16.msra.mxu1 %v8527_v40  ;;  %6437 = vmatprep.subr.bf16.mxu0 %v8529_v42 }
 0x27b   : > { %v6135_v54 = vpop.f32.mrb[28].mxu0  ;;  %6459 = vmatprep.subr.bf16.mxu1 %v8532_v35  ;;  %v8553_v35 = vld [vmem:[#allocation7 + $0xa78] sm:$0xff]  }
 0x27c   : > { %v6157_v5 = vpop.f32.mrb[28].mxu1  ;;  %v6136_v15 = vpop.f32.mrb[29].mxu0  ;;  %9233 = vst [vmem:[#allocation88_spill] sm:$0xff] %v8553_v35 }
 0x27d   : > { %v6137_v2 = vadd.f32 %v6136_v15, %v6135_v54  ;;  %v6158_v24 = vpop.f32.mrb[29].mxu1  ;;  %v6138_v56 = vpop.f32.mrb[30].mxu0  ;;  %6438 = vmatpush3.bf16.msra.mxu0 %v8535_v51 }
 0x27e   : > { %v6159_v40 = vadd.f32 %v6158_v24, %v6157_v5  ;;  %v6160_v42 = vpop.f32.mrb[30].mxu1  ;;  %6460 = vmatpush3.bf16.msra.mxu1 %v8539_v41  ;;  %v6139_v1 = vpop.f32.mrb[31].mxu0  ;;  %6439 = vmatprep.subr.bf16.mxu0 %v8541_v38  ;;  %v8557_v56 = vld [vmem:[#allocation7 + $0xaf8] sm:$0xff]   ;;  %v8568_v5 = vld [vmem:[#allocation7 + $0xb40] sm:$0xff]   ;;  %v8654_v38 = vld [vmem:[#allocation7 + $0xbb0] sm:$0xff]  }
 0x27f   : > { %v3078_v47 = vadd.f32 %v6137_v2, %v8456_v44  ;;  %v6161_v54 = vpop.f32.mrb[31].mxu1  ;;  %6461 = vmatprep.subr.bf16.mxu1 %v8544_v61  ;;  %9234 = vst [vmem:[#allocation89_spill] sm:$0xff] %v8557_v56  ;;  %v8562_v24 = vld [vmem:[#allocation7 + $0xa38] sm:$0xff]   ;;  %9238 = vst [vmem:[#allocation93_spill] sm:$0xff] %v8568_v5  ;;  %v8571_v2 = vld [vmem:[#allocation7 + $0xbc0] sm:$0xff]  }
 0x280   : > { %9236 = vst [vmem:[#allocation91_spill] sm:$0xff] %v8562_v24  ;;  %v8566_v1 = vld [vmem:[#allocation7 + $0xab8] sm:$0xff]   ;;  %9239 = vst [vmem:[#allocation94_spill] sm:$0xff] %v8571_v2  ;;  %v8578_v44 = vld [vmem:[#allocation7 + $0xb80] sm:$0xff]  }
 0x281   : > { %v8559_v15 = vadd.f32 %v6159_v40, %v3078_v47  ;;  %6440 = vmatpush3.bf16.msra.mxu0 %v8547_v14  ;;  %9237 = vst [vmem:[#allocation92_spill] sm:$0xff] %v8566_v1  ;;  %v8574_v47 = vld [vmem:[#allocation7 + $0xb00] sm:$0xff]   ;;  %9241 = vst [vmem:[#allocation96_spill] sm:$0xff] %v8578_v44  ;;  %v8580_v42 = vld [vmem:[#allocation7 + $0xb48] sm:$0xff]  }
 0x282   : > { %6462 = vmatpush3.bf16.msra.mxu1 %v8551_v46  ;;  %6441 = vmatprep.subr.bf16.mxu0 %v8553_v35  ;;  %9240 = vst [vmem:[#allocation95_spill] sm:$0xff] %v8574_v47  ;;  %9242 = vst [vmem:[#allocation97_spill] sm:$0xff] %v8580_v42  ;;  %v8583_v40 = vld [vmem:[#allocation7 + $0xbc8] sm:$0xff]   ;;  %v8650_v14 = vld [vmem:[#allocation7 + $0xb30] sm:$0xff]  }
 0x283   : > { %9235 = vst [vmem:[#allocation90_spill] sm:$0xff] %v8559_v15  ;;  %6463 = vmatprep.subr.bf16.mxu1 %v8557_v56  ;;  %9243 = vst [vmem:[#allocation98_spill] sm:$0xff] %v8583_v40  ;;  %v9244_v54 = vld [vmem:[#allocation28_spill] sm:$0xff]  ;;  %v9245_v56 = vld [vmem:[#allocation30_spill] sm:$0xff] }
 0x284   : > { %v9250_v15 = vld [vmem:[#allocation33_spill] sm:$0xff] }
 0x285   : > { %6442 = vmatpush3.bf16.msra.mxu0 %v8562_v24  ;;  %v8588_v24 = vld [vmem:[#allocation7 + $0xb08] sm:$0xff]  }
 0x286   : > { %6464 = vmatpush3.bf16.msra.mxu1 %v8566_v1  ;;  %6471 = vmatprep.subr.bf16.mxu0 %v8568_v5  ;;  %9246 = vst [vmem:[#allocation28_spill] sm:$0xff] %v8588_v24  ;;  %v8592_v5 = vld [vmem:[#allocation7 + $0xb88] sm:$0xff]   ;;  %v8594_v1 = vld [vmem:[#allocation7 + $0xb50] sm:$0xff]  }
 0x287   : > { %6493 = vmatprep.subr.bf16.mxu1 %v8571_v2  ;;  %9247 = vst [vmem:[#allocation30_spill] sm:$0xff] %v8592_v5  ;;  %9248 = vst [vmem:[#allocation99_spill] sm:$0xff] %v8594_v1  ;;  %v8597_v2 = vld [vmem:[#allocation7 + $0xbd0] sm:$0xff]  }
 0x288   : > { %4735 = vmatmul.mubr.bf16.vlgmr.msra.gmra.mrb[56].mxu0 %v9244_v54  ;;  %9249 = vst [vmem:[#allocation100_spill] sm:$0xff] %v8597_v2  ;;  %v9251_v54 = vld [vmem:[#allocation35_spill] sm:$0xff] }
 0x289   : > { %4775 = vmatmul.mubr.bf16.vlgmr.msra.gmra.mrb[56].mxu1 %v9245_v56  ;;  %6472 = vmatpush3.bf16.msra.mxu0 %v8574_v47  ;;  %v8602_v56 = vld [vmem:[#allocation7 + $0xb10] sm:$0xff]  }
 0x28a   : > { %6494 = vmatpush3.bf16.msra.mxu1 %v8578_v44  ;;  %6473 = vmatprep.subr.bf16.mxu0 %v8580_v42  ;;  %9252 = vst [vmem:[#allocation33_spill] sm:$0xff] %v8602_v56  ;;  %v8606_v42 = vld [vmem:[#allocation7 + $0xb90] sm:$0xff]   ;;  %v8608_v44 = vld [vmem:[#allocation7 + $0xb58] sm:$0xff]  }
 0x28b   : > { %6495 = vmatprep.subr.bf16.mxu1 %v8583_v40  ;;  %4814 = vmatprep.mubr.bf16.mxu0 %v9250_v15  ;;  %9253 = vst [vmem:[#allocation35_spill] sm:$0xff] %v8606_v42  ;;  %9254 = vst [vmem:[#allocation101_spill] sm:$0xff] %v8608_v44  ;;  %v8611_v40 = vld [vmem:[#allocation7 + $0xbd8] sm:$0xff]  }
 0x28c   : > { %4854 = vmatprep.mubr.bf16.mxu1 %v9251_v54  ;;  %9255 = vst [vmem:[#allocation102_spill] sm:$0xff] %v8611_v40  ;;  %v8614_v15 = vld [vmem:[#allocation7 + $0xb18] sm:$0xff]  }
 0x28d   : > { %6474 = vmatpush3.bf16.msra.mxu0 %v8588_v24  ;;  %9256 = vst [vmem:[#allocation103_spill] sm:$0xff] %v8614_v15  ;;  %v8618_v54 = vld [vmem:[#allocation7 + $0xb98] sm:$0xff]   ;;  %v8647_v24 = vld [vmem:[#allocation7 + $0xbf0] sm:$0xff]  }
 0x28e   : > { %6496 = vmatpush3.bf16.msra.mxu1 %v8592_v5  ;;  %6475 = vmatprep.subr.bf16.mxu0 %v8594_v1  ;;  %9257 = vst [vmem:[#allocation104_spill] sm:$0xff] %v8618_v54  ;;  %v8620_v5 = vld [vmem:[#allocation7 + $0xb60] sm:$0xff]  }
 0x28f   : > { %6497 = vmatprep.subr.bf16.mxu1 %v8597_v2  ;;  %9258 = vst [vmem:[#allocation105_spill] sm:$0xff] %v8620_v5  ;;  %v8623_v1 = vld [vmem:[#allocation7 + $0xbe0] sm:$0xff]  }
 0x290   : > { %9259 = vst [vmem:[#allocation106_spill] sm:$0xff] %v8623_v1  ;;  %v8626_v2 = vld [vmem:[#allocation7 + $0xb20] sm:$0xff]  }
 0x291   : > { %6476 = vmatpush3.bf16.msra.mxu0 %v8602_v56  ;;  %9260 = vst [vmem:[#allocation107_spill] sm:$0xff] %v8626_v2  ;;  %v8630_v56 = vld [vmem:[#allocation7 + $0xba0] sm:$0xff]  }
 0x292   : > { %6498 = vmatpush3.bf16.msra.mxu1 %v8606_v42  ;;  %6477 = vmatprep.subr.bf16.mxu0 %v8608_v44  ;;  %9261 = vst [vmem:[#allocation108_spill] sm:$0xff] %v8630_v56  ;;  %v8632_v42 = vld [vmem:[#allocation7 + $0xb68] sm:$0xff]  }
 0x293   : > { %6499 = vmatprep.subr.bf16.mxu1 %v8611_v40  ;;  %9262 = vst [vmem:[#allocation109_spill] sm:$0xff] %v8632_v42  ;;  %v8635_v44 = vld [vmem:[#allocation7 + $0xbe8] sm:$0xff]  }
 0x294   : > { %9263 = vst [vmem:[#allocation110_spill] sm:$0xff] %v8635_v44  ;;  %v8638_v40 = vld [vmem:[#allocation7 + $0xb28] sm:$0xff]  }
 0x295   : > { %6478 = vmatpush3.bf16.msra.mxu0 %v8614_v15  ;;  %v8642_v15 = vld [vmem:[#allocation7 + $0xba8] sm:$0xff]  }
 0x296   : > { %6500 = vmatpush3.bf16.msra.mxu1 %v8618_v54  ;;  %6479 = vmatprep.subr.bf16.mxu0 %v8620_v5  ;;  %v8644_v54 = vld [vmem:[#allocation7 + $0xb70] sm:$0xff]  }
 0x297   : > { %6501 = vmatprep.subr.bf16.mxu1 %v8623_v1 }
 0x299   : > { %6480 = vmatpush3.bf16.msra.mxu0 %v8626_v2 }
 0x29a   : > { %6502 = vmatpush3.bf16.msra.mxu1 %v8630_v56  ;;  %6481 = vmatprep.subr.bf16.mxu0 %v8632_v42 }
 0x29b   : > { %v6179_v5 = vpop.f32.mrb[32].mxu0  ;;  %6503 = vmatprep.subr.bf16.mxu1 %v8635_v44  ;;  %v8656_v44 = vld [vmem:[#allocation7 + $0xb78] sm:$0xff]  }
 0x29c   : > { %v6201_v1 = vpop.f32.mrb[32].mxu1  ;;  %v6180_v47 = vpop.f32.mrb[33].mxu0 }
 0x29d   : > { %v6181_v35 = vadd.f32 %v6180_v47, %v6179_v5  ;;  %v6202_v46 = vpop.f32.mrb[33].mxu1  ;;  %v6182_v2 = vpop.f32.mrb[34].mxu0  ;;  %6482 = vmatpush3.bf16.msra.mxu0 %v8638_v40  ;;  %v8659_v5 = vld [vmem:[#allocation7 + $0xbf8] sm:$0xff]  }
 0x29e   : > { %v6203_v56 = vadd.f32 %v6202_v46, %v6201_v1  ;;  %v6204_v42 = vpop.f32.mrb[34].mxu1  ;;  %6504 = vmatpush3.bf16.msra.mxu1 %v8642_v15  ;;  %v6183_v61 = vpop.f32.mrb[35].mxu0  ;;  %6483 = vmatprep.subr.bf16.mxu0 %v8644_v54  ;;  %v8662_v47 = vld [vmem:[#allocation7 + $0xb38] sm:$0xff]  }
 0x29f   : > { %v6205_v41 = vpop.f32.mrb[35].mxu1  ;;  %6505 = vmatprep.subr.bf16.mxu1 %v8647_v24  ;;  %v8666_v46 = vld [vmem:[#allocation7 + $0xbb8] sm:$0xff]   ;;  %v9264_v61 = vld [vmem:[#allocation32_spill] sm:$0xff] }
 0x2a0   : > { %v3262_v2 = vadd.f32 %v6203_v56, %v6181_v35  ;;  %v9265_v35 = vld [vmem:[#allocation34_spill] sm:$0xff]  ;;  %v9266_v41 = vld [vmem:[#allocation72_spill] sm:$0xff]  ;;  %v9267_v1 = vld [vmem:[#allocation73_spill] sm:$0xff] }
 0x2a1   : > { %6484 = vmatpush3.bf16.msra.mxu0 %v8650_v14  ;;  %v9290_v42 = vld [vmem:[#allocation64_spill] sm:$0xff]  ;;  %v9291_v56 = vld [vmem:[#allocation65_spill] sm:$0xff] }
 0x2a2   : > { %6506 = vmatpush3.bf16.msra.mxu1 %v8654_v38  ;;  %6485 = vmatprep.subr.bf16.mxu0 %v8656_v44 }
 0x2a3   : > { %6507 = vmatprep.subr.bf16.mxu1 %v8659_v5 }
 0x2a5   : > { %6486 = vmatpush3.bf16.msra.mxu0 %v8662_v47 }
 0x2a6   : > { %6508 = vmatpush3.bf16.msra.mxu1 %v8666_v46  ;;  %6515 = vmatprep.subr.bf16.mxu0 %v8255_v58 }
 0x2a7   : > { %6537 = vmatprep.subr.bf16.mxu1 %v8258_v60 }
 0x2a8   : > { %4815 = vmatmul.mubr.bf16.vlgmr.msra.gmra.mrb[60].mxu0 %v9264_v61  ;;  %v9293_v61 = vld [vmem:[#allocation75_spill] sm:$0xff] }
 0x2a9   : > { %4855 = vmatmul.mubr.bf16.vlgmr.msra.gmra.mrb[60].mxu1 %v9265_v35  ;;  %6516 = vmatpush3.bf16.msra.mxu0 %v8262_v62  ;;  %v9294_v35 = vld [vmem:[#allocation66_spill] sm:$0xff] }
 0x2aa   : > { %6538 = vmatpush3.bf16.msra.mxu1 %v8267_v4  ;;  %6517 = vmatprep.subr.bf16.mxu0 %v8271_v12 }
 0x2ab   : > { %6539 = vmatprep.subr.bf16.mxu1 %v8274_v13  ;;  %4894 = vmatprep.mubr.bf16.mxu0 %v9266_v41  ;;  %v9295_v41 = vld [vmem:[#allocation67_spill] sm:$0xff] }
 0x2ac   : > { %4934 = vmatprep.mubr.bf16.mxu1 %v9267_v1  ;;  %v9296_v1 = vld [vmem:[#allocation68_spill] sm:$0xff] }
 0x2ad   : > { %6518 = vmatpush3.bf16.msra.mxu0 %v8279_v3 }
 0x2ae   : > { %6540 = vmatpush3.bf16.msra.mxu1 %v8283_v6  ;;  %6519 = vmatprep.subr.bf16.mxu0 %v8285_v16 }
 0x2af   : > { %6541 = vmatprep.subr.bf16.mxu1 %v8288_v17 }
 0x2b1   : > { %6520 = vmatpush3.bf16.msra.mxu0 %v8293_v20 }
 0x2b2   : > { %6542 = vmatpush3.bf16.msra.mxu1 %v8297_v21  ;;  %6521 = vmatprep.subr.bf16.mxu0 %v8299_v22  ;;  %v9270_v22 = vld [vmem:[#allocation44_spill] sm:$0xff] }
 0x2b3   : > { %6543 = vmatprep.subr.bf16.mxu1 %v8302_v23  ;;  %v9271_v23 = vld [vmem:[#allocation45_spill] sm:$0xff] }
 0x2b5   : > { %6522 = vmatpush3.bf16.msra.mxu0 %v8305_v43  ;;  %v9272_v43 = vld [vmem:[#allocation46_spill] sm:$0xff] }
 0x2b6   : > { %6544 = vmatpush3.bf16.msra.mxu1 %v8309_v36  ;;  %6523 = vmatprep.subr.bf16.mxu0 %v8311_v11  ;;  %v9273_v36 = vld [vmem:[#allocation47_spill] sm:$0xff]  ;;  %v9276_v11 = vld [vmem:[#allocation50_spill] sm:$0xff] }
 0x2b7   : > { %6545 = vmatprep.subr.bf16.mxu1 %v8314_v8  ;;  %v9277_v8 = vld [vmem:[#allocation51_spill] sm:$0xff] }
 0x2b9   : > { %6524 = vmatpush3.bf16.msra.mxu0 %v8317_v34  ;;  %v9278_v34 = vld [vmem:[#allocation52_spill] sm:$0xff] }
 0x2ba   : > { %6546 = vmatpush3.bf16.msra.mxu1 %v8321_v30  ;;  %6525 = vmatprep.subr.bf16.mxu0 %v8323_v52  ;;  %v9279_v30 = vld [vmem:[#allocation53_spill] sm:$0xff] }
 0x2bb   : > { %v6223_v58 = vpop.f32.mrb[36].mxu0  ;;  %6547 = vmatprep.subr.bf16.mxu1 %v8326_v32  ;;  %v9280_v32 = vld [vmem:[#allocation54_spill] sm:$0xff] }
 0x2bc   : > { %v6245_v60 = vpop.f32.mrb[36].mxu1  ;;  %v6224_v62 = vpop.f32.mrb[37].mxu0 }
 0x2bd   : > { %v6225_v4 = vadd.f32 %v6224_v62, %v6223_v58  ;;  %v6246_v12 = vpop.f32.mrb[37].mxu1  ;;  %v6226_v13 = vpop.f32.mrb[38].mxu0  ;;  %6526 = vmatpush3.bf16.msra.mxu0 %v8329_v7  ;;  %v9297_v58 = vld [vmem:[#allocation69_spill] sm:$0xff] }
 0x2be   : > { %v6247_v3 = vadd.f32 %v6246_v12, %v6245_v60  ;;  %v6248_v6 = vpop.f32.mrb[38].mxu1  ;;  %6548 = vmatpush3.bf16.msra.mxu1 %v8333_v29  ;;  %v6227_v16 = vpop.f32.mrb[39].mxu0  ;;  %6527 = vmatprep.subr.bf16.mxu0 %v8335_v37  ;;  %v9298_v60 = vld [vmem:[#allocation76_spill] sm:$0xff]  ;;  %v9299_v62 = vld [vmem:[#allocation77_spill] sm:$0xff]  ;;  %v9301_v12 = vld [vmem:[#allocation71_spill] sm:$0xff] }
 0x2bf   : > { %v3302_v17 = vadd.f32 %v6225_v4, %v3262_v2  ;;  %v6249_v20 = vpop.f32.mrb[39].mxu1  ;;  %6549 = vmatprep.subr.bf16.mxu1 %v8338_v25  ;;  %v9292_v2 = vld [vmem:[#allocation74_spill] sm:$0xff]  ;;  %v9302_v13 = vld [vmem:[#allocation20_spill] sm:$0xff]  ;;  %v9305_v16 = vld [vmem:[#allocation23_spill] sm:$0xff] }
 0x2c0   : > { %v9300_v4 = vld [vmem:[#allocation70_spill] sm:$0xff]  ;;  %v9307_v20 = vld [vmem:[#allocation27_spill] sm:$0xff] }
 0x2c1   : > { %v3342_v21 = vadd.f32 %v6247_v3, %v3302_v17  ;;  %6528 = vmatpush3.bf16.msra.mxu0 %v8341_v39  ;;  %v9303_v3 = vld [vmem:[#allocation21_spill] sm:$0xff]  ;;  %v9304_v6 = vld [vmem:[#allocation22_spill] sm:$0xff] }
 0x2c2   : > { %6550 = vmatpush3.bf16.msra.mxu1 %v8345_v45  ;;  %6529 = vmatprep.subr.bf16.mxu0 %v8347_v48  ;;  %v9306_v17 = vld [vmem:[#allocation25_spill] sm:$0xff] }
 0x2c3   : > { %6551 = vmatprep.subr.bf16.mxu1 %v8351_v55  ;;  %v9281_v55 = vld [vmem:[#allocation55_spill] sm:$0xff] }
 0x2c5   : > { %6530 = vmatpush3.bf16.msra.mxu0 %v8356_v57 }
 0x2c6   : > { %6552 = vmatpush3.bf16.msra.mxu1 %v8360_v59  ;;  %6559 = vmatprep.subr.bf16.mxu0 %v8362_v0  ;;  %v9282_v59 = vld [vmem:[#allocation56_spill] sm:$0xff] }
 0x2c7   : > { %6581 = vmatprep.subr.bf16.mxu1 %v8365_v49 }
 0x2c8   : > { %4895 = vmatmul.mubr.bf16.vlgmr.msra.gmra.mrb[64].mxu0 %v8117_v26  ;;  %v9268_v26 = vld [vmem:[#allocation42_spill] sm:$0xff] }
 0x2c9   : > { %4935 = vmatmul.mubr.bf16.vlgmr.msra.gmra.mrb[64].mxu1 %v8124_v50  ;;  %6560 = vmatpush3.bf16.msra.mxu0 %v8368_v9  ;;  %v9269_v50 = vld [vmem:[#allocation43_spill] sm:$0xff]  ;;  %v9283_v9 = vld [vmem:[#allocation57_spill] sm:$0xff] }
 0x2ca   : > { %6582 = vmatpush3.bf16.msra.mxu1 %v8372_v18  ;;  %6561 = vmatprep.subr.bf16.mxu0 %v8374_v19  ;;  %v9284_v19 = vld [vmem:[#allocation58_spill] sm:$0xff] }
 0x2cb   : > { %6583 = vmatprep.subr.bf16.mxu1 %v8377_v28  ;;  %4974 = vmatprep.mubr.bf16.mxu0 %v8131_v53  ;;  %v9274_v53 = vld [vmem:[#allocation48_spill] sm:$0xff]  ;;  %v9285_v28 = vld [vmem:[#allocation59_spill] sm:$0xff] }
 0x2cc   : > { %5014 = vmatprep.mubr.bf16.mxu1 %v8136_v10  ;;  %v9275_v10 = vld [vmem:[#allocation49_spill] sm:$0xff] }
 0x2cd   : > { %6562 = vmatpush3.bf16.msra.mxu0 %v8382_v27  ;;  %v9286_v27 = vld [vmem:[#allocation60_spill] sm:$0xff] }
 0x2ce   : > { %6584 = vmatpush3.bf16.msra.mxu1 %v8386_v31  ;;  %6563 = vmatprep.subr.bf16.mxu0 %v8388_v33  ;;  %v9287_v31 = vld [vmem:[#allocation61_spill] sm:$0xff]  ;;  %v9289_v33 = vld [vmem:[#allocation63_spill] sm:$0xff] }
 0x2cf   : > { %6585 = vmatprep.subr.bf16.mxu1 %v9268_v26  ;;  %v9309_v26 = vld [vmem:[#allocation26_spill] sm:$0xff] }
 0x2d1   : > { %6564 = vmatpush3.bf16.msra.mxu0 %v9269_v50  ;;  %v9310_v50 = vld [vmem:[#allocation29_spill] sm:$0xff] }
 0x2d2   : > { %6586 = vmatpush3.bf16.msra.mxu1 %v9270_v22  ;;  %6565 = vmatprep.subr.bf16.mxu0 %v9271_v23  ;;  %v9311_v22 = vld [vmem:[#allocation31_spill] sm:$0xff]  ;;  %v360_v23 = vlaneseq }
 0x2d3   : > { %6587 = vmatprep.subr.bf16.mxu1 %v9272_v43  ;;  %v9312_v43 = vld [vmem:[#allocation79_spill] sm:$0xff] }
 0x2d5   : > { %6566 = vmatpush3.bf16.msra.mxu0 %v9273_v36  ;;  %v9313_v36 = vld [vmem:[#allocation80_spill] sm:$0xff] }
 0x2d6   : > { %6588 = vmatpush3.bf16.msra.mxu1 %v9274_v53  ;;  %6567 = vmatprep.subr.bf16.mxu0 %v9275_v10  ;;  %v9314_v53 = vld [vmem:[#allocation81_spill] sm:$0xff] }
 0x2d7   : > { %6589 = vmatprep.subr.bf16.mxu1 %v9276_v11  ;;  %v8768_v11 = vshrl.u32 %v360_v23, 7  ;;  %v9343_v23 = vld [vmem:[#allocation101_spill] sm:$0xff] }
 0x2d9   : > { %6568 = vmatpush3.bf16.msra.mxu0 %v9277_v8  ;;  %v9315_v8 = vld [vmem:[#allocation82_spill] sm:$0xff]  ;;  %vm3507_vm0 = vcmp.eq.s32.totalorder %v8768_v11, 0  ;;  %vm5182_vm1 = vcmp.eq.s32.totalorder %v8768_v11, 7 }
 0x2da   : > { %6590 = vmatpush3.bf16.msra.mxu1 %v9278_v34  ;;  %6569 = vmatprep.subr.bf16.mxu0 %v9279_v30 }
 0x2db   : > { %v6267_v52 = vpop.f32.mrb[40].mxu0  ;;  %6591 = vmatprep.subr.bf16.mxu1 %v9280_v32 }
 0x2dc   : > { %v6289_v7 = vpop.f32.mrb[40].mxu1  ;;  %v6268_v29 = vpop.f32.mrb[41].mxu0 }
 0x2dd   : > { %v6269_v37 = vadd.f32 %v6268_v29, %v6267_v52  ;;  %v6290_v25 = vpop.f32.mrb[41].mxu1  ;;  %v6270_v39 = vpop.f32.mrb[42].mxu0  ;;  %6570 = vmatpush3.bf16.msra.mxu0 %v8432_v63  ;;  %v9288_v63 = vld [vmem:[#allocation62_spill] sm:$0xff] }
 0x2de   : > { %v6291_v45 = vadd.f32 %v6290_v25, %v6289_v7  ;;  %v6292_v48 = vpop.f32.mrb[42].mxu1  ;;  %6592 = vmatpush3.bf16.msra.mxu1 %v9281_v55  ;;  %v6271_v57 = vpop.f32.mrb[43].mxu0  ;;  %6571 = vmatprep.subr.bf16.mxu0 %v9282_v59  ;;  %v9316_v25 = vld [vmem:[#allocation83_spill] sm:$0xff]  ;;  %v3513_v55 = vsub.s32 0, %v8768_v11  ;;  %v9318_v59 = vld [vmem:[#allocation85_spill] sm:$0xff] }
 0x2df   : > { %v3382_v0 = vadd.f32 %v6269_v37, %v3342_v21  ;;  %v6293_v49 = vpop.f32.mrb[43].mxu1  ;;  %6593 = vmatprep.subr.bf16.mxu1 %v9283_v9  ;;  %v9308_v21 = vld [vmem:[#allocation24_spill] sm:$0xff]  ;;  %v9319_v9 = vld [vmem:[#allocation86_spill] sm:$0xff] }
 0x2e1   : > { %v3422_v18 = vadd.f32 %v6291_v45, %v3382_v0  ;;  %6572 = vmatpush3.bf16.msra.mxu0 %v9284_v19  ;;  %v9317_v45 = vld [vmem:[#allocation84_spill] sm:$0xff]  ;;  %v5533_v0 = vld [vmem:[#allocation8] ss:$0 sm:$0xff] }
 0x2e2   : > { %6594 = vmatpush3.bf16.msra.mxu1 %v9285_v28  ;;  %6573 = vmatprep.subr.bf16.mxu0 %v9286_v27  ;;  %v9321_v19 = vld [vmem:[#allocation88_spill] sm:$0xff]  ;;  %v9322_v28 = vld [vmem:[#allocation90_spill] sm:$0xff] }
 0x2e3   : > { %6595 = vmatprep.subr.bf16.mxu1 %v9287_v31  ;;  %v9323_v31 = vld [vmem:[#allocation89_spill] sm:$0xff] }
 0x2e5   : > { %6574 = vmatpush3.bf16.msra.mxu0 %v9288_v63  ;;  %v9324_v63 = vld [vmem:[#allocation78_spill] sm:$0xff] }
 0x2e6   : > { %6596 = vmatpush3.bf16.msra.mxu1 %v9289_v33  ;;  %6603 = vmatprep.subr.bf16.mxu0 %v9290_v42  ;;  %v1778_v33 = vadd.f32 %v5533_v0, %v9324_v63  ;;  %v7497_v42 = vmov 0  }
 0x2e7   : > { %6625 = vmatprep.subr.bf16.mxu1 %v9291_v56  ;;  %6798 = vset.pattern.permute.xlu0 %v7497_v42  ;;  %v9325_v56 = vld [vmem:[#allocation91_spill] sm:$0xff] }
 0x2e8   : > { %4975 = vmatmul.mubr.bf16.vlgmr.msra.gmra.mrb[68].mxu0 %v9292_v2 }
 0x2e9   : > { %5015 = vmatmul.mubr.bf16.vlgmr.msra.gmra.mrb[68].mxu1 %v9293_v61  ;;  %6604 = vmatpush3.bf16.msra.mxu0 %v9294_v35  ;;  %v9326_v61 = vld [vmem:[#allocation92_spill] sm:$0xff]  ;;  %v9327_v35 = vld [vmem:[#allocation93_spill] sm:$0xff] }
 0x2ea   : > { %6626 = vmatpush3.bf16.msra.mxu1 %v9295_v41  ;;  %6605 = vmatprep.subr.bf16.mxu0 %v9296_v1  ;;  %v9328_v1 = vld [vmem:[#allocation94_spill] sm:$0xff] }
 0x2eb   : > { %6627 = vmatprep.subr.bf16.mxu1 %v9297_v58  ;;  %5054 = vmatprep.mubr.bf16.mxu0 %v9298_v60  ;;  %v9329_v58 = vld [vmem:[#allocation36_spill] sm:$0xff]  ;;  %v9330_v60 = vld [vmem:[#allocation37_spill] sm:$0xff] }
 0x2ec   : > { %5094 = vmatprep.mubr.bf16.mxu1 %v9299_v62  ;;  %v9331_v62 = vld [vmem:[#allocation95_spill] sm:$0xff] }
 0x2ed   : > { %6606 = vmatpush3.bf16.msra.mxu0 %v9300_v4  ;;  %v9332_v4 = vld [vmem:[#allocation96_spill] sm:$0xff] }
 0x2ee   : > { %6628 = vmatpush3.bf16.msra.mxu1 %v9301_v12  ;;  %6607 = vmatprep.subr.bf16.mxu0 %v9302_v13  ;;  %v9333_v12 = vld [vmem:[#allocation97_spill] sm:$0xff]  ;;  %v5193_v13 = vld [vmem:[%s358_s14] sm:$0xff] }
 0x2ef   : > { %6629 = vmatprep.subr.bf16.mxu1 %v9303_v3  ;;  %v9334_v3 = vld [vmem:[#allocation98_spill] sm:$0xff]  ;;  %5196 = vperm.xlu0 %6798, %v5193_v13  }
 0x2f1   : > { %6608 = vmatpush3.bf16.msra.mxu0 %v9304_v6  ;;  %v9335_v6 = vld [vmem:[#allocation38_spill] sm:$0xff] }
 0x2f2   : > { %6630 = vmatpush3.bf16.msra.mxu1 %v9305_v16  ;;  %6609 = vmatprep.subr.bf16.mxu0 %v9306_v17  ;;  %v9336_v16 = vld [vmem:[#allocation39_spill] sm:$0xff]  ;;  %v9337_v17 = vld [vmem:[#allocation28_spill] sm:$0xff] }
 0x2f3   : > { %6631 = vmatprep.subr.bf16.mxu1 %v9307_v20  ;;  %v9338_v20 = vld [vmem:[#allocation30_spill] sm:$0xff] }
 0x2f5   : > { %6610 = vmatpush3.bf16.msra.mxu0 %v9308_v21  ;;  %v9339_v21 = vld [vmem:[#allocation99_spill] sm:$0xff] }
 0x2f6   : > { %6632 = vmatpush3.bf16.msra.mxu1 %v9309_v26  ;;  %6611 = vmatprep.subr.bf16.mxu0 %v9310_v50  ;;  %v9340_v26 = vld [vmem:[#allocation100_spill] sm:$0xff]  ;;  %v9341_v50 = vld [vmem:[#allocation33_spill] sm:$0xff] }
 0x2f7   : > { %6633 = vmatprep.subr.bf16.mxu1 %v9311_v22  ;;  %v9342_v22 = vld [vmem:[#allocation35_spill] sm:$0xff] }
 0x2f9   : > { %6612 = vmatpush3.bf16.msra.mxu0 %v9312_v43  ;;  %v9344_v43 = vld [vmem:[#allocation102_spill] sm:$0xff] }
 0x2fa   : > { %6634 = vmatpush3.bf16.msra.mxu1 %v9313_v36  ;;  %6613 = vmatprep.subr.bf16.mxu0 %v9314_v53  ;;  %v9345_v36 = vld [vmem:[#allocation103_spill] sm:$0xff]  ;;  %v9346_v53 = vld [vmem:[#allocation104_spill] sm:$0xff] }
 0x2fb   : > { %v6311_v10 = vpop.f32.mrb[44].mxu0  ;;  %6635 = vmatprep.subr.bf16.mxu1 %v9315_v8  ;;  %v9348_v8 = vld [vmem:[#allocation106_spill] sm:$0xff] }
 0x2fc   : > { %v6333_v34 = vpop.f32.mrb[44].mxu1  ;;  %v6312_v30 = vpop.f32.mrb[45].mxu0 }
 0x2fd   : > { %v6313_v52 = vadd.f32 %v6312_v30, %v6311_v10  ;;  %v6334_v32 = vpop.f32.mrb[45].mxu1  ;;  %v6314_v7 = vpop.f32.mrb[46].mxu0  ;;  %6614 = vmatpush3.bf16.msra.mxu0 %v8535_v51  ;;  %v9320_v51 = vld [vmem:[#allocation87_spill] sm:$0xff]  ;;  %v9347_v10 = vld [vmem:[#allocation105_spill] sm:$0xff]  ;;  %v9350_v30 = vld [vmem:[#allocation108_spill] sm:$0xff] }
 0x2fe   : > { %v6335_v29 = vadd.f32 %v6334_v32, %v6333_v34  ;;  %v6336_v37 = vpop.f32.mrb[46].mxu1  ;;  %6636 = vmatpush3.bf16.msra.mxu1 %v9316_v25  ;;  %v6315_v39 = vpop.f32.mrb[47].mxu0  ;;  %6615 = vmatprep.subr.bf16.mxu0 %v9317_v45  ;;  %v9349_v34 = vld [vmem:[#allocation107_spill] sm:$0xff]  ;;  %v9352_v7 = vld [vmem:[#allocation110_spill] sm:$0xff] }
 0x2ff   : > { %v3462_v48 = vadd.f32 %v6313_v52, %v3422_v18  ;;  %v6337_v57 = vpop.f32.mrb[47].mxu1  ;;  %6637 = vmatprep.subr.bf16.mxu1 %v9318_v59  ;;  %v3508_v18 = vrot.slane %v9322_v28, 7  ;;  %v9351_v52 = vld [vmem:[#allocation109_spill] sm:$0xff] }
 0x301   : > { %v3502_v49 = vadd.f32 %v6335_v29, %v3462_v48  ;;  %6616 = vmatpush3.bf16.msra.mxu0 %v9319_v9 }
 0x302   : > { %6638 = vmatpush3.bf16.msra.mxu1 %v9320_v51  ;;  %6617 = vmatprep.subr.bf16.mxu0 %v9321_v19 }
 0x303   : > { %v3514_v27 = vrot.slane %v3502_v49, %v3513_v55  ;;  %6639 = vmatprep.subr.bf16.mxu1 %v9323_v31 }
 0x305   : > { %6618 = vmatpush3.bf16.msra.mxu0 %v9325_v56  ;;  %v3515_v2 = vsel %vm3507_vm0, %v3514_v27, %v3508_v18 }
 0x306   : > { %6640 = vmatpush3.bf16.msra.mxu1 %v9326_v61  ;;  %6647 = vmatprep.subr.bf16.mxu0 %v9327_v35  ;;  %v8790_v41 = vadd.f32 %v3515_v2, %v1778_v33 }
 0x307   : > { %6669 = vmatprep.subr.bf16.mxu1 %v9328_v1 }
 0x308   : > { %5055 = vmatmul.mubr.bf16.vlgmr.msra.gmra.mrb[72].mxu0 %v9329_v58 }
 0x309   : > { %5095 = vmatmul.mubr.bf16.vlgmr.msra.gmra.mrb[72].mxu1 %v9330_v60  ;;  %6648 = vmatpush3.bf16.msra.mxu0 %v9331_v62 }
 0x30a   : > { %6670 = vmatpush3.bf16.msra.mxu1 %v9332_v4  ;;  %6649 = vmatprep.subr.bf16.mxu0 %v9333_v12 }
 0x30b   : > { %6671 = vmatprep.subr.bf16.mxu1 %v9334_v3  ;;  %5134 = vmatprep.mubr.bf16.mxu0 %v9335_v6 }
 0x30c   : > { %5174 = vmatprep.mubr.bf16.mxu1 %v9336_v16 }
 0x30d   : > { %6650 = vmatpush3.bf16.msra.mxu0 %v9337_v17 }
 0x30e   : > { %6672 = vmatpush3.bf16.msra.mxu1 %v9338_v20  ;;  %6651 = vmatprep.subr.bf16.mxu0 %v9339_v21 }
 0x30f   : > { %6673 = vmatprep.subr.bf16.mxu1 %v9340_v26 }
 0x311   : > { %6652 = vmatpush3.bf16.msra.mxu0 %v9341_v50 }
 0x312   : > { %6674 = vmatpush3.bf16.msra.mxu1 %v9342_v22  ;;  %6653 = vmatprep.subr.bf16.mxu0 %v9343_v23 }
 0x313   : > { %6675 = vmatprep.subr.bf16.mxu1 %v9344_v43 }
 0x315   : > { %6654 = vmatpush3.bf16.msra.mxu0 %v9345_v36 }
 0x316   : > { %6676 = vmatpush3.bf16.msra.mxu1 %v9346_v53  ;;  %6655 = vmatprep.subr.bf16.mxu0 %v9347_v10 }
 0x317   : > { %6677 = vmatprep.subr.bf16.mxu1 %v9348_v8 }
 0x319   : > { %6656 = vmatpush3.bf16.msra.mxu0 %v9349_v34 }
 0x31a   : > { %6678 = vmatpush3.bf16.msra.mxu1 %v9350_v30  ;;  %6657 = vmatprep.subr.bf16.mxu0 %v9351_v52 }
 0x31b   : > { %v6355_v32 = vpop.f32.mrb[48].mxu0  ;;  %6679 = vmatprep.subr.bf16.mxu1 %v9352_v7 }
 0x31c   : > { %v6377_v29 = vpop.f32.mrb[48].mxu1  ;;  %v6356_v37 = vpop.f32.mrb[49].mxu0 }
 0x31d   : > { %v6357_v25 = vadd.f32 %v6356_v37, %v6355_v32  ;;  %v6378_v39 = vpop.f32.mrb[49].mxu1  ;;  %v6358_v45 = vpop.f32.mrb[50].mxu0  ;;  %6658 = vmatpush3.bf16.msra.mxu0 %v8638_v40  ;;  %v9353_v40 = vld [vmem:[#allocation40_spill] sm:$0xff] }
 0x31e   : > { %v6379_v48 = vadd.f32 %v6378_v39, %v6377_v29  ;;  %v6380_v55 = vpop.f32.mrb[50].mxu1  ;;  %6680 = vmatpush3.bf16.msra.mxu1 %v8642_v15  ;;  %v6359_v57 = vpop.f32.mrb[51].mxu0  ;;  %6659 = vmatprep.subr.bf16.mxu0 %v8644_v54  ;;  %v9354_v15 = vld [vmem:[#allocation41_spill] sm:$0xff] }
 0x31f   : > { %v6381_v59 = vpop.f32.mrb[51].mxu1  ;;  %6681 = vmatprep.subr.bf16.mxu1 %v8647_v24 }
 0x320   : > { %v4617_v0 = vadd.f32 %v6379_v48, %v6357_v25 }
 0x321   : > { %6660 = vmatpush3.bf16.msra.mxu0 %v8650_v14 }
 0x322   : > { %6682 = vmatpush3.bf16.msra.mxu1 %v8654_v38  ;;  %6661 = vmatprep.subr.bf16.mxu0 %v8656_v44 }
 0x323   : > { %6683 = vmatprep.subr.bf16.mxu1 %v8659_v5 }
 0x325   : > { %6662 = vmatpush3.bf16.msra.mxu0 %v8662_v47 }
 0x326   : > { %6684 = vmatpush3.bf16.msra.mxu1 %v8666_v46 }
 0x328   : > { %5135 = vmatmul.mubr.bf16.vlgmr.msra.gmra.mrb[76].mxu0 %v9353_v40 }
 0x329   : > { %5175 = vmatmul.mubr.bf16.vlgmr.msra.gmra.mrb[76].mxu1 %v9354_v15 }
 0x33b   : > { %v6399_v54 = vpop.f32.mrb[52].mxu0 }
 0x33c   : > { %v6421_v49 = vpop.f32.mrb[52].mxu1  ;;  %v6400_v24 = vpop.f32.mrb[53].mxu0 }
 0x33d   : > { %v6401_v9 = vadd.f32 %v6400_v24, %v6399_v54  ;;  %v6422_v51 = vpop.f32.mrb[53].mxu1  ;;  %v6402_v14 = vpop.f32.mrb[54].mxu0 }
 0x33e   : > { %v6423_v19 = vadd.f32 %v6422_v51, %v6421_v49  ;;  %v6424_v38 = vpop.f32.mrb[54].mxu1  ;;  %v6403_v28 = vpop.f32.mrb[55].mxu0 }
 0x33f   : > { %v4657_v44 = vadd.f32 %v6401_v9, %v4617_v0  ;;  %v6425_v18 = vpop.f32.mrb[55].mxu1 }
 0x341   : > { %v4697_v5 = vadd.f32 %v6423_v19, %v4657_v44 }
 0x35b   : > { %v6443_v27 = vpop.f32.mrb[56].mxu0 }
 0x35c   : > { %v6465_v47 = vpop.f32.mrb[56].mxu1  ;;  %v6444_v31 = vpop.f32.mrb[57].mxu0 }
 0x35d   : > { %v6445_v46 = vadd.f32 %v6444_v31, %v6443_v27  ;;  %v6466_v63 = vpop.f32.mrb[57].mxu1  ;;  %v6446_v33 = vpop.f32.mrb[58].mxu0 }
 0x35e   : > { %v6467_v42 = vadd.f32 %v6466_v63, %v6465_v47  ;;  %v6468_v56 = vpop.f32.mrb[58].mxu1  ;;  %v6447_v2 = vpop.f32.mrb[59].mxu0 }
 0x35f   : > { %v4737_v61 = vadd.f32 %v6445_v46, %v4697_v5  ;;  %v6469_v35 = vpop.f32.mrb[59].mxu1  ;;  %v5188_v56 = vsub.s32 1, %v8768_v11 }
 0x361   : > { %v4777_v1 = vadd.f32 %v6467_v42, %v4737_v61 }
 0x37b   : > { %v6487_v58 = vpop.f32.mrb[60].mxu0 }
 0x37c   : > { %v6509_v60 = vpop.f32.mrb[60].mxu1  ;;  %v6488_v62 = vpop.f32.mrb[61].mxu0 }
 0x37d   : > { %v6489_v4 = vadd.f32 %v6488_v62, %v6487_v58  ;;  %v6510_v12 = vpop.f32.mrb[61].mxu1  ;;  %v6490_v13 = vpop.f32.mrb[62].mxu0 }
 0x37e   : > { %v6511_v3 = vadd.f32 %v6510_v12, %v6509_v60  ;;  %v6512_v6 = vpop.f32.mrb[62].mxu1  ;;  %v6491_v16 = vpop.f32.mrb[63].mxu0 }
 0x37f   : > { %v4817_v17 = vadd.f32 %v6489_v4, %v4777_v1  ;;  %v6513_v20 = vpop.f32.mrb[63].mxu1  ;;  %v5197_v62 = vpop.permute.xlu0 %5196 }
 0x381   : > { %v4857_v21 = vadd.f32 %v6511_v3, %v4817_v17 }
 0x383   : > { %v5183_v35 = vrot.slane %v4857_v21, 1 }
 0x39b   : > { %v6531_v26 = vpop.f32.mrb[64].mxu0 }
 0x39c   : > { %v6553_v50 = vpop.f32.mrb[64].mxu1  ;;  %v6532_v22 = vpop.f32.mrb[65].mxu0 }
 0x39d   : > { %v6533_v23 = vadd.f32 %v6532_v22, %v6531_v26  ;;  %v6554_v43 = vpop.f32.mrb[65].mxu1  ;;  %v6534_v36 = vpop.f32.mrb[66].mxu0 }
 0x39e   : > { %v6555_v53 = vadd.f32 %v6554_v43, %v6553_v50  ;;  %v6556_v10 = vpop.f32.mrb[66].mxu1  ;;  %v6535_v8 = vpop.f32.mrb[67].mxu0 }
 0x39f   : > { %v6557_v34 = vpop.f32.mrb[67].mxu1 }
 0x3a0   : > { %v4937_v30 = vadd.f32 %v6555_v53, %v6533_v23 }
 0x3bb   : > { %v6575_v52 = vpop.f32.mrb[68].mxu0 }
 0x3bc   : > { %v6597_v32 = vpop.f32.mrb[68].mxu1  ;;  %v6576_v7 = vpop.f32.mrb[69].mxu0 }
 0x3bd   : > { %v6577_v29 = vadd.f32 %v6576_v7, %v6575_v52  ;;  %v6598_v37 = vpop.f32.mrb[69].mxu1  ;;  %v6578_v25 = vpop.f32.mrb[70].mxu0 }
 0x3be   : > { %v6599_v39 = vadd.f32 %v6598_v37, %v6597_v32  ;;  %v6600_v45 = vpop.f32.mrb[70].mxu1  ;;  %v6579_v48 = vpop.f32.mrb[71].mxu0 }
 0x3bf   : > { %v4977_v55 = vadd.f32 %v6577_v29, %v4937_v30  ;;  %v6601_v57 = vpop.f32.mrb[71].mxu1 }
 0x3c1   : > { %v5017_v59 = vadd.f32 %v6599_v39, %v4977_v55 }
 0x3db   : > { %v6619_v0 = vpop.f32.mrb[72].mxu0 }
 0x3dc   : > { %v6641_v40 = vpop.f32.mrb[72].mxu1  ;;  %v6620_v15 = vpop.f32.mrb[73].mxu0 }
 0x3dd   : > { %v6621_v54 = vadd.f32 %v6620_v15, %v6619_v0  ;;  %v6642_v49 = vpop.f32.mrb[73].mxu1  ;;  %v6622_v24 = vpop.f32.mrb[74].mxu0 }
 0x3de   : > { %v6643_v9 = vadd.f32 %v6642_v49, %v6641_v40  ;;  %v6644_v51 = vpop.f32.mrb[74].mxu1  ;;  %v6623_v14 = vpop.f32.mrb[75].mxu0 }
 0x3df   : > { %v5057_v19 = vadd.f32 %v6621_v54, %v5017_v59  ;;  %v6645_v38 = vpop.f32.mrb[75].mxu1 }
 0x3e1   : > { %v5097_v28 = vadd.f32 %v6643_v9, %v5057_v19 }
 0x3fb   : > { %v6663_v44 = vpop.f32.mrb[76].mxu0 }
 0x3fc   : > { %v6685_v18 = vpop.f32.mrb[76].mxu1  ;;  %v6664_v5 = vpop.f32.mrb[77].mxu0 }
 0x3fd   : > { %v6665_v27 = vadd.f32 %v6664_v5, %v6663_v44  ;;  %v6686_v47 = vpop.f32.mrb[77].mxu1  ;;  %v6666_v31 = vpop.f32.mrb[78].mxu0 }
 0x3fe   : > { %v6687_v46 = vadd.f32 %v6686_v47, %v6685_v18  ;;  %v6688_v63 = vpop.f32.mrb[78].mxu1  ;;  %v6667_v33 = vpop.f32.mrb[79].mxu0 }
 0x3ff   : > { %v5137_v42 = vadd.f32 %v6665_v27, %v5097_v28  ;;  %v6689_v2 = vpop.f32.mrb[79].mxu1 }
 0x401   : > { %v5177_v61 = vadd.f32 %v6687_v46, %v5137_v42 }
 0x403   : > { %v5189_v1 = vrot.slane %v5177_v61, %v5188_v56 }
 0x405   : > { %v5190_v58 = vsel %vm5182_vm1, %v5189_v1, %v5183_v35 }
 0x406   : > { %v5191_v60 = vadd.f32 %v5190_v58, %v8790_v41 }
 0x408   : > { %v5192_v4 = vmax.f32 %v5191_v60, 0.0 }
 0x40a   : > { %v5199_v12 = vmul.f32 %v5197_v62, %v5192_v4 }
 0x40c   : > { %v5200_v13 = vpack.c.bf16 %v5199_v12, %v5199_v12 }
 0x40e   : > { %5201 = vst [vmem:[%s350_s9] sm:$0xf] %v5200_v13 }
 0x40f   : > { %7392 = shalt.err (!%p7389_p6)
}
 0x410   : > { %s7393_s18 = scalar_lea.hbm %s8841_s26, 64  ;;  %s7397_s17 = scalar_lea.hbm %s9356_s27, 512 }
 0x411   : > { %p7394_p0 = scmp.ne.s32.totalorder %s8841_s26, %s7393_s18  ;;  %p7398_p3 = scmp.lt.u32.totalorder %s8841_s26, %s9356_s27 }
 0x412   : > { %p7399_p7 = scmp.lt.u32.totalorder %s7397_s17, %s7393_s18  ;;  %p7401_p11 = scmp.lt.u32.totalorder %s7393_s18, %s8841_s26 }
 0x413   : > { %p7395_p5 = pnand %p7394_p0, %p9357_p1 }
 0x414   : > { %p7400_p12 = por %p7399_p7, %p7398_p3 }
 0x415   : > { %p7396_p13 = pneg %p7395_p5 }
 0x416   : > { %p7402_p9 = por %p7401_p11, %p7400_p12 }
 0x418   : > { %p7403_p2 = pnand %p7402_p9, %p7396_p13 }
 0x41a   : > { %7406 = shalt.err (!%p7403_p2)
}
 0x41b   : > { %6703 = dma.vmem_to_hbm [thread:$0]  (%p9357_p1), %s8843_s8, 64, %s8841_s26, %s5203_s22  }
 0x41c PF: > { %s9358_s10 = sld [smem:[#allocation16_spill]]  ;;  %s9359_s5 = sld [smem:[#allocation17_spill]] }
 0x41d   : > { %p6728_p4 = scmp.ge.s32.totalorder %s7489_s25, 2 }
 0x422   : > { %s5230_s7 = sand.u32 1, %s9358_s10   ;;  %p9360_p8 = scmp.ne.s32.totalorder %s9359_s5, 0 }
 0x423   : > { %s5231_s9 = scalar_lea.sflag [#allocation4], %s5230_s7 }
 0x424   : > { %p6720_p10 = pnand %p6728_p4, %p9360_p8 }
 0x426   : > { %7456 = dma.done.wait (!%p6720_p10), %s5231_s9, 64  }
 0x427   : > { %7458 = vsyncadd (!%p6720_p10), %s5231_s9, 4294967232  ;;  %s25_s25 = sadd.s32 1, %s7489_s25   ;;  %s9361_s16 = sld [smem:[#allocation18_spill]] }
 0x428   : > { %p22_p6 = scmp.ge.s32.totalorder %s25_s25, 10   ;;  %s9362_s18 = smov %s7465_s19 }
 0x429   : > { %s9363_s19 = smov %s7469_s20  ;;  %s9364_s20 = smov %s7684_s3 }
 0x42a   : > { %s9365_s21 = smov %s7481_s23  ;;  %s9366_s22 = smov %s7485_s24 }
 0x42b   : > { %s9368_s24 = smov %s9374_s12  ;;  %24 = sbr.rel (!%p22_p6) target bundleno = 14 (0xe), region = 111 }
 0x42d   : > { %s9367_s23 = smov %s9361_s16 }
 0x432   :  { %5236 = vsyncpa [#allocation3], 1 }
 0x433   :  { %5238 = vsyncpa [#allocation3 + $0x1], 1 }
 0x434   :  { %5239 = vsyncpa [#allocation6], 1 }
 0x435   :  { %5241 = vsyncpa [#allocation6 + $0x1], 1 }
 0x436   :  { %5242 = vsyncpa [#allocation9], 1 }
 0x437   :  { %5243 = vsyncpa [#allocation4], 1 }
 0x438   :  { %5245 = vsyncpa [#allocation4 + $0x1], 1 }

</bundles_post_ra>
